<compile_context>
chip_gen: v6e
topology: v6e:2x2x1
jax: 0.10.0
libtpu: 0.0.40
codegen_flags: <defaults>
</compile_context>

<pallas_src>
import jax
import jax.numpy as jnp
from jax import lax
from jax.experimental import pallas as pl
from jax.experimental.pallas import tpu as pltpu

# Module hyper-parameters (SortGAT(in_channel, gat_head, hidden_dim, dropout))
N = 16             # nodes per graph
F_IN = 8           # in_channel
HIDDEN = 32        # hidden_dim == out_channels per head (concat=False)
HEADS = 4          # gat_head
NEG_SLOPE = 0.2    # GATConv default LeakyReLU slope

# Kernel tiling
GB = 8                     # graphs per grid step (128 node rows; use 16 for 256-row tiles)
M_BLK = GB * N             # 128
F_AUG = F_IN + 1           # x augmented with a ones-column (drives the bias fold)
HC = HEADS * HIDDEN        # 128
SRC_ROW0 = 16              # row offset of W*att_src^T inside the weight slab (8-aligned)
W_ROWS = SRC_ROW0 + 8      # weight slab rows (src block padded to 8 rows)


def gat_kernel(data_ref, w_ref, out_ref):
    data = data_ref[...]                                   # [M_BLK, M_BLK + F_AUG]
    mask = data[:, :M_BLK]                                 # [128,128] additive block-diag mask
    x_aug = data[:, M_BLK:]                                # [128, 9]  = [x | 1]

    w_all = w_ref[...]                                     # [W_ROWS, HC + HEADS]
    w_proj = w_all[:F_AUG, :]                              # [9, 132]  = [W ; bias_row | W*att_dst ; 0]
    wa_srcT = w_all[SRC_ROW0:SRC_ROW0 + 8, :F_AUG]         # [8, 9]    = (W*att_src)^T, zero-padded

    # One lane-dense projection: per-head features (+bias via ones-col) and dst logits.
    proj = jnp.dot(x_aug, w_proj, preferred_element_type=jnp.float32)   # [128, 132]
    xh_all = proj[:, :HC]                                  # [128, 128]
    a_dst = proj[:, HC:]                                   # [128, 4]

    # Src logits with nodes already on lanes: NT matmul (contract last dims), no transpose.
    a_srcT = lax.dot_general(wa_srcT, x_aug,
                             (((1,), (1,)), ((), ())),
                             preferred_element_type=jnp.float32)        # [8, 128]

    inv_heads = jnp.float32(1.0 / HEADS)
    acc = None
    for h in range(HEADS):                                 # static unroll over heads
        # logits[i, j] = a_dst[i, h] + a_src[j, h]  (cross-graph entries are masked below)
        logits = a_dst[:, h:h + 1] + a_srcT[h:h + 1, :]    # [128, 128]
        logits = jnp.maximum(logits, NEG_SLOPE * logits)   # LeakyReLU (slope < 1)
        logits = logits + mask                             # non-edges & cross-graph -> -1e30

        # softmax over source nodes (lane axis); masked entries exp() to exactly 0
        m = jnp.max(logits, axis=-1, keepdims=True)
        p = jnp.exp(logits - m)
        denom = jnp.sum(p, axis=-1, keepdims=True)
        inv = pl.reciprocal(denom, approx=True)            # EUP slot
        inv = inv * (2.0 - denom * inv)                    # 1 Newton step -> ~f32 exact
        attn = p * (inv * inv_heads)                       # fold head-mean into the scale

        # K=128 aggregation matmul handles all GB graphs at once (block-diagonal attn).
        contrib = jnp.dot(attn, xh_all[:, h * HIDDEN:(h + 1) * HIDDEN],
                          preferred_element_type=jnp.float32)           # [128, 32]
        acc = contrib if acc is None else acc + contrib

    out_ref[...] = acc                                     # bias + head-mean already folded in


def sort_gat_forward(x, adj, w, att_src, att_dst, bias):
    """Batched SortGAT forward.

    x:   [G, N, F_IN]  node features of G independent graphs
    adj: [G, N, N]     dense adjacency, adj[g, i, j] = 1 if edge j->i (self-loops included)
    Returns [G, N, HIDDEN]; each graph gets exactly the single-graph module semantics.
    """
    G = x.shape[0]
    pad = (-G) % GB
    if pad:  # pad with dummy self-loop-only graphs so G is a multiple of GB
        x = jnp.concatenate([x, jnp.zeros((pad, N, F_IN), x.dtype)], axis=0)
        adj = jnp.concatenate(
            [adj, jnp.broadcast_to(jnp.eye(N, dtype=adj.dtype), (pad, N, N))], axis=0)
    Gp = G + pad
    n_blk = Gp // GB

    # ---- weight-side folding (pure parameter prep, once per call) ----
    w3 = w.reshape(F_IN, HEADS, HIDDEN)
    wa_dst = jnp.einsum('fhc,hc->fh', w3, att_dst)                      # [F_IN, H]
    wa_src = jnp.einsum('fhc,hc->fh', w3, att_src)                      # [F_IN, H]
    w_slab = jnp.zeros((W_ROWS, HC + HEADS), jnp.float32)
    w_slab = w_slab.at[:F_IN, :HC].set(w)
    w_slab = w_slab.at[F_IN, :HC].set(jnp.tile(bias, HEADS))            # bias via ones-column
    w_slab = w_slab.at[:F_IN, HC:].set(wa_dst)
    w_slab = w_slab.at[SRC_ROW0:SRC_ROW0 + HEADS, :F_IN].set(wa_src.T)  # (W*att_src)^T rows

    # ---- data slab: [block-diagonal additive mask | x | 1] -> one lane-dense DMA ----
    neg = jnp.float32(-1e30)
    mask_add = jnp.where(adj > 0, 0.0, neg).astype(jnp.float32)         # [Gp, N, N]
    eye_blk = jnp.eye(GB, dtype=jnp.float32)[None, :, None, :, None]    # [1,GB,1,GB,1]
    mask_bd = jnp.where(eye_blk > 0,
                        mask_add.reshape(n_blk, GB, N, 1, N),
                        neg)                                            # [n_blk,GB,N,GB,N]
    mask_slab = mask_bd.reshape(Gp * N, M_BLK)                          # [Gp*N, 128]
    x_aug = jnp.concatenate(
        [x.reshape(Gp * N, F_IN).astype(jnp.float32),
         jnp.ones((Gp * N, 1), jnp.float32)], axis=1)                   # [Gp*N, 9]
    data_slab = jnp.concatenate([mask_slab, x_aug], axis=1)             # [Gp*N, 137]

    out = pl.pallas_call(
        gat_kernel,
        out_shape=jax.ShapeDtypeStruct((Gp * N, HIDDEN), jnp.float32),
        grid=(n_blk,),
        in_specs=[
            pl.BlockSpec((M_BLK, M_BLK + F_AUG), lambda b: (b, 0)),
            pl.BlockSpec((W_ROWS, HC + HEADS), lambda b: (0, 0)),
        ],
        out_specs=pl.BlockSpec((M_BLK, HIDDEN), lambda b: (b, 0)),
        compiler_params=pltpu.CompilerParams(
            dimension_semantics=("parallel",),       # graph-block axis -> megacore on v7x
            vmem_limit_bytes=32 * 1024 * 1024),
    )(data_slab, w_slab)

    return out[:G * N].reshape(G, N, HIDDEN)


def reference_forward(x, adj, w, att_src, att_dst, bias):
    """Pure-JAX dense reference of GATConv (concat=False, mean over heads) per graph."""
    def one(xg, ag):
        xh = (xg @ w).reshape(N, HEADS, HIDDEN)
        a_src = jnp.einsum('nhc,hc->nh', xh, att_src)
        a_dst = jnp.einsum('nhc,hc->nh', xh, att_dst)
        logits = a_dst[:, None, :] + a_src[None, :, :]
        logits = jnp.where(logits > 0, logits, NEG_SLOPE * logits)
        logits = jnp.where(ag[:, :, None] > 0, logits, -1e30)
        attn = jax.nn.softmax(logits, axis=1)
        return jnp.einsum('ijh,jhc->ihc', attn, xh).mean(axis=1) + bias
    return jax.vmap(one)(x, adj)


if __name__ == "__main__":
    G = 16  # graphs in the batch (2 graph-blocks -> real, parallel grid)
    key = jax.random.PRNGKey(0)
    k_x, k_adj, k_w, k_as, k_ad, k_b = jax.random.split(key, 6)

    # Node features (data.x) for G independent graphs
    x = jax.random.normal(k_x, (G, N, F_IN), jnp.float32)

    # Dense adjacency from per-graph random directed edges + self-loops
    # (GATConv add_self_loops=True).  A[g, dst, src] = 1.
    adj = (jax.random.uniform(k_adj, (G, N, N)) < 0.3).astype(jnp.float32)
    adj = jnp.maximum(adj, jnp.eye(N, dtype=jnp.float32))
    # TODO(synk): data.edge_attr is part of the interface but unused (edge_dim=None).

    # Deterministic synthetic GATConv parameters (glorot-style scaling)
    w = jax.random.normal(k_w, (F_IN, HEADS * HIDDEN), jnp.float32) * (
        (2.0 / (F_IN + HEADS * HIDDEN)) ** 0.5)
    att_src = jax.random.normal(k_as, (HEADS, HIDDEN), jnp.float32) * (
        (2.0 / (1 + HIDDEN)) ** 0.5)
    att_dst = jax.random.normal(k_ad, (HEADS, HIDDEN), jnp.float32) * (
        (2.0 / (1 + HIDDEN)) ** 0.5)
    bias = 0.1 * jax.random.normal(k_b, (HIDDEN,), jnp.float32)

    out = sort_gat_forward(x, adj, w, att_src, att_dst, bias)
    out = jax.block_until_ready(out)

    ref = reference_forward(x, adj, w, att_src, att_dst, bias)
    assert out.shape == (G, N, HIDDEN)
    err = jnp.max(jnp.abs(out - ref))
    assert jnp.allclose(out, ref, rtol=1e-4, atol=1e-4), f"mismatch vs reference, max err {err}"

    print("KERNEL_OK")
</pallas_src>

<mosaic_0001>
module attributes {stable_mosaic.version = 11 : i64} {
  func.func @gat_kernel(%arg0: i32, %arg1: memref<128x137xf32, #tpu.memory_space<vmem>>, %arg2: memref<24x132xf32, #tpu.memory_space<vmem>>, %arg3: memref<128x32xf32, #tpu.memory_space<vmem>>) attributes {dimension_semantics = [#tpu.dimension_semantics<parallel>], iteration_bounds = array<i64: 2>, scalar_prefetch = 0 : i64, scratch_operands = 0 : i64, tpu.core_type = #tpu.core_type<tc>, window_params = [{transform_indices = @transform_0, window_bounds = array<i64: 128, 137>}, {pipeline_mode = #tpu.pipeline_mode<synchronous>, transform_indices = @transform_1, window_bounds = array<i64: 24, 132>}, {transform_indices = @transform_2, window_bounds = array<i64: 128, 32>}]} {
    %c0 = arith.constant 0 : index
    %c0_0 = arith.constant 0 : index
    %0 = vector.load %arg1[%c0, %c0_0] : memref<128x137xf32, #tpu.memory_space<vmem>>, vector<128x137xf32>
    %1 = vector.extract_strided_slice %0 {offsets = [0, 0], sizes = [128, 128], strides = [1, 1]} : vector<128x137xf32> to vector<128x128xf32>
    %2 = vector.extract_strided_slice %0 {offsets = [0, 128], sizes = [128, 9], strides = [1, 1]} : vector<128x137xf32> to vector<128x9xf32>
    %c0_1 = arith.constant 0 : index
    %c0_2 = arith.constant 0 : index
    %3 = vector.load %arg2[%c0_1, %c0_2] : memref<24x132xf32, #tpu.memory_space<vmem>>, vector<24x132xf32>
    %4 = vector.extract_strided_slice %3 {offsets = [0, 0], sizes = [9, 132], strides = [1, 1]} : vector<24x132xf32> to vector<9x132xf32>
    %5 = vector.extract_strided_slice %3 {offsets = [16, 0], sizes = [8, 9], strides = [1, 1]} : vector<24x132xf32> to vector<8x9xf32>
    %cst = arith.constant dense<0.000000e+00> : vector<128x132xf32>
    %6 = tpu.matmul %2, %4, %cst {dimension_numbers = #tpu.dot_dimension_numbers<[1], [0], [0], [1], [0, 0, 1, 1], [], []>} : vector<128x9xf32>, vector<9x132xf32>, vector<128x132xf32> -> vector<128x132xf32>
    %7 = vector.extract_strided_slice %6 {offsets = [0, 0], sizes = [128, 128], strides = [1, 1]} : vector<128x132xf32> to vector<128x128xf32>
    %8 = vector.extract_strided_slice %6 {offsets = [0, 128], sizes = [128, 4], strides = [1, 1]} : vector<128x132xf32> to vector<128x4xf32>
    %cst_3 = arith.constant dense<0.000000e+00> : vector<8x128xf32>
    %9 = tpu.matmul %5, %2, %cst_3 {dimension_numbers = #tpu.dot_dimension_numbers<[1], [1], [0], [0], [0, 0, 1, 0], [], []>} : vector<8x9xf32>, vector<128x9xf32>, vector<8x128xf32> -> vector<8x128xf32>
    %10 = vector.extract_strided_slice %8 {offsets = [0, 0], sizes = [128, 1], strides = [1, 1]} : vector<128x4xf32> to vector<128x1xf32>
    %11 = vector.extract_strided_slice %9 {offsets = [0, 0], sizes = [1, 128], strides = [1, 1]} : vector<8x128xf32> to vector<1x128xf32>
    %12 = vector.broadcast %10 : vector<128x1xf32> to vector<128x128xf32>
    %13 = vector.broadcast %11 : vector<1x128xf32> to vector<128x128xf32>
    %14 = arith.addf %12, %13 : vector<128x128xf32>
    %cst_4 = arith.constant 2.000000e-01 : f32
    %15 = vector.broadcast %cst_4 : f32 to vector<128x128xf32>
    %16 = arith.mulf %15, %14 : vector<128x128xf32>
    %17 = arith.maximumf %14, %16 : vector<128x128xf32>
    %18 = arith.addf %17, %1 : vector<128x128xf32>
    %cst_5 = arith.constant dense<0xFF800000> : vector<128xf32>
    %19 = vector.multi_reduction <maximumf>, %18, %cst_5 [1] : vector<128x128xf32> to vector<128xf32>
    %20 = vector.shape_cast %19 : vector<128xf32> to vector<128x1xf32>
    %21 = vector.broadcast %20 : vector<128x1xf32> to vector<128x128xf32>
    %22 = arith.subf %18, %21 : vector<128x128xf32>
    %23 = math.exp %22 : vector<128x128xf32>
    %cst_6 = arith.constant dense<0.000000e+00> : vector<128xf32>
    %24 = vector.multi_reduction <add>, %23, %cst_6 [1] : vector<128x128xf32> to vector<128xf32>
    %25 = vector.shape_cast %24 : vector<128xf32> to vector<128x1xf32>
    %26 = tpu.reciprocal %25 {approx = true} : vector<128x1xf32> -> vector<128x1xf32>
    %27 = arith.mulf %25, %26 : vector<128x1xf32>
    %cst_7 = arith.constant 2.000000e+00 : f32
    %28 = vector.broadcast %cst_7 : f32 to vector<128x1xf32>
    %29 = arith.subf %28, %27 : vector<128x1xf32>
    %30 = arith.mulf %26, %29 : vector<128x1xf32>
    %cst_8 = arith.constant 2.500000e-01 : f32
    %31 = vector.broadcast %cst_8 : f32 to vector<128x1xf32>
    %32 = arith.mulf %30, %31 : vector<128x1xf32>
    %33 = vector.broadcast %32 : vector<128x1xf32> to vector<128x128xf32>
    %34 = arith.mulf %23, %33 : vector<128x128xf32>
    %35 = vector.extract_strided_slice %7 {offsets = [0, 0], sizes = [128, 32], strides = [1, 1]} : vector<128x128xf32> to vector<128x32xf32>
    %cst_9 = arith.constant dense<0.000000e+00> : vector<128x32xf32>
    %36 = tpu.matmul %34, %35, %cst_9 {dimension_numbers = #tpu.dot_dimension_numbers<[1], [0], [0], [1], [0, 0, 1, 1], [], []>} : vector<128x128xf32>, vector<128x32xf32>, vector<128x32xf32> -> vector<128x32xf32>
    %37 = vector.extract_strided_slice %8 {offsets = [0, 1], sizes = [128, 1], strides = [1, 1]} : vector<128x4xf32> to vector<128x1xf32>
    %38 = vector.extract_strided_slice %9 {offsets = [1, 0], sizes = [1, 128], strides = [1, 1]} : vector<8x128xf32> to vector<1x128xf32>
    %39 = vector.broadcast %37 : vector<128x1xf32> to vector<128x128xf32>
    %40 = vector.broadcast %38 : vector<1x128xf32> to vector<128x128xf32>
    %41 = arith.addf %39, %40 : vector<128x128xf32>
    %cst_10 = arith.constant 2.000000e-01 : f32
    %42 = vector.broadcast %cst_10 : f32 to vector<128x128xf32>
    %43 = arith.mulf %42, %41 : vector<128x128xf32>
    %44 = arith.maximumf %41, %43 : vector<128x128xf32>
    %45 = arith.addf %44, %1 : vector<128x128xf32>
    %cst_11 = arith.constant dense<0xFF800000> : vector<128xf32>
    %46 = vector.multi_reduction <maximumf>, %45, %cst_11 [1] : vector<128x128xf32> to vector<128xf32>
    %47 = vector.shape_cast %46 : vector<128xf32> to vector<128x1xf32>
    %48 = vector.broadcast %47 : vector<128x1xf32> to vector<128x128xf32>
    %49 = arith.subf %45, %48 : vector<128x128xf32>
    %50 = math.exp %49 : vector<128x128xf32>
    %cst_12 = arith.constant dense<0.000000e+00> : vector<128xf32>
    %51 = vector.multi_reduction <add>, %50, %cst_12 [1] : vector<128x128xf32> to vector<128xf32>
    %52 = vector.shape_cast %51 : vector<128xf32> to vector<128x1xf32>
    %53 = tpu.reciprocal %52 {approx = true} : vector<128x1xf32> -> vector<128x1xf32>
    %54 = arith.mulf %52, %53 : vector<128x1xf32>
    %cst_13 = arith.constant 2.000000e+00 : f32
    %55 = vector.broadcast %cst_13 : f32 to vector<128x1xf32>
    %56 = arith.subf %55, %54 : vector<128x1xf32>
    %57 = arith.mulf %53, %56 : vector<128x1xf32>
    %cst_14 = arith.constant 2.500000e-01 : f32
    %58 = vector.broadcast %cst_14 : f32 to vector<128x1xf32>
    %59 = arith.mulf %57, %58 : vector<128x1xf32>
    %60 = vector.broadcast %59 : vector<128x1xf32> to vector<128x128xf32>
    %61 = arith.mulf %50, %60 : vector<128x128xf32>
    %62 = vector.extract_strided_slice %7 {offsets = [0, 32], sizes = [128, 32], strides = [1, 1]} : vector<128x128xf32> to vector<128x32xf32>
    %cst_15 = arith.constant dense<0.000000e+00> : vector<128x32xf32>
    %63 = tpu.matmul %61, %62, %cst_15 {dimension_numbers = #tpu.dot_dimension_numbers<[1], [0], [0], [1], [0, 0, 1, 1], [], []>} : vector<128x128xf32>, vector<128x32xf32>, vector<128x32xf32> -> vector<128x32xf32>
    %64 = arith.addf %36, %63 : vector<128x32xf32>
    %65 = vector.extract_strided_slice %8 {offsets = [0, 2], sizes = [128, 1], strides = [1, 1]} : vector<128x4xf32> to vector<128x1xf32>
    %66 = vector.extract_strided_slice %9 {offsets = [2, 0], sizes = [1, 128], strides = [1, 1]} : vector<8x128xf32> to vector<1x128xf32>
    %67 = vector.broadcast %65 : vector<128x1xf32> to vector<128x128xf32>
    %68 = vector.broadcast %66 : vector<1x128xf32> to vector<128x128xf32>
    %69 = arith.addf %67, %68 : vector<128x128xf32>
    %cst_16 = arith.constant 2.000000e-01 : f32
    %70 = vector.broadcast %cst_16 : f32 to vector<128x128xf32>
    %71 = arith.mulf %70, %69 : vector<128x128xf32>
    %72 = arith.maximumf %69, %71 : vector<128x128xf32>
    %73 = arith.addf %72, %1 : vector<128x128xf32>
    %cst_17 = arith.constant dense<0xFF800000> : vector<128xf32>
    %74 = vector.multi_reduction <maximumf>, %73, %cst_17 [1] : vector<128x128xf32> to vector<128xf32>
    %75 = vector.shape_cast %74 : vector<128xf32> to vector<128x1xf32>
    %76 = vector.broadcast %75 : vector<128x1xf32> to vector<128x128xf32>
    %77 = arith.subf %73, %76 : vector<128x128xf32>
    %78 = math.exp %77 : vector<128x128xf32>
    %cst_18 = arith.constant dense<0.000000e+00> : vector<128xf32>
    %79 = vector.multi_reduction <add>, %78, %cst_18 [1] : vector<128x128xf32> to vector<128xf32>
    %80 = vector.shape_cast %79 : vector<128xf32> to vector<128x1xf32>
    %81 = tpu.reciprocal %80 {approx = true} : vector<128x1xf32> -> vector<128x1xf32>
    %82 = arith.mulf %80, %81 : vector<128x1xf32>
    %cst_19 = arith.constant 2.000000e+00 : f32
    %83 = vector.broadcast %cst_19 : f32 to vector<128x1xf32>
    %84 = arith.subf %83, %82 : vector<128x1xf32>
    %85 = arith.mulf %81, %84 : vector<128x1xf32>
    %cst_20 = arith.constant 2.500000e-01 : f32
    %86 = vector.broadcast %cst_20 : f32 to vector<128x1xf32>
    %87 = arith.mulf %85, %86 : vector<128x1xf32>
    %88 = vector.broadcast %87 : vector<128x1xf32> to vector<128x128xf32>
    %89 = arith.mulf %78, %88 : vector<128x128xf32>
    %90 = vector.extract_strided_slice %7 {offsets = [0, 64], sizes = [128, 32], strides = [1, 1]} : vector<128x128xf32> to vector<128x32xf32>
    %cst_21 = arith.constant dense<0.000000e+00> : vector<128x32xf32>
    %91 = tpu.matmul %89, %90, %cst_21 {dimension_numbers = #tpu.dot_dimension_numbers<[1], [0], [0], [1], [0, 0, 1, 1], [], []>} : vector<128x128xf32>, vector<128x32xf32>, vector<128x32xf32> -> vector<128x32xf32>
    %92 = arith.addf %64, %91 : vector<128x32xf32>
    %93 = vector.extract_strided_slice %8 {offsets = [0, 3], sizes = [128, 1], strides = [1, 1]} : vector<128x4xf32> to vector<128x1xf32>
    %94 = vector.extract_strided_slice %9 {offsets = [3, 0], sizes = [1, 128], strides = [1, 1]} : vector<8x128xf32> to vector<1x128xf32>
    %95 = vector.broadcast %93 : vector<128x1xf32> to vector<128x128xf32>
    %96 = vector.broadcast %94 : vector<1x128xf32> to vector<128x128xf32>
    %97 = arith.addf %95, %96 : vector<128x128xf32>
    %cst_22 = arith.constant 2.000000e-01 : f32
    %98 = vector.broadcast %cst_22 : f32 to vector<128x128xf32>
    %99 = arith.mulf %98, %97 : vector<128x128xf32>
    %100 = arith.maximumf %97, %99 : vector<128x128xf32>
    %101 = arith.addf %100, %1 : vector<128x128xf32>
    %cst_23 = arith.constant dense<0xFF800000> : vector<128xf32>
    %102 = vector.multi_reduction <maximumf>, %101, %cst_23 [1] : vector<128x128xf32> to vector<128xf32>
    %103 = vector.shape_cast %102 : vector<128xf32> to vector<128x1xf32>
    %104 = vector.broadcast %103 : vector<128x1xf32> to vector<128x128xf32>
    %105 = arith.subf %101, %104 : vector<128x128xf32>
    %106 = math.exp %105 : vector<128x128xf32>
    %cst_24 = arith.constant dense<0.000000e+00> : vector<128xf32>
    %107 = vector.multi_reduction <add>, %106, %cst_24 [1] : vector<128x128xf32> to vector<128xf32>
    %108 = vector.shape_cast %107 : vector<128xf32> to vector<128x1xf32>
    %109 = tpu.reciprocal %108 {approx = true} : vector<128x1xf32> -> vector<128x1xf32>
    %110 = arith.mulf %108, %109 : vector<128x1xf32>
    %cst_25 = arith.constant 2.000000e+00 : f32
    %111 = vector.broadcast %cst_25 : f32 to vector<128x1xf32>
    %112 = arith.subf %111, %110 : vector<128x1xf32>
    %113 = arith.mulf %109, %112 : vector<128x1xf32>
    %cst_26 = arith.constant 2.500000e-01 : f32
    %114 = vector.broadcast %cst_26 : f32 to vector<128x1xf32>
    %115 = arith.mulf %113, %114 : vector<128x1xf32>
    %116 = vector.broadcast %115 : vector<128x1xf32> to vector<128x128xf32>
    %117 = arith.mulf %106, %116 : vector<128x128xf32>
    %118 = vector.extract_strided_slice %7 {offsets = [0, 96], sizes = [128, 32], strides = [1, 1]} : vector<128x128xf32> to vector<128x32xf32>
    %cst_27 = arith.constant dense<0.000000e+00> : vector<128x32xf32>
    %119 = tpu.matmul %117, %118, %cst_27 {dimension_numbers = #tpu.dot_dimension_numbers<[1], [0], [0], [1], [0, 0, 1, 1], [], []>} : vector<128x128xf32>, vector<128x32xf32>, vector<128x32xf32> -> vector<128x32xf32>
    %120 = arith.addf %92, %119 : vector<128x32xf32>
    %c0_28 = arith.constant 0 : index
    %c0_29 = arith.constant 0 : index
    %121 = vector.load %arg3[%c0_28, %c0_29] : memref<128x32xf32, #tpu.memory_space<vmem>>, vector<128x32xf32>
    tpu.vector_store %arg3[%c0_28, %c0_29], %120 {strides = array<i32>} : memref<128x32xf32, #tpu.memory_space<vmem>>, vector<128x32xf32>,
    return
  }
  func.func @transform_0(%arg0: i32) -> (i32, i32) {
    %c0_i32 = arith.constant 0 : i32
    %c0_i32_0 = arith.constant 0 : i32
    return %arg0, %c0_i32 : i32, i32
  }
  func.func @transform_1(%arg0: i32) -> (i32, i32) {
    %c0_i32 = arith.constant 0 : i32
    %c0_i32_0 = arith.constant 0 : i32
    %c0_i32_1 = arith.constant 0 : i32
    return %c0_i32, %c0_i32_0 : i32, i32
  }
  func.func @transform_2(%arg0: i32) -> (i32, i32) {
    %c0_i32 = arith.constant 0 : i32
    %c0_i32_0 = arith.constant 0 : i32
    return %arg0, %c0_i32 : i32, i32
  }
}

</mosaic_0001>

<bundles_post_ra>
// kernel: tpu_custom_call.1
= control target key start
LH: loop header
LB: loop body
LE: loop exit
PB: predicated region body
PF: predicated region fallthrough
CT: control target
= control target key end

     0   :  { %s3548_s9 = smov 0   ;;  %s5168_s0 = inlined_call_operand.vmem [shape: f32[256,137], index: 0, kind: input, shape index: {}]   ;;  %s5169_s1 = inlined_call_operand.vmem [shape: f32[24,132], index: 1, kind: input, shape index: {}]   ;;  %s5170_s2 = inlined_call_operand.vmem [shape: f32[256,32], index: 2, kind: output, shape index: {}]  }
   0x1 LB: > { %s2698_s10 = sadd.s32 4294967295, %s3522_s9   ;;  %p2702_p0 = scmp.ge.s32.totalorder %s3522_s9, 1  ;;  %s3522_s9 = sphi %s3548_s9, %s12_s9  }
   0x2   : > { %p114_p1 = scmp.lt.s32.totalorder %s3522_s9, 3 }
   0x4   : > { %p115_p2 = pnand %p2702_p0, %p114_p1 }
   0x6   : > { %118 = sbr.rel (%p115_p2) target bundleno = 1847 (0x737), region = 28 }
   0xb   : > { %v185_v0 = vld [vmem:[%s5169_s1 + $0x18] sm:$0xff]  ;;  %vm236_vm0 = vcmask 1040384   ;;  %v184_v1 = vld [vmem:[%s5169_s1 + $0x10] sm:$0xff]  ;;  %v183_v2 = vld [vmem:[%s5169_s1 + $0x8] sm:$0xff]  ;;  %s2703_s17 = sshll.u32 %s2698_s10, 4  ;;  %v3524_v4 = vmov 0.0   ;;  %v557_v61 = vlaneseq }
   0xc   : > { %2708 = vmatprep.subr.msk.mxu0 %vm236_vm0, %v185_v0  ;;  %v182_v3 = vld [vmem:[%s5169_s1] sm:$0xff]  ;;  %307 = vmatprep.mubr.f32.mxu0 %v3524_v4  ;;  %p138_p3 = scmp.lt.s32.totalorder %s2703_s17, 31  ;;  %vm3525_vm1 = vmmov 0   ;;  %vm187_vm2 = vcmask 72704   ;;  %v3526_v22 = vmov 1   ;;  %v3527_v23 = vmov 0  }
   0xd   : > { %2709 = vmatpush1.msk.msra.mxu0 %vm236_vm0, %v184_v1  ;;  %2891 = vmatprep.subr.mxu1 %v3524_v4  ;;  %v186_v21 = vld [vmem:[%s5169_s1 + $0x20] sm:$0xff]  ;;  %v3528_v28 = vmov 3   ;;  %v3529_v29 = vmov 2   ;;  %v3839_v0 = vshrl.u32 %v557_v61, 7  ;;  %s3530_s26 = smov 96   ;;  %s3531_s27 = smov 64  }
   0xe   : > { %273 = vmatprep.subr.mxu0 %v183_v2  ;;  %s5443_s17 = smov (!%p138_p3, %s2703_s17), 31  ;;  %2923 = vmatprep.mubr.msk.f32.mxu1 %vm3525_vm1, %v3524_v4  ;;  %s3532_s28 = smov 32   ;;  %vm2625_vm3 = vcmask 261120  }
   0xf   : > { %274 = vmatpush1.msra.mxu0 %v182_v3  ;;  %s2745_s20 = sshll.u32 %s5443_s17, 4  ;;  %3200 = vset.pattern.permute.xlu1 %v3526_v22  ;;  %v559_v3 = vsub.s32 0, %v3839_v0  ;;  %s2707_s29 = sshll.u32 %s5443_s17, 3 }
  0x10   : > { %s3577_s23 = scalar_lea.vmem %s5168_s0, %s2745_s20  ;;  %3199 = vset.pattern.permute.xlu0 %v3527_v23  ;;  %s5114_s4 = scalar_lea.vmem %s5170_s2, %s2707_s29 }
  0x11   : > { %v3580_v5 = vld [vmem:[%s3577_s23 + $0x8] sm:$0xff]  ;;  %v3586_v6 = vld [vmem:[%s3577_s23 + $0x18] sm:$0xff] }
  0x12   : > { %2710 = vmatmul.mubr.msk.f32.vlgmr.msra.gmra.mxu0 %vm187_vm2, %v3580_v5  ;;  %v3591_v7 = vld [vmem:[%s3577_s23 + $0xf8] sm:$0xff]  ;;  %v3595_v8 = vld [vmem:[%s3577_s23 + $0x28] sm:$0xff] }
  0x13   : > { %313 = vmatprep.mubr.f32.mxu0 %v3524_v4  ;;  %2892 = vmatpush3.xpose.msk.msra.mxu1 %vm187_vm2, %v3591_v7  ;;  %v179_v9 = vld [vmem:[%s3577_s23 + $0xe8] sm:$0xff]  ;;  %v157_v10 = vld [vmem:[%s3577_s23 + $0x38] sm:$0xff] }
  0x14   : > { %2893 = vmatprep.subr.mxu1 %v3524_v4  ;;  %v177_v11 = vld [vmem:[%s3577_s23 + $0xd8] sm:$0xff]  ;;  %v159_v12 = vld [vmem:[%s3577_s23 + $0x48] sm:$0xff] }
  0x15   : > { %v175_v13 = vld [vmem:[%s3577_s23 + $0xc8] sm:$0xff]  ;;  %v161_v14 = vld [vmem:[%s3577_s23 + $0x58] sm:$0xff] }
  0x16   : > { %2711 = vmatmul.mubr.msk.f32.gmra.mxu0 %vm187_vm2, %v3586_v6  ;;  %v173_v15 = vld [vmem:[%s3577_s23 + $0xb8] sm:$0xff]  ;;  %v163_v16 = vld [vmem:[%s3577_s23 + $0x68] sm:$0xff] }
  0x17   : > { %319 = vmatprep.mubr.f32.mxu0 %v3524_v4  ;;  %2894 = vmatpush3.xpose.msk.msra.mxu1 %vm187_vm2, %v179_v9  ;;  %v171_v17 = vld [vmem:[%s3577_s23 + $0xa8] sm:$0xff]  ;;  %v165_v18 = vld [vmem:[%s3577_s23 + $0x78] sm:$0xff] }
  0x18   : > { %2895 = vmatprep.subr.mxu1 %v3524_v4  ;;  %v169_v19 = vld [vmem:[%s3577_s23 + $0x98] sm:$0xff]  ;;  %v167_v20 = vld [vmem:[%s3577_s23 + $0x88] sm:$0xff] }
  0x1a   : > { %2712 = vmatmul.mubr.msk.f32.gmra.mxu0 %vm187_vm2, %v3595_v8 }
  0x1b   : > { %325 = vmatprep.mubr.f32.mxu0 %v3524_v4  ;;  %2896 = vmatpush3.xpose.msk.msra.mxu1 %vm187_vm2, %v177_v11 }
  0x1c   : > { %2897 = vmatprep.subr.mxu1 %v3524_v4 }
  0x1e   : > { %2713 = vmatmul.mubr.msk.f32.gmra.mxu0 %vm187_vm2, %v157_v10 }
  0x1f   : > { %331 = vmatprep.mubr.f32.mxu0 %v3524_v4  ;;  %2898 = vmatpush3.xpose.msk.msra.mxu1 %vm187_vm2, %v175_v13 }
  0x20   : > { %2899 = vmatprep.subr.mxu1 %v3524_v4 }
  0x22   : > { %2714 = vmatmul.mubr.msk.f32.gmra.mxu0 %vm187_vm2, %v159_v12 }
  0x23   : > { %337 = vmatprep.mubr.f32.mxu0 %v3524_v4  ;;  %2900 = vmatpush3.xpose.msk.msra.mxu1 %vm187_vm2, %v173_v15 }
  0x24   : > { %2901 = vmatprep.subr.mxu1 %v3524_v4 }
  0x26   : > { %2715 = vmatmul.mubr.msk.f32.gmra.mxu0 %vm187_vm2, %v161_v14 }
  0x27   : > { %343 = vmatprep.mubr.f32.mxu0 %v3524_v4  ;;  %2902 = vmatpush3.xpose.msk.msra.mxu1 %vm187_vm2, %v171_v17 }
  0x28   : > { %2903 = vmatprep.subr.mxu1 %v3524_v4 }
  0x2a   : > { %2716 = vmatmul.mubr.msk.f32.gmra.mxu0 %vm187_vm2, %v163_v16 }
  0x2b   : > { %349 = vmatprep.mubr.f32.mxu0 %v3524_v4  ;;  %2904 = vmatpush3.xpose.msk.msra.mxu1 %vm187_vm2, %v169_v19 }
  0x2c   : > { %2905 = vmatprep.subr.mxu1 %v3524_v4 }
  0x2e   : > { %2717 = vmatmul.mubr.msk.f32.gmra.mxu0 %vm187_vm2, %v165_v18 }
  0x2f   : > { %355 = vmatprep.mubr.f32.mxu0 %v3524_v4  ;;  %2906 = vmatpush3.xpose.msk.msra.mxu1 %vm187_vm2, %v167_v20 }
  0x30   : > { %2907 = vmatprep.subr.mxu1 %v3524_v4 }
  0x32   : > { %2718 = vmatmul.mubr.msk.f32.gmra.mxu0 %vm187_vm2, %v167_v20 }
  0x33   : > { %361 = vmatprep.mubr.f32.mxu0 %v3524_v4  ;;  %2908 = vmatpush3.xpose.msk.msra.mxu1 %vm187_vm2, %v165_v18 }
  0x34   : > { %2909 = vmatprep.subr.mxu1 %v3524_v4 }
  0x36   : > { %2719 = vmatmul.mubr.msk.f32.gmra.mxu0 %vm187_vm2, %v169_v19 }
  0x37   : > { %367 = vmatprep.mubr.f32.mxu0 %v3524_v4  ;;  %2910 = vmatpush3.xpose.msk.msra.mxu1 %vm187_vm2, %v163_v16 }
  0x38   : > { %2911 = vmatprep.subr.mxu1 %v3524_v4 }
  0x3a   : > { %2720 = vmatmul.mubr.msk.f32.gmra.mxu0 %vm187_vm2, %v171_v17 }
  0x3b   : > { %373 = vmatprep.mubr.f32.mxu0 %v3524_v4  ;;  %2912 = vmatpush3.xpose.msk.msra.mxu1 %vm187_vm2, %v161_v14 }
  0x3c   : > { %2913 = vmatprep.subr.mxu1 %v3524_v4 }
  0x3e   : > { %2721 = vmatmul.mubr.msk.f32.gmra.mxu0 %vm187_vm2, %v173_v15 }
  0x3f   : > { %379 = vmatprep.mubr.f32.mxu0 %v3524_v4  ;;  %2914 = vmatpush3.xpose.msk.msra.mxu1 %vm187_vm2, %v159_v12  ;;  %v1593_v12 = vsub.s32 2, %v3839_v0 }
  0x40   : > { %2915 = vmatprep.subr.mxu1 %v3524_v4 }
  0x42   : > { %2722 = vmatmul.mubr.msk.f32.gmra.mxu0 %vm187_vm2, %v175_v13 }
  0x43   : > { %385 = vmatprep.mubr.f32.mxu0 %v3524_v4  ;;  %2916 = vmatpush3.xpose.msk.msra.mxu1 %vm187_vm2, %v157_v10 }
  0x44   : > { %2917 = vmatprep.subr.mxu1 %v3524_v4 }
  0x46   : > { %2723 = vmatmul.mubr.msk.f32.gmra.mxu0 %vm187_vm2, %v177_v11 }
  0x47   : > { %391 = vmatprep.mubr.f32.mxu0 %v3524_v4  ;;  %2918 = vmatpush3.xpose.msk.msra.mxu1 %vm187_vm2, %v3595_v8 }
  0x48   : > { %2919 = vmatprep.subr.mxu1 %v3524_v4 }
  0x4a   : > { %2724 = vmatmul.mubr.msk.f32.gmra.mxu0 %vm187_vm2, %v179_v9 }
  0x4b   : > { %397 = vmatprep.mubr.f32.mxu0 %v3524_v4  ;;  %2920 = vmatpush3.xpose.msk.msra.mxu1 %vm187_vm2, %v3586_v6 }
  0x4c   : > { %2921 = vmatprep.subr.mxu1 %v3524_v4 }
  0x4e   : > { %2725 = vmatmul.mubr.msk.f32.gmra.mxu0 %vm187_vm2, %v3591_v7 }
  0x4f   : > { %2922 = vmatpush3.xpose.msk.msra.mxu1 %vm187_vm2, %v3580_v5  ;;  %v899_v5 = vsub.s32 1, %v3839_v0 }
  0x52   : > { %2924 = vmatmul.mubr.msk.f32.vlgmr.msra.gmra.mxu1 %vm187_vm2, %v186_v21  ;;  %v3875_v21 = vld [vmem:[%s3577_s23] sm:$0xff] }
  0xd2   : > { %v3679_v24 = vpop.f32.mrf.mxu0 }
  0xd3   : > { %5252 = vst [vmem:[#allocation2_spill] sm:$0xff] %v3679_v24 }
  0xd4   : > { %v311_v25 = vpop.f32.mrf.mxu0 }
  0xd5   : > { %834 = vperm.xlu1 %3200, %v311_v25   ;;  %479 = vperm.xlu0 %3199, %v311_v25  }
  0xd6   : > { %v3681_v26 = vpop.f32.mrf.mxu0 }
  0xd7   : > { %5253 = vst [vmem:[#allocation3_spill] sm:$0xff] %v3681_v26 }
  0xd8   : > { %v317_v27 = vpop.f32.mrf.mxu0 }
  0xd9   : > { %3202 = vset.pattern.permute.xlu1 %v3528_v28  ;;  %3201 = vset.pattern.permute.xlu0 %v3529_v29 }
  0xda   : > { %2077 = vperm.xlu1 %3202, %v311_v25   ;;  %1528 = vperm.xlu0 %3201, %v311_v25   ;;  %v3685_v30 = vpop.f32.mrf.mxu0 }
  0xdb   : > { %5254 = vst [vmem:[#allocation4_spill] sm:$0xff] %v3685_v30 }
  0xdc   : > { %v323_v31 = vpop.f32.mrf.mxu0 }
  0xde   : > { %3205 = vset.pattern.permute.xlu1 %v3529_v29  ;;  %3203 = vset.pattern.permute.xlu0 %v3527_v23  ;;  %v3689_v32 = vpop.f32.mrf.mxu0 }
  0xdf   : > { %5255 = vst [vmem:[#allocation5_spill] sm:$0xff] %v3689_v32  ;;  %1532 = vperm.xlu1 %3205, %v317_v27   ;;  %484 = vperm.xlu0 %3203, %v317_v27  }
  0xe0   : > { %v329_v33 = vpop.f32.mrf.mxu0 }
  0xe2   : > { %v3691_v34 = vpop.f32.mrf.mxu0 }
  0xe3   : > { %5256 = vst [vmem:[#allocation6_spill] sm:$0xff] %v3691_v34  ;;  %3207 = vset.pattern.permute.xlu1 %v3527_v23  ;;  %3204 = vset.pattern.permute.xlu0 %v3526_v22 }
  0xe4   : > { %838 = vperm.xlu0 %3204, %v317_v27   ;;  %489 = vperm.xlu1 %3207, %v323_v31   ;;  %v335_v35 = vpop.f32.mrf.mxu0 }
  0xe6   : > { %v3695_v36 = vpop.f32.mrf.mxu0 }
  0xe7   : > { %5257 = vst [vmem:[#allocation7_spill] sm:$0xff] %v3695_v36 }
  0xe8   : > { %3206 = vset.pattern.permute.xlu0 %v3528_v28  ;;  %3208 = vset.pattern.permute.xlu1 %v3526_v22  ;;  %v341_v37 = vpop.f32.mrf.mxu0 }
  0xe9   : > { %2081 = vperm.xlu0 %3206, %v317_v27   ;;  %842 = vperm.xlu1 %3208, %v323_v31  }
  0xea   : > { %v3699_v38 = vpop.f32.mrf.mxu0 }
  0xeb   : > { %5258 = vst [vmem:[#allocation8_spill] sm:$0xff] %v3699_v38 }
  0xec   : > { %v347_v39 = vpop.f32.mrf.mxu0 }
  0xed   : > { %2085 = vperm.xlu0 %3206, %v323_v31   ;;  %3209 = vset.pattern.permute.xlu1 %v3529_v29 }
  0xee   : > { %1536 = vperm.xlu1 %3209, %v323_v31   ;;  %v3702_v40 = vpop.f32.mrf.mxu0 }
  0xef   : > { %5259 = vst [vmem:[#allocation9_spill] sm:$0xff] %v3702_v40 }
  0xf0   : > { %v3704_v41 = vpop.f32.mrf.mxu0 }
  0xf1   : > { %3212 = vset.pattern.permute.xlu0 %v3529_v29 }
  0xf2   : > { %3210 = vset.pattern.permute.xlu1 %v3527_v23  ;;  %1540 = vperm.xlu0 %3212, %v329_v33   ;;  %v3708_v42 = vpop.f32.mrf.mxu0 }
  0xf3   : > { %5260 = vst [vmem:[#allocation10_spill] sm:$0xff] %v3708_v42  ;;  %494 = vperm.xlu1 %3210, %v329_v33  }
  0xf4   : > { %v3710_v43 = vpop.f32.mrf.mxu0 }
  0xf6   : > { %3213 = vset.pattern.permute.xlu0 %v3528_v28  ;;  %v3713_v44 = vpop.f32.mrf.mxu0 }
  0xf7   : > { %5261 = vst [vmem:[#allocation11_spill] sm:$0xff] %v3713_v44  ;;  %2089 = vperm.xlu0 %3213, %v329_v33   ;;  %3211 = vset.pattern.permute.xlu1 %v3526_v22 }
  0xf8   : > { %846 = vperm.xlu1 %3211, %v329_v33   ;;  %v3716_v45 = vpop.f32.mrf.mxu0 }
  0xfa   : > { %v3718_v46 = vpop.f32.mrf.mxu0 }
  0xfb   : > { %5262 = vst [vmem:[#allocation12_spill] sm:$0xff] %v3718_v46  ;;  %3214 = vset.pattern.permute.xlu0 %v3527_v23 }
  0xfc   : > { %850 = vperm.xlu1 %3211, %v335_v35   ;;  %499 = vperm.xlu0 %3214, %v335_v35   ;;  %v3721_v47 = vpop.f32.mrf.mxu0 }
  0xfe   : > { %v3723_v48 = vpop.f32.mrf.mxu0 }
  0xff   : > { %5263 = vst [vmem:[#allocation13_spill] sm:$0xff] %v3723_v48 }
 0x100   : > { %3215 = vset.pattern.permute.xlu1 %v3529_v29  ;;  %3216 = vset.pattern.permute.xlu0 %v3528_v28  ;;  %v3727_v49 = vpop.f32.mrf.mxu0 }
 0x101   : > { %1544 = vperm.xlu1 %3215, %v335_v35   ;;  %2093 = vperm.xlu0 %3216, %v335_v35  }
 0x102   : > { %v3729_v50 = vpop.f32.mrf.mxu0 }
 0x104   : > { %v3731_v51 = vpop.f32.mrf.mxu0 }
 0x105   : > { %3217 = vset.pattern.permute.xlu1 %v3527_v23  ;;  %3219 = vset.pattern.permute.xlu0 %v3529_v29 }
 0x106   : > { %1548 = vperm.xlu0 %3219, %v341_v37   ;;  %504 = vperm.xlu1 %3217, %v341_v37   ;;  %v3735_v52 = vpop.f32.mrf.mxu0 }
 0x108   : > { %v3737_v53 = vpop.f32.mrf.mxu0 }
 0x10a   : > { %3220 = vset.pattern.permute.xlu0 %v3528_v28  ;;  %3218 = vset.pattern.permute.xlu1 %v3526_v22  ;;  %v3741_v54 = vpop.f32.mrf.mxu0 }
 0x10b   : > { %2097 = vperm.xlu0 %3220, %v341_v37   ;;  %854 = vperm.xlu1 %3218, %v341_v37  }
 0x10c   : > { %v3743_v55 = vpop.f32.mrf.mxu0 }
 0x10e   : > { %v3745_v56 = vpop.f32.mrf.mxu0 }
 0x10f   : > { %3221 = vset.pattern.permute.xlu0 %v3527_v23  ;;  %858 = vperm.xlu1 %3218, %v347_v39  }
 0x110   : > { %2982 = vmatprep.subr.mxu1 %v3745_v56  ;;  %509 = vperm.xlu0 %3221, %v347_v39  }
 0x111   : > { %2983 = vmatpush3.msra.mxu1 %v3745_v56 }
 0x112   : > { %2984 = vmatprep.subr.mxu1 %v3741_v54  ;;  %v3757_v57 = vpop.f32.mrf.mxu1 }
 0x113   : > { %2985 = vmatpush3.msra.mxu1 %v3741_v54  ;;  %3222 = vset.pattern.permute.xlu1 %v3529_v29  ;;  %v3848_v4 = vrot.slane %v3757_v57, %v559_v3  ;;  %v3855_v8 = vrot.slane %v3757_v57, %v899_v5  ;;  %v3868_v16 = vrot.slane %v3757_v57, %v1593_v12  ;;  %v3906_v3 = vld [vmem:[%s3577_s23 + $0x20] sm:$0xff] }
 0x114   : > { %2986 = vmatprep.subr.mxu1 %v3735_v52  ;;  %1552 = vperm.xlu1 %3222, %v347_v39   ;;  %v2925_v58 = vpop.f32.mrf.mxu1 }
 0x115   : > { %3223 = vset.pattern.permute.xlu0 %v3528_v28  ;;  %2987 = vmatpush3.msra.mxu1 %v3735_v52 }
 0x116   : > { %2101 = vperm.xlu0 %3223, %v347_v39   ;;  %2988 = vmatprep.subr.mxu1 %v3729_v50 }
 0x117   : > { %2989 = vmatpush3.msra.mxu1 %v3729_v50 }
 0x118   : > { %2990 = vmatprep.subr.mxu1 %v3723_v48  ;;  %3224 = vset.pattern.permute.xlu1 %v3527_v23 }
 0x119   : > { %2991 = vmatpush3.msra.mxu1 %v3723_v48  ;;  %514 = vperm.xlu1 %3224, %v3704_v41  }
 0x11a   : > { %3226 = vset.pattern.permute.xlu0 %v3529_v29  ;;  %2992 = vmatprep.subr.mxu1 %v3718_v46 }
 0x11b   : > { %1556 = vperm.xlu0 %3226, %v3704_v41   ;;  %2993 = vmatpush3.msra.mxu1 %v3718_v46 }
 0x11c   : > { %2994 = vmatprep.subr.mxu1 %v3713_v44 }
 0x11d   : > { %2995 = vmatpush3.msra.mxu1 %v3713_v44  ;;  %3225 = vset.pattern.permute.xlu1 %v3526_v22 }
 0x11e   : > { %2996 = vmatprep.subr.mxu1 %v3708_v42  ;;  %862 = vperm.xlu1 %3225, %v3704_v41  }
 0x11f   : > { %3228 = vset.pattern.permute.xlu0 %v3527_v23  ;;  %2997 = vmatpush3.msra.mxu1 %v3708_v42 }
 0x120   : > { %519 = vperm.xlu0 %3228, %v3710_v43   ;;  %2998 = vmatprep.subr.mxu1 %v3702_v40 }
 0x121   : > { %2999 = vmatpush3.msra.mxu1 %v3702_v40 }
 0x122   : > { %3000 = vmatprep.subr.mxu1 %v3699_v38  ;;  %3227 = vset.pattern.permute.xlu1 %v3528_v28 }
 0x123   : > { %3001 = vmatpush3.msra.mxu1 %v3699_v38  ;;  %2105 = vperm.xlu1 %3227, %v3704_v41  }
 0x124   : > { %3234 = vset.pattern.permute.xlu0 %v3529_v29  ;;  %3002 = vmatprep.subr.mxu1 %v3695_v36 }
 0x125   : > { %1564 = vperm.xlu0 %3234, %v3716_v45   ;;  %3003 = vmatpush3.msra.mxu1 %v3695_v36 }
 0x126   : > { %3004 = vmatprep.subr.mxu1 %v3691_v34 }
 0x127   : > { %3005 = vmatpush3.msra.mxu1 %v3691_v34  ;;  %3229 = vset.pattern.permute.xlu1 %v3526_v22 }
 0x128   : > { %3006 = vmatprep.subr.mxu1 %v3689_v32  ;;  %866 = vperm.xlu1 %3229, %v3710_v43  }
 0x129   : > { %3235 = vset.pattern.permute.xlu0 %v3528_v28  ;;  %3007 = vmatpush3.msra.mxu1 %v3689_v32 }
 0x12a   : > { %2113 = vperm.xlu0 %3235, %v3716_v45   ;;  %3008 = vmatprep.subr.mxu1 %v3685_v30 }
 0x12b   : > { %3009 = vmatpush3.msra.mxu1 %v3685_v30 }
 0x12c   : > { %3010 = vmatprep.subr.mxu1 %v3681_v26  ;;  %3230 = vset.pattern.permute.xlu1 %v3529_v29 }
 0x12d   : > { %3011 = vmatpush3.msra.mxu1 %v3681_v26  ;;  %1560 = vperm.xlu1 %3230, %v3710_v43  }
 0x12e   : > { %3236 = vset.pattern.permute.xlu0 %v3527_v23  ;;  %3012 = vmatprep.subr.mxu1 %v3679_v24 }
 0x12f   : > { %529 = vperm.xlu0 %3236, %v3721_v47   ;;  %3013 = vmatpush3.msra.mxu1 %v3679_v24 }
 0x131   : > { %3231 = vset.pattern.permute.xlu1 %v3528_v28 }
 0x132   : > { %2109 = vperm.xlu1 %3231, %v3710_v43  }
 0x133   : > { %3237 = vset.pattern.permute.xlu0 %v3526_v22 }
 0x134   : > { %874 = vperm.xlu0 %3237, %v3721_v47  }
 0x136   : > { %3232 = vset.pattern.permute.xlu1 %v3527_v23 }
 0x137   : > { %524 = vperm.xlu1 %3232, %v3716_v45  }
 0x138   : > { %3242 = vset.pattern.permute.xlu0 %v3529_v29 }
 0x139   : > { %1572 = vperm.xlu0 %3242, %v3727_v49  }
 0x13b   : > { %3233 = vset.pattern.permute.xlu1 %v3526_v22 }
 0x13c   : > { %870 = vperm.xlu1 %3233, %v3716_v45  }
 0x13d   : > { %3244 = vset.pattern.permute.xlu0 %v3527_v23 }
 0x13e   : > { %539 = vperm.xlu0 %3244, %v3731_v51  }
 0x140   : > { %3238 = vset.pattern.permute.xlu1 %v3529_v29 }
 0x141   : > { %1568 = vperm.xlu1 %3238, %v3721_v47  }
 0x142   : > { %3245 = vset.pattern.permute.xlu0 %v3526_v22 }
 0x143   : > { %882 = vperm.xlu0 %3245, %v3731_v51  }
 0x145   : > { %3239 = vset.pattern.permute.xlu1 %v3528_v28 }
 0x146   : > { %2117 = vperm.xlu1 %3239, %v3721_v47  }
 0x147   : > { %3252 = vset.pattern.permute.xlu0 %v3527_v23 }
 0x148   : > { %549 = vperm.xlu0 %3252, %v3743_v55  }
 0x14a   : > { %3240 = vset.pattern.permute.xlu1 %v3527_v23 }
 0x14b   : > { %534 = vperm.xlu1 %3240, %v3727_v49  }
 0x14c   : > { %3253 = vset.pattern.permute.xlu0 %v3526_v22 }
 0x14d   : > { %890 = vperm.xlu0 %3253, %v3743_v55  }
 0x14f   : > { %3241 = vset.pattern.permute.xlu1 %v3526_v22 }
 0x150   : > { %v835_v59 = vpop.permute.xlu1 %834  ;;  %v480_v60 = vpop.permute.xlu0 %479  ;;  %878 = vperm.xlu1 %3241, %v3727_v49  }
 0x151   : > { %3254 = vset.pattern.permute.xlu0 %v3529_v29  ;;  %v561_v9 = vadd.f32 %v3848_v4, %v480_v60  ;;  %v901_v13 = vadd.f32 %v3855_v8, %v835_v59 }
 0x152   : > { %1584 = vperm.xlu0 %3254, %v3743_v55  }
 0x153   : > { %v577_v14 = vmul.f32 0.2, %v561_v9  ;;  %v917_v18 = vmul.f32 0.2, %v901_v13 }
 0x154   : > { %3243 = vset.pattern.permute.xlu1 %v3528_v28 }
 0x155   : > { %v3833_v62 = vpop.permute.xlu1 %2077  ;;  %v3835_v63 = vpop.permute.xlu0 %1528  ;;  %2121 = vperm.xlu1 %3243, %v3727_v49   ;;  %v593_v20 = vmax.f32 %v561_v9, %v577_v14  ;;  %v933_v37 = vmax.f32 %v901_v13, %v917_v18 }
 0x156   : > { %3259 = vset.pattern.permute.xlu0 %v3528_v28  ;;  %v401_v9 = vpop.f32.mrf.mxu0 }
 0x157   : > { %v3881_v35 = vadd.f32 %v593_v20, %v3875_v21  ;;  %v3892_v47 = vadd.f32 %v933_v37, %v3875_v21 }
 0x159   : > { %3246 = vset.pattern.permute.xlu1 %v3529_v29 }
 0x15a   : > { %v1533_v1 = vpop.permute.xlu1 %1532  ;;  %v3842_v2 = vpop.permute.xlu0 %484  ;;  %1576 = vperm.xlu1 %3246, %v3731_v51  }
 0x15b   : > { %v1596_v19 = vadd.f32 %v3868_v16, %v1533_v1 }
 0x15d   : > { %v1612_v31 = vmul.f32 0.2, %v1596_v19 }
 0x15e   : > { %3247 = vset.pattern.permute.xlu1 %v3528_v28 }
 0x15f   : > { %v3851_v6 = vpop.permute.xlu0 %838  ;;  %v490_v7 = vpop.permute.xlu1 %489  ;;  %2125 = vperm.xlu1 %3247, %v3731_v51   ;;  %v1628_v49 = vmax.f32 %v1596_v19, %v1612_v31  ;;  %v3895_v51 = vld [vmem:[%s3577_s23 + $0x10] sm:$0xff] }
 0x160   : > { %v563_v33 = vadd.f32 %v3848_v4, %v490_v7 }
 0x161   : > { %v3903_v1 = vadd.f32 %v1628_v49, %v3895_v51 }
 0x162   : > { %v579_v41 = vmul.f32 0.2, %v563_v33 }
 0x163   : > { %3248 = vset.pattern.permute.xlu1 %v3527_v23  ;;  %5264 = vst [vmem:[#allocation14_spill] sm:$0xff] %v3903_v1 }
 0x164   : > { %v3859_v10 = vpop.permute.xlu0 %2081  ;;  %v843_v11 = vpop.permute.xlu1 %842  ;;  %544 = vperm.xlu1 %3248, %v3737_v53  }
 0x165   : > { %v903_v43 = vadd.f32 %v3855_v8, %v843_v11 }
 0x167   : > { %v919_v58 = vmul.f32 0.2, %v903_v43 }
 0x168   : > { %v3864_v15 = vpop.permute.xlu0 %2085  ;;  %3249 = vset.pattern.permute.xlu1 %v3526_v22 }
 0x169   : > { %v3870_v17 = vpop.permute.xlu1 %1536  ;;  %886 = vperm.xlu1 %3249, %v3737_v53   ;;  %v935_v12 = vmax.f32 %v903_v43, %v919_v58 }
 0x16b   : > { %v3921_v19 = vadd.f32 %v935_v12, %v3906_v3 }
 0x16d   : > { %v1541_v25 = vpop.permute.xlu0 %1540  ;;  %3250 = vset.pattern.permute.xlu1 %v3529_v29 }
 0x16e   : > { %v495_v27 = vpop.permute.xlu1 %494  ;;  %1580 = vperm.xlu1 %3250, %v3737_v53   ;;  %v1598_v5 = vadd.f32 %v3868_v16, %v1541_v25 }
 0x16f   : > { %v564_v59 = vadd.f32 %v3848_v4, %v495_v27 }
 0x170   : > { %v1614_v14 = vmul.f32 0.2, %v1598_v5 }
 0x171   : > { %625 = vmax.xlane.f32.xlu0 %v3881_v35  ;;  %v580_v7 = vmul.f32 0.2, %v564_v59 }
 0x172   : > { %v3884_v39 = vpop.permute.xlu0 %2089  ;;  %3251 = vset.pattern.permute.xlu1 %v3528_v28 }
 0x173   : > { %v3888_v45 = vpop.permute.xlu1 %846  ;;  %2129 = vperm.xlu1 %3251, %v3737_v53   ;;  %v595_v53 = vmax.f32 %v563_v33, %v579_v41  ;;  %v596_v20 = vmax.f32 %v564_v59, %v580_v7  ;;  %v1630_v41 = vmax.f32 %v1598_v5, %v1614_v14 }
 0x175   : > { %965 = vmax.xlane.f32.xlu0 %v3892_v47  ;;  %v3912_v11 = vadd.f32 %v595_v53, %v3906_v3  ;;  %v3941_v53 = vld [vmem:[%s3577_s23 + $0x40] sm:$0xff] }
 0x177   : > { %v851_v60 = vpop.permute.xlu1 %850  ;;  %v3899_v61 = vpop.permute.xlu0 %499  ;;  %2133 = vperm.xlu1 %3251, %v3743_v55  }
 0x178   : > { %v905_v18 = vadd.f32 %v3855_v8, %v851_v60 }
 0x179   : > { %1661 = vmax.xlane.f32.xlu0 %v3903_v1  ;;  %v164_v1 = vld [vmem:[%s3577_s23 + $0x70] sm:$0xff] }
 0x17a   : > { %v921_v31 = vmul.f32 0.2, %v905_v18 }
 0x17b   : > { %3255 = vset.pattern.permute.xlu1 %v3527_v23  ;;  %v3925_v23 = vld [vmem:[%s3577_s23 + $0x30] sm:$0xff] }
 0x17c   : > { %v3914_v55 = vpop.permute.xlu1 %1544  ;;  %v3916_v13 = vpop.permute.xlu0 %2093  ;;  %554 = vperm.xlu1 %3255, %v401_v9   ;;  %v3930_v37 = vadd.f32 %v596_v20, %v3925_v23  ;;  %v3938_v59 = vadd.f32 %v1630_v41, %v3925_v23  ;;  %v937_v60 = vmax.f32 %v905_v18, %v921_v31  ;;  %v2142_v18 = vsub.s32 3, %v3839_v0 }
 0x17d   : > { %629 = vmax.xlane.f32.xlu0 %v3912_v11 }
 0x17e   : > { %5265 = vst [vmem:[#allocation15_spill] sm:$0xff] %v3938_v59  ;;  %v3951_v14 = vadd.f32 %v937_v60, %v3941_v53 }
 0x180   : > { %3256 = vset.pattern.permute.xlu1 %v3526_v22 }
 0x181   : > { %969 = vmax.xlane.f32.xlu0 %v3921_v19  ;;  %v1549_v25 = vpop.permute.xlu0 %1548  ;;  %v505_v27 = vpop.permute.xlu1 %504  ;;  %894 = vperm.xlu1 %3256, %v401_v9  }
 0x182   : > { %v566_v33 = vadd.f32 %v3848_v4, %v505_v27  ;;  %v3955_v27 = vld [vmem:[%s3577_s23 + $0x50] sm:$0xff] }
 0x184   : > { %v582_v49 = vmul.f32 0.2, %v566_v33 }
 0x185   : > { %631 = vmax.xlane.f32.xlu0 %v3930_v37  ;;  %3257 = vset.pattern.permute.xlu1 %v3529_v29  ;;  %v1600_v29 = vadd.f32 %v3868_v16, %v1549_v25 }
 0x186   : > { %v3934_v22 = vpop.permute.xlu0 %2097  ;;  %v855_v43 = vpop.permute.xlu1 %854  ;;  %1588 = vperm.xlu1 %3257, %v401_v9   ;;  %v598_v20 = vmax.f32 %v566_v33, %v582_v49 }
 0x187   : > { %v906_v58 = vadd.f32 %v3855_v8, %v855_v43  ;;  %v1616_v31 = vmul.f32 0.2, %v1600_v29  ;;  %v3964_v43 = vrot.slane %v3757_v57, %v2142_v18 }
 0x189   : > { %1665 = vmax.xlane.f32.xlu0 %v3938_v59  ;;  %v922_v7 = vmul.f32 0.2, %v906_v58  ;;  %v1632_v49 = vmax.f32 %v1600_v29, %v1616_v31  ;;  %v3979_v59 = vld [vmem:[%s3577_s23 + $0x60] sm:$0xff]  ;;  %v2147_v44 = vadd.f32 %v3964_v43, %v3884_v39 }
 0x18a   : > { %v3944_v5 = vpop.permute.xlu1 %858  ;;  %3258 = vset.pattern.permute.xlu1 %v3528_v28  ;;  %v3961_v28 = vadd.f32 %v598_v20, %v3955_v27 }
 0x18b   : > { %v3948_v12 = vpop.permute.xlu0 %509  ;;  %2137 = vperm.xlu1 %3258, %v401_v9   ;;  %v938_v25 = vmax.f32 %v906_v58, %v922_v7  ;;  %v3974_v57 = vadd.f32 %v1632_v49, %v3955_v27  ;;  %v2163_v39 = vmul.f32 0.2, %v2147_v44 }
 0x18d   : > { %973 = vmax.xlane.f32.xlu0 %v3951_v14  ;;  %v3969_v33 = vadd.f32 %v938_v25, %v3955_v27  ;;  %5266 = vst [vmem:[#allocation16_spill] sm:$0xff] %v3974_v57 }
 0x18f   : > { %v3958_v41 = vpop.permute.xlu1 %1552 }
 0x191   : > { %v2102_v9 = vpop.permute.xlu0 %2101  ;;  %635 = vmax.xlane.f32.xlu0 %v3961_v28 }
 0x192   : > { %v2150_v0 = vadd.f32 %v3964_v43, %v2102_v9 }
 0x194   : > { %v2166_v60 = vmul.f32 0.2, %v2150_v0  ;;  %v515_v24 = vpop.permute.xlu1 %514 }
 0x195   : > { %v568_v20 = vadd.f32 %v3848_v4, %v515_v24  ;;  %975 = vmax.xlane.f32.xlu0 %v3969_v33 }
 0x196   : > { %v2182_v7 = vmax.f32 %v2150_v0, %v2166_v60  ;;  %v1557_v18 = vpop.permute.xlu0 %1556 }
 0x197   : > { %v584_v58 = vmul.f32 0.2, %v568_v20  ;;  %v1602_v29 = vadd.f32 %v3868_v16, %v1557_v18 }
 0x198   : > { %v3983_v31 = vadd.f32 %v2182_v7, %v3979_v59 }
 0x199   : > { %1669 = vmax.xlane.f32.xlu0 %v3974_v57  ;;  %v863_v9 = vpop.permute.xlu1 %862  ;;  %v600_v24 = vmax.f32 %v568_v20, %v584_v58  ;;  %v1618_v0 = vmul.f32 0.2, %v1602_v29 }
 0x19a   : > { %v908_v25 = vadd.f32 %v3855_v8, %v863_v9  ;;  %5267 = vst [vmem:[#allocation17_spill] sm:$0xff] %v3983_v31  ;;  %v1595_v9 = vadd.f32 %v3868_v16, %v3835_v63 }
 0x19b   : > { %v3988_v57 = vadd.f32 %v600_v24, %v164_v1  ;;  %v1634_v58 = vmax.f32 %v1602_v29, %v1618_v0  ;;  %v4006_v36 = vpop.permute.xlu0 %519 }
 0x19c   : > { %v924_v32 = vmul.f32 0.2, %v908_v25  ;;  %v1611_v30 = vmul.f32 0.2, %v1595_v9 }
 0x19d   : > { %2220 = vmax.xlane.f32.xlu0 %v3983_v31  ;;  %v2144_v31 = vadd.f32 %v3964_v43, %v3833_v62  ;;  %v4000_v24 = vadd.f32 %v1634_v58, %v164_v1  ;;  %v902_v62 = vadd.f32 %v3855_v8, %v3851_v6 }
 0x19e   : > { %v2106_v49 = vpop.permute.xlu1 %2105  ;;  %v940_v26 = vmax.f32 %v908_v25, %v924_v32 }
 0x19f   : > { %v2151_v60 = vadd.f32 %v3964_v43, %v2106_v49  ;;  %5268 = vst [vmem:[#allocation18_spill] sm:$0xff] %v4000_v24  ;;  %v2160_v63 = vmul.f32 0.2, %v2144_v31  ;;  %v562_v49 = vadd.f32 %v3848_v4, %v3842_v2 }
 0x1a0   : > { %v3995_v20 = vadd.f32 %v940_v26, %v164_v1  ;;  %v1627_v26 = vmax.f32 %v1595_v9, %v1611_v30  ;;  %v1565_v34 = vpop.permute.xlu0 %1564  ;;  %v918_v30 = vmul.f32 0.2, %v902_v62  ;;  %v2145_v9 = vadd.f32 %v3964_v43, %v3859_v10 }
 0x1a1   : > { %639 = vmax.xlane.f32.xlu0 %v3988_v57  ;;  %v2167_v18 = vmul.f32 0.2, %v2151_v60  ;;  %v578_v0 = vmul.f32 0.2, %v562_v49  ;;  %v2176_v58 = vmax.f32 %v2144_v31, %v2160_v63  ;;  %v4027_v31 = vld [vmem:[%s3577_s23 + $0x80] sm:$0xff]  ;;  %v1597_v10 = vadd.f32 %v3868_v16, %v3870_v17 }
 0x1a2   : > { %v2146_v17 = vadd.f32 %v3964_v43, %v3864_v15  ;;  %v904_v15 = vadd.f32 %v3855_v8, %v3888_v45 }
 0x1a3   : > { %v3993_v7 = vpop.permute.xlu1 %866  ;;  %v2183_v32 = vmax.f32 %v2151_v60, %v2167_v18  ;;  %v4015_v18 = vadd.f32 %v1627_v26, %v3875_v21  ;;  %v4022_v6 = vadd.f32 %v2176_v58, %v3875_v21 }
 0x1a5   : > { %979 = vmax.xlane.f32.xlu0 %v3995_v20  ;;  %v4009_v29 = vadd.f32 %v2183_v32, %v164_v1  ;;  %5270 = vst [vmem:[#allocation20_spill] sm:$0xff] %v4015_v18  ;;  %5271 = vst [vmem:[#allocation21_spill] sm:$0xff] %v4022_v6  ;;  %v594_v32 = vmax.f32 %v562_v49, %v578_v0  ;;  %v2114_v21 = vpop.permute.xlu0 %2113 }
 0x1a7   : > { %5269 = vst [vmem:[#allocation19_spill] sm:$0xff] %v4009_v29  ;;  %v4035_v49 = vadd.f32 %v594_v32, %v3895_v51 }
 0x1a8   : > { %v4002_v25 = vpop.permute.xlu1 %1560 }
 0x1a9   : > { %1673 = vmax.xlane.f32.xlu0 %v4000_v24 }
 0x1aa   : > { %v4050_v38 = vpop.permute.xlu0 %529 }
 0x1ad   : > { %2222 = vmax.xlane.f32.xlu0 %v4009_v29  ;;  %v2110_v60 = vpop.permute.xlu1 %2109 }
 0x1ae   : > { %v2152_v2 = vadd.f32 %v3964_v43, %v2110_v60  ;;  %v934_v60 = vmax.f32 %v902_v62, %v918_v30  ;;  %v168_v30 = vld [vmem:[%s3577_s23 + $0x90] sm:$0xff] }
 0x1af   : > { %1659 = vmax.xlane.f32.xlu1 %v4015_v18  ;;  %v2161_v18 = vmul.f32 0.2, %v2145_v9 }
 0x1b0   : > { %v2168_v1 = vmul.f32 0.2, %v2152_v2  ;;  %v4042_v62 = vadd.f32 %v934_v60, %v3895_v51 }
 0x1b2   : > { %v525_v29 = vpop.permute.xlu1 %524  ;;  %v2184_v24 = vmax.f32 %v2152_v2, %v2168_v1  ;;  %v1613_v1 = vmul.f32 0.2, %v1597_v10 }
 0x1b3   : > { %v570_v26 = vadd.f32 %v3848_v4, %v525_v29  ;;  %2208 = vmax.xlane.f32.xlu1 %v4022_v6  ;;  %v1604_v29 = vadd.f32 %v3868_v16, %v1565_v34  ;;  %v2177_v6 = vmax.f32 %v2145_v9, %v2161_v18 }
 0x1b4   : > { %v4030_v63 = vadd.f32 %v2184_v24, %v4027_v31  ;;  %v1629_v18 = vmax.f32 %v1597_v10, %v1613_v1  ;;  %v565_v1 = vadd.f32 %v3848_v4, %v3899_v61 }
 0x1b5   : > { %v586_v58 = vmul.f32 0.2, %v570_v26  ;;  %v1620_v34 = vmul.f32 0.2, %v1604_v29 }
 0x1b6   : > { %5272 = vst [vmem:[#allocation22_spill] sm:$0xff] %v4030_v63  ;;  %2224 = vmax.xlane.f32.xlu0 %v4030_v63  ;;  %v2153_v63 = vadd.f32 %v3964_v43, %v2114_v21  ;;  %v4070_v45 = vadd.f32 %v1629_v18, %v3906_v3  ;;  %v581_v61 = vmul.f32 0.2, %v565_v1 }
 0x1b7   : > { %v871_v0 = vpop.permute.xlu1 %870  ;;  %627 = vmax.xlane.f32.xlu1 %v4035_v49  ;;  %v602_v2 = vmax.f32 %v570_v26, %v586_v58  ;;  %v2162_v58 = vmul.f32 0.2, %v2146_v17 }
 0x1b8   : > { %v910_v24 = vadd.f32 %v3855_v8, %v871_v0  ;;  %v4059_v0 = vadd.f32 %v2177_v6, %v3895_v51  ;;  %v2169_v9 = vmul.f32 0.2, %v2153_v63  ;;  %5274 = vst [vmem:[#allocation24_spill] sm:$0xff] %v4070_v45 }
 0x1b9   : > { %v4047_v32 = vadd.f32 %v602_v2, %v168_v30  ;;  %v1636_v2 = vmax.f32 %v1604_v29, %v1620_v34  ;;  %v2178_v51 = vmax.f32 %v2146_v17, %v2162_v58 }
 0x1ba   : > { %v926_v40 = vmul.f32 0.2, %v910_v24  ;;  %5273 = vst [vmem:[#allocation23_spill] sm:$0xff] %v4059_v0  ;;  %v2185_v29 = vmax.f32 %v2153_v63, %v2169_v9  ;;  %v1599_v9 = vadd.f32 %v3868_v16, %v3914_v55  ;;  %v172_v55 = vld [vmem:[%s3577_s23 + $0xb0] sm:$0xff] }
 0x1bb   : > { %967 = vmax.xlane.f32.xlu1 %v4042_v62  ;;  %643 = vmax.xlane.f32.xlu0 %v4047_v32  ;;  %v4073_v10 = vadd.f32 %v1636_v2, %v168_v30 }
 0x1bc   : > { %v4054_v26 = vpop.permute.xlu1 %1568  ;;  %v942_v60 = vmax.f32 %v910_v24, %v926_v40  ;;  %v920_v40 = vmul.f32 0.2, %v904_v15  ;;  %v4067_v24 = vpop.permute.xlu0 %874  ;;  %v4082_v58 = vadd.f32 %v2185_v29, %v168_v30 }
 0x1bd   : > { %5275 = vst [vmem:[#allocation25_spill] sm:$0xff] %v4073_v10 }
 0x1be   : > { %v4061_v21 = vadd.f32 %v942_v60, %v168_v30  ;;  %v4080_v60 = vadd.f32 %v2178_v51, %v3906_v3  ;;  %v936_v18 = vmax.f32 %v904_v15, %v920_v40  ;;  %5277 = vst [vmem:[#allocation27_spill] sm:$0xff] %v4082_v58  ;;  %v4093_v15 = vld [vmem:[%s3577_s23 + $0xa0] sm:$0xff]  ;;  %v2179_v30 = vmax.f32 %v2147_v44, %v2163_v39 }
 0x1bf   : > { %2210 = vmax.xlane.f32.xlu1 %v4059_v0 }
 0x1c0   : > { %983 = vmax.xlane.f32.xlu0 %v4061_v21  ;;  %5276 = vst [vmem:[#allocation26_spill] sm:$0xff] %v4080_v60  ;;  %v1573_v2 = vpop.permute.xlu0 %1572  ;;  %v4090_v3 = vadd.f32 %v936_v18, %v3925_v23  ;;  %v1615_v18 = vmul.f32 0.2, %v1599_v9  ;;  %v4106_v44 = vadd.f32 %v2179_v30, %v3925_v23 }
 0x1c1   : > { %v2118_v42 = vpop.permute.xlu1 %2117  ;;  %v1606_v40 = vadd.f32 %v3868_v16, %v1573_v2 }
 0x1c2   : > { %v2154_v6 = vadd.f32 %v3964_v43, %v2118_v42  ;;  %5279 = vst [vmem:[#allocation29_spill] sm:$0xff] %v4106_v44 }
 0x1c3   : > { %1663 = vmax.xlane.f32.xlu1 %v4070_v45 }
 0x1c4   : > { %v2170_v34 = vmul.f32 0.2, %v2154_v6  ;;  %1677 = vmax.xlane.f32.xlu0 %v4073_v10 }
 0x1c6   : > { %v535_v17 = vpop.permute.xlu1 %534  ;;  %v2186_v42 = vmax.f32 %v2154_v6, %v2170_v34 }
 0x1c7   : > { %v572_v63 = vadd.f32 %v3848_v4, %v535_v17  ;;  %2212 = vmax.xlane.f32.xlu1 %v4080_v60  ;;  %v597_v17 = vmax.f32 %v565_v1, %v581_v61  ;;  %v2148_v60 = vadd.f32 %v3964_v43, %v3916_v13  ;;  %v2149_v13 = vadd.f32 %v3964_v43, %v3934_v22 }
 0x1c8   : > { %2226 = vmax.xlane.f32.xlu0 %v4082_v58  ;;  %v4097_v51 = vadd.f32 %v2186_v42, %v4093_v15  ;;  %v1622_v42 = vmul.f32 0.2, %v1606_v40  ;;  %v1631_v61 = vmax.f32 %v1599_v9, %v1615_v18 }
 0x1c9   : > { %v588_v0 = vmul.f32 0.2, %v572_v63  ;;  %v2164_v1 = vmul.f32 0.2, %v2148_v60 }
 0x1ca   : > { %5278 = vst [vmem:[#allocation28_spill] sm:$0xff] %v4097_v51  ;;  %v1638_v30 = vmax.f32 %v1606_v40, %v1622_v42  ;;  %v4127_v22 = vadd.f32 %v1631_v61, %v3941_v53  ;;  %v907_v40 = vadd.f32 %v3855_v8, %v3944_v5  ;;  %v1601_v5 = vadd.f32 %v3868_v16, %v3958_v41  ;;  %v4148_v61 = vpop.permute.xlu0 %539 }
 0x1cb   : > { %v879_v6 = vpop.permute.xlu1 %878  ;;  %971 = vmax.xlane.f32.xlu1 %v4090_v3  ;;  %v604_v29 = vmax.f32 %v572_v63, %v588_v0  ;;  %v569_v41 = vadd.f32 %v3848_v4, %v4006_v36 }
 0x1cc   : > { %v912_v34 = vadd.f32 %v3855_v8, %v879_v6  ;;  %2228 = vmax.xlane.f32.xlu0 %v4097_v51  ;;  %v4113_v6 = vadd.f32 %v597_v17, %v3941_v53  ;;  %v567_v17 = vadd.f32 %v3848_v4, %v3948_v12  ;;  %5280 = vst [vmem:[#allocation30_spill] sm:$0xff] %v4127_v22 }
 0x1cd   : > { %v4108_v39 = vadd.f32 %v604_v29, %v172_v55  ;;  %v4129_v9 = vadd.f32 %v1638_v30, %v172_v55 }
 0x1ce   : > { %v928_v2 = vmul.f32 0.2, %v912_v34  ;;  %v583_v18 = vmul.f32 0.2, %v567_v17 }
 0x1cf   : > { %2214 = vmax.xlane.f32.xlu1 %v4106_v44  ;;  %5281 = vst [vmem:[#allocation31_spill] sm:$0xff] %v4129_v9 }
 0x1d0   : > { %v944_v0 = vmax.f32 %v912_v34, %v928_v2  ;;  %v2122_v63 = vpop.permute.xlu1 %2121  ;;  %647 = vmax.xlane.f32.xlu0 %v4108_v39  ;;  %v2180_v34 = vmax.f32 %v2148_v60, %v2164_v1  ;;  %v2165_v2 = vmul.f32 0.2, %v2149_v13  ;;  %v923_v1 = vmul.f32 0.2, %v907_v40 }
 0x1d1   : > { %v2155_v23 = vadd.f32 %v3964_v43, %v2122_v63 }
 0x1d2   : > { %v4118_v29 = vadd.f32 %v944_v0, %v172_v55  ;;  %v2181_v60 = vmax.f32 %v2149_v13, %v2165_v2  ;;  %v4136_v42 = vadd.f32 %v2180_v34, %v3941_v53  ;;  %v939_v34 = vmax.f32 %v907_v40, %v923_v1  ;;  %v4166_v40 = vld [vmem:[%s3577_s23 + $0xd0] sm:$0xff] }
 0x1d3   : > { %v2171_v51 = vmul.f32 0.2, %v2155_v23  ;;  %633 = vmax.xlane.f32.xlu1 %v4113_v6 }
 0x1d4   : > { %987 = vmax.xlane.f32.xlu0 %v4118_v29  ;;  %5282 = vst [vmem:[#allocation32_spill] sm:$0xff] %v4136_v42  ;;  %v4146_v53 = vadd.f32 %v2181_v60, %v3955_v27 }
 0x1d5   : > { %v4124_v44 = vpop.permute.xlu1 %1576  ;;  %v2187_v63 = vmax.f32 %v2155_v23, %v2171_v51  ;;  %v599_v23 = vmax.f32 %v567_v17, %v583_v18  ;;  %v1617_v17 = vmul.f32 0.2, %v1601_v5 }
 0x1d6   : > { %5284 = vst [vmem:[#allocation34_spill] sm:$0xff] %v4146_v53 }
 0x1d7   : > { %1667 = vmax.xlane.f32.xlu1 %v4127_v22  ;;  %v4138_v0 = vadd.f32 %v2187_v63, %v172_v55  ;;  %v4153_v63 = vld [vmem:[%s3577_s23 + $0xc0] sm:$0xff]  ;;  %v4158_v18 = vadd.f32 %v599_v23, %v3979_v59  ;;  %v1633_v36 = vmax.f32 %v1601_v5, %v1617_v17  ;;  %v585_v23 = vmul.f32 0.2, %v569_v41 }
 0x1d8   : > { %1681 = vmax.xlane.f32.xlu0 %v4129_v9  ;;  %v1605_v9 = vadd.f32 %v3868_v16, %v4054_v26 }
 0x1d9   : > { %5283 = vst [vmem:[#allocation33_spill] sm:$0xff] %v4138_v0 }
 0x1da   : > { %v2126_v12 = vpop.permute.xlu1 %2125 }
 0x1db   : > { %v2156_v51 = vadd.f32 %v3964_v43, %v2126_v12  ;;  %2216 = vmax.xlane.f32.xlu1 %v4136_v42  ;;  %v4168_v12 = vpop.permute.xlu0 %882 }
 0x1dc   : > { %2230 = vmax.xlane.f32.xlu0 %v4138_v0 }
 0x1dd   : > { %v2172_v13 = vmul.f32 0.2, %v2156_v51 }
 0x1df   : > { %v2188_v55 = vmax.f32 %v2156_v51, %v2172_v13  ;;  %v545_v30 = vpop.permute.xlu1 %544  ;;  %2218 = vmax.xlane.f32.xlu1 %v4146_v53  ;;  %v4171_v13 = vadd.f32 %v939_v34, %v3979_v59  ;;  %v601_v34 = vmax.f32 %v569_v41, %v585_v23 }
 0x1e0   : > { %v574_v2 = vadd.f32 %v3848_v4, %v545_v30 }
 0x1e1   : > { %v4161_v27 = vadd.f32 %v2188_v55, %v4153_v63  ;;  %v909_v55 = vadd.f32 %v3855_v8, %v3993_v7  ;;  %v4186_v7 = vadd.f32 %v1633_v36, %v3979_v59 }
 0x1e2   : > { %v590_v60 = vmul.f32 0.2, %v574_v2 }
 0x1e3   : > { %5285 = vst [vmem:[#allocation35_spill] sm:$0xff] %v4161_v27  ;;  %637 = vmax.xlane.f32.xlu1 %v4158_v18  ;;  %2232 = vmax.xlane.f32.xlu0 %v4161_v27  ;;  %5286 = vst [vmem:[#allocation36_spill] sm:$0xff] %v4186_v7 }
 0x1e4   : > { %v606_v51 = vmax.f32 %v574_v2, %v590_v60  ;;  %v887_v1 = vpop.permute.xlu1 %886  ;;  %v1603_v2 = vadd.f32 %v3868_v16, %v4002_v25  ;;  %v925_v60 = vmul.f32 0.2, %v909_v55  ;;  %v571_v25 = vadd.f32 %v3848_v4, %v4050_v38 }
 0x1e5   : > { %v914_v30 = vadd.f32 %v3855_v8, %v887_v1  ;;  %v4188_v1 = vpop.permute.xlu0 %549 }
 0x1e6   : > { %v4177_v53 = vadd.f32 %v606_v51, %v4166_v40  ;;  %v1619_v27 = vmul.f32 0.2, %v1603_v2  ;;  %v941_v0 = vmax.f32 %v909_v55, %v925_v60  ;;  %v587_v23 = vmul.f32 0.2, %v571_v25 }
 0x1e7   : > { %v930_v42 = vmul.f32 0.2, %v914_v30  ;;  %977 = vmax.xlane.f32.xlu1 %v4171_v13 }
 0x1e8   : > { %651 = vmax.xlane.f32.xlu0 %v4177_v53  ;;  %v1635_v36 = vmax.f32 %v1603_v2, %v1619_v27  ;;  %v4207_v38 = vadd.f32 %v941_v0, %v4027_v31 }
 0x1e9   : > { %v946_v5 = vmax.f32 %v914_v30, %v930_v42  ;;  %v4183_v17 = vpop.permute.xlu1 %1580  ;;  %v4198_v42 = vadd.f32 %v601_v34, %v4027_v31  ;;  %v4202_v30 = vpop.permute.xlu0 %890 }
 0x1ea   : > { %v4212_v27 = vadd.f32 %v1635_v36, %v4027_v31  ;;  %v573_v31 = vadd.f32 %v3848_v4, %v4148_v61  ;;  %v4227_v36 = vld [vmem:[%s3577_s23 + $0xe0] sm:$0xff]  ;;  %v4240_v61 = vld [vmem:[%s3577_s23 + $0xf0] sm:$0xff] }
 0x1eb   : > { %1671 = vmax.xlane.f32.xlu1 %v4186_v7  ;;  %v4192_v51 = vadd.f32 %v946_v5, %v4166_v40  ;;  %v911_v5 = vadd.f32 %v3855_v8, %v4067_v24 }
 0x1ec   : > { %5287 = vst [vmem:[#allocation37_spill] sm:$0xff] %v4212_v27 }
 0x1ed   : > { %991 = vmax.xlane.f32.xlu0 %v4192_v51  ;;  %v927_v2 = vmul.f32 0.2, %v911_v5  ;;  %v4219_v0 = vpop.permute.xlu0 %1584 }
 0x1ee   : > { %v2130_v41 = vpop.permute.xlu1 %2129 }
 0x1ef   : > { %v2157_v59 = vadd.f32 %v3964_v43, %v2130_v41  ;;  %641 = vmax.xlane.f32.xlu1 %v4198_v42  ;;  %v603_v41 = vmax.f32 %v571_v25, %v587_v23  ;;  %v943_v26 = vmax.f32 %v911_v5, %v927_v2  ;;  %v1621_v23 = vmul.f32 0.2, %v1605_v9 }
 0x1f1   : > { %v2173_v58 = vmul.f32 0.2, %v2157_v59  ;;  %v1637_v5 = vmax.f32 %v1605_v9, %v1621_v23 }
 0x1f2   : > { %v2134_v55 = vpop.permute.xlu1 %2133 }
 0x1f3   : > { %v2189_v60 = vmax.f32 %v2157_v59, %v2173_v58  ;;  %v2158_v34 = vadd.f32 %v3964_v43, %v2134_v55  ;;  %981 = vmax.xlane.f32.xlu1 %v4207_v38  ;;  %v4230_v55 = vadd.f32 %v603_v41, %v4093_v15  ;;  %v913_v41 = vadd.f32 %v3855_v8, %v4168_v12 }
 0x1f4   : > { %v1607_v12 = vadd.f32 %v3868_v16, %v4124_v44 }
 0x1f5   : > { %v2174_v24 = vmul.f32 0.2, %v2158_v34  ;;  %v4217_v10 = vadd.f32 %v2189_v60, %v4166_v40  ;;  %v929_v9 = vmul.f32 0.2, %v913_v41 }
 0x1f7   : > { %5288 = vst [vmem:[#allocation38_spill] sm:$0xff] %v4217_v10  ;;  %v2190_v58 = vmax.f32 %v2158_v34, %v2174_v24  ;;  %v555_v59 = vpop.permute.xlu1 %554  ;;  %1675 = vmax.xlane.f32.xlu1 %v4212_v27  ;;  %2234 = vmax.xlane.f32.xlu0 %v4217_v10 }
 0x1f8   : > { %v576_v25 = vadd.f32 %v3848_v4, %v555_v59  ;;  %v589_v59 = vmul.f32 0.2, %v573_v31 }
 0x1f9   : > { %v4233_v60 = vadd.f32 %v2190_v58, %v4227_v36  ;;  %v4246_v58 = vadd.f32 %v943_v26, %v4093_v15  ;;  %v4258_v26 = vadd.f32 %v1637_v5, %v4093_v15 }
 0x1fa   : > { %v592_v34 = vmul.f32 0.2, %v576_v25  ;;  %v4235_v24 = vpop.xlane.xlu0 %625  ;;  %v605_v45 = vmax.f32 %v573_v31, %v589_v59  ;;  %v1623_v31 = vmul.f32 0.2, %v1607_v12  ;;  %v1608_v59 = vadd.f32 %v3868_v16, %v4183_v17 }
 0x1fb   : > { %5289 = vst [vmem:[#allocation39_spill] sm:$0xff] %v4233_v60  ;;  %645 = vmax.xlane.f32.xlu1 %v4230_v55  ;;  %2236 = vmax.xlane.f32.xlu0 %v4233_v60  ;;  %5290 = vst [vmem:[#allocation40_spill] sm:$0xff] %v4258_v26 }
 0x1fc   : > { %v608_v10 = vmax.f32 %v576_v25, %v592_v34  ;;  %v895_v27 = vpop.permute.xlu1 %894  ;;  %v945_v34 = vmax.f32 %v913_v41, %v929_v9  ;;  %v4270_v44 = vadd.f32 %v605_v45, %v4153_v63  ;;  %v1639_v41 = vmax.f32 %v1607_v12, %v1623_v31 }
 0x1fd   : > { %v916_v2 = vadd.f32 %v3855_v8, %v895_v27  ;;  %v1624_v9 = vmul.f32 0.2, %v1608_v59  ;;  %v1609_v31 = vadd.f32 %v3868_v16, %v4219_v0 }
 0x1fe   : > { %v4248_v7 = vpop.xlane.xlu0 %965  ;;  %v4251_v22 = vadd.f32 %v608_v10, %v4240_v61  ;;  %v4279_v17 = vadd.f32 %v945_v34, %v4153_v63 }
 0x1ff   : > { %v932_v60 = vmul.f32 0.2, %v916_v2  ;;  %985 = vmax.xlane.f32.xlu1 %v4246_v58 }
 0x200   : > { %655 = vmax.xlane.f32.xlu0 %v4251_v22 }
 0x201   : > { %v948_v25 = vmax.f32 %v916_v2, %v932_v60  ;;  %v1589_v27 = vpop.permute.xlu1 %1588  ;;  %v575_v2 = vadd.f32 %v3848_v4, %v4188_v1 }
 0x202   : > { %v4260_v23 = vpop.xlane.xlu0 %1661 }
 0x203   : > { %5291 = vst [vmem:[#allocation41_spill] sm:$0xff] %v4260_v23  ;;  %1679 = vmax.xlane.f32.xlu1 %v4258_v26  ;;  %v4264_v10 = vadd.f32 %v948_v25, %v4240_v61  ;;  %v591_v23 = vmul.f32 0.2, %v575_v2 }
 0x205   : > { %5292 = vst [vmem:[#allocation42_spill] sm:$0xff] %v4264_v10  ;;  %995 = vmax.xlane.f32.xlu0 %v4264_v10  ;;  %v4287_v10 = vadd.f32 %v1639_v41, %v4153_v63  ;;  %v607_v12 = vmax.f32 %v575_v2, %v591_v23 }
 0x206   : > { %v4272_v60 = vpop.xlane.xlu0 %629  ;;  %v2138_v15 = vpop.permute.xlu1 %2137 }
 0x207   : > { %v2159_v5 = vadd.f32 %v3964_v43, %v2138_v15  ;;  %649 = vmax.xlane.f32.xlu1 %v4270_v44  ;;  %v915_v43 = vadd.f32 %v3855_v8, %v4202_v30  ;;  %v1640_v15 = vmax.f32 %v1608_v59, %v1624_v9  ;;  %5293 = vst [vmem:[#allocation43_spill] sm:$0xff] %v4287_v10  ;;  %v1625_v30 = vmul.f32 0.2, %v1609_v31 }
 0x208   : > { %v1610_v59 = vadd.f32 %v3868_v16, %v1589_v27  ;;  %v4304_v41 = vadd.f32 %v607_v12, %v4227_v36 }
 0x209   : > { %v2175_v25 = vmul.f32 0.2, %v2159_v5  ;;  %v931_v34 = vmul.f32 0.2, %v915_v43  ;;  %v1641_v23 = vmax.f32 %v1609_v31, %v1625_v30 }
 0x20a   : > { %v4281_v26 = vpop.xlane.xlu0 %969  ;;  %v1626_v0 = vmul.f32 0.2, %v1610_v59 }
 0x20b   : > { %v2191_v45 = vmax.f32 %v2159_v5, %v2175_v25  ;;  %989 = vmax.xlane.f32.xlu1 %v4279_v17  ;;  %v4297_v5 = vadd.f32 %v1640_v15, %v4166_v40  ;;  %v947_v63 = vmax.f32 %v915_v43, %v931_v34 }
 0x20c   : > { %v1642_v25 = vmax.f32 %v1610_v59, %v1626_v0 }
 0x20d   : > { %v4290_v4 = vadd.f32 %v2191_v45, %v4240_v61  ;;  %5295 = vst [vmem:[#allocation45_spill] sm:$0xff] %v4297_v5  ;;  %v4310_v40 = vadd.f32 %v947_v63, %v4227_v36  ;;  %v4314_v45 = vadd.f32 %v1641_v23, %v4227_v36 }
 0x20e   : > { %v632_v1 = vpop.xlane.xlu0 %631  ;;  %v4320_v27 = vadd.f32 %v1642_v25, %v4240_v61 }
 0x20f   : > { %5294 = vst [vmem:[#allocation44_spill] sm:$0xff] %v4290_v4  ;;  %1683 = vmax.xlane.f32.xlu1 %v4287_v10  ;;  %2238 = vmax.xlane.f32.xlu0 %v4290_v4  ;;  %5296 = vst [vmem:[#allocation46_spill] sm:$0xff] %v4314_v45 }
 0x210   : > { %5297 = vst [vmem:[#allocation47_spill] sm:$0xff] %v4320_v27 }
 0x212   : > { %v4299_v8 = vpop.xlane.xlu0 %1665 }
 0x213   : > { %1685 = vmax.xlane.f32.xlu1 %v4297_v5  ;;  %v657_v5 = vsub.f32 %v3881_v35, %v4235_v24  ;;  %v659_v35 = vsub.f32 %v3912_v11, %v4272_v60 }
 0x216   : > { %v4306_v9 = vpop.xlane.xlu0 %973 }
 0x217   : > { %653 = vmax.xlane.f32.xlu1 %v4304_v41 }
 0x21a   : > { %v636_v2 = vpop.xlane.xlu0 %635 }
 0x21b   : > { %993 = vmax.xlane.f32.xlu1 %v4310_v40 }
 0x21e   : > { %v4316_v16 = vpop.xlane.xlu0 %975 }
 0x21f   : > { %1687 = vmax.xlane.f32.xlu1 %v4314_v45 }
 0x222   : > { %v4322_v43 = vpop.xlane.xlu0 %1669 }
 0x223   : > { %1689 = vmax.xlane.f32.xlu1 %v4320_v27  ;;  %v660_v27 = vsub.f32 %v3930_v37, %v632_v1 }
 0x225   : > { %1217 = vrot.lane.b32.xlu0 %v3741_v54, %s3530_s26 }
 0x226   : > { %v4327_v15 = vpop.xlane.xlu0 %2220 }
 0x227   : > { %5298 = vst [vmem:[#allocation48_spill] sm:$0xff] %v4327_v15 }
 0x229   : > { %1213 = vrot.lane.b32.xlu0 %v3729_v50, %s3530_s26 }
 0x22a   : > { %v4331_v36 = vpop.xlane.xlu0 %639 }
 0x22e   : > { %v4333_v12 = vpop.xlane.xlu0 %979 }
 0x232   : > { %v4337_v61 = vpop.xlane.xlu0 %1673 }
 0x234   : > { %1219 = vrot.lane.b32.xlu1 %v3745_v56, %s3530_s26 }
 0x236   : > { %v4343_v31 = vpop.xlane.xlu0 %2222 }
 0x237   : > { %5299 = vst [vmem:[#allocation49_spill] sm:$0xff] %v4343_v31 }
 0x238   : > { %1215 = vrot.lane.b32.xlu1 %v3735_v52, %s3530_s26  ;;  %v4341_v34 = vpop.xlane.xlu1 %1659 }
 0x23c   : > { %v4345_v63 = vpop.xlane.xlu1 %2208 }
 0x23d   : > { %5300 = vst [vmem:[#allocation50_spill] sm:$0xff] %v4345_v63  ;;  %v679_v63 = vmul.f32 1.442695, %v660_v27 }
 0x23f   : > { %v4347_v30 = vpop.xlane.xlu0 %2224 }
 0x240   : > { %5301 = vst [vmem:[#allocation51_spill] sm:$0xff] %v4347_v30  ;;  %v628_v59 = vpop.xlane.xlu1 %627 }
 0x241   : > { %v658_v23 = vsub.f32 %v4035_v49, %v628_v59  ;;  %v673_v49 = vmul.f32 1.442695, %v657_v5  ;;  %v997_v59 = vsub.f32 %v3892_v47, %v4248_v7  ;;  %v677_v5 = vmul.f32 1.442695, %v659_v35 }
 0x242   : > { %v999_v47 = vsub.f32 %v3921_v19, %v4281_v26 }
 0x243   : > { %v675_v0 = vmul.f32 1.442695, %v658_v23 }
 0x244   : > { %v968_v25 = vpop.xlane.xlu1 %967  ;;  %v4350_v4 = vpop.xlane.xlu0 %643  ;;  %v1017_v60 = vmul.f32 1.442695, %v999_v47 }
 0x245   : > { %3260 = vpow2.f32 %v675_v0  ;;  %v998_v45 = vsub.f32 %v4042_v62, %v968_v25  ;;  %v1013_v62 = vmul.f32 1.442695, %v997_v59  ;;  %v1002_v25 = vsub.f32 %v3969_v33, %v4316_v16 }
 0x246   : > { %v664_v33 = vsub.f32 %v3988_v57, %v4331_v36 }
 0x247   : > { %v1015_v10 = vmul.f32 1.442695, %v998_v45  ;;  %v662_v45 = vsub.f32 %v3961_v28, %v636_v2  ;;  %v1001_v2 = vsub.f32 %v3951_v14, %v4306_v9  ;;  %v1023_v59 = vmul.f32 1.442695, %v1002_v25 }
 0x248   : > { %v4356_v31 = vpop.xlane.xlu1 %2210  ;;  %v687_v14 = vmul.f32 1.442695, %v664_v33  ;;  %v1004_v9 = vsub.f32 %v3995_v20, %v4333_v12 }
 0x249   : > { %5302 = vst [vmem:[#allocation52_spill] sm:$0xff] %v4356_v31  ;;  %3262 = vpow2.f32 %v1015_v10  ;;  %v4358_v30 = vpop.xlane.xlu0 %983  ;;  %v683_v26 = vmul.f32 1.442695, %v662_v45 }
 0x24a   : > { %3264 = vpow2.f32 %v679_v63  ;;  %v1027_v36 = vmul.f32 1.442695, %v1004_v9 }
 0x24b   : > { %3266 = vpow2.f32 %v673_v49 }
 0x24c   : > { %v4362_v23 = vpop.xlane.xlu1 %1663  ;;  %3268 = vpow2.f32 %v1013_v62 }
 0x24d   : > { %v4364_v37 = vpop.xlane.xlu0 %1677  ;;  %3270 = vpow2.f32 %v677_v5 }
 0x24e   : > { %5303 = vst [vmem:[#allocation53_spill] sm:$0xff] %v4364_v37 }
 0x250   : > { %v4368_v24 = vpop.xlane.xlu1 %2212 }
 0x251   : > { %5304 = vst [vmem:[#allocation54_spill] sm:$0xff] %v4368_v24  ;;  %v4370_v1 = vpop.xlane.xlu0 %2226 }
 0x252   : > { %5305 = vst [vmem:[#allocation55_spill] sm:$0xff] %v4370_v1  ;;  %v4372_v10 = vpop.eup %3260 }
 0x253   : > { %707 = vadd.xlane.f32.xlu0 %v4372_v10 }
 0x254   : > { %v972_v7 = vpop.xlane.xlu1 %971 }
 0x255   : > { %v1000_v27 = vsub.f32 %v4090_v3, %v972_v7  ;;  %v4379_v63 = vpop.xlane.xlu0 %2228  ;;  %v1021_v7 = vmul.f32 1.442695, %v1001_v2 }
 0x256   : > { %5306 = vst [vmem:[#allocation56_spill] sm:$0xff] %v4379_v63  ;;  %v4381_v11 = vpop.eup %3262 }
 0x257   : > { %5307 = vst [vmem:[#allocation57_spill] sm:$0xff] %v4381_v11  ;;  %v1019_v0 = vmul.f32 1.442695, %v1000_v27  ;;  %1047 = vadd.xlane.f32.xlu0 %v4381_v11  ;;  %v4388_v28 = vpop.eup %3264 }
 0x258   : > { %v4386_v19 = vpop.xlane.xlu1 %2214  ;;  %v4390_v3 = vpop.eup %3266 }
 0x259   : > { %5308 = vst [vmem:[#allocation58_spill] sm:$0xff] %v4386_v19  ;;  %3272 = vpow2.f32 %v1019_v0  ;;  %v648_v49 = vpop.xlane.xlu0 %647  ;;  %v4401_v5 = vpop.eup %3268 }
 0x25a   : > { %3274 = vpow2.f32 %v1017_v60  ;;  %v4410_v57 = vpop.eup %3270  ;;  %v666_v60 = vsub.f32 %v4047_v32, %v4350_v4  ;;  %v668_v20 = vsub.f32 %v4108_v39, %v648_v49 }
 0x25b   : > { %711 = vadd.xlane.f32.xlu0 %v4388_v28  ;;  %3276 = vpow2.f32 %v683_v26 }
 0x25c   : > { %v634_v62 = vpop.xlane.xlu1 %633  ;;  %705 = vadd.xlane.f32.xlu1 %v4390_v3  ;;  %3278 = vpow2.f32 %v1023_v59  ;;  %v691_v2 = vmul.f32 1.442695, %v666_v60  ;;  %v695_v32 = vmul.f32 1.442695, %v668_v20 }
 0x25d   : > { %v661_v16 = vsub.f32 %v4113_v6, %v634_v62  ;;  %v4399_v35 = vpop.xlane.xlu0 %987 }
 0x25f   : > { %v681_v47 = vmul.f32 1.442695, %v661_v16 }
 0x260   : > { %v4403_v45 = vpop.xlane.xlu1 %1667  ;;  %1045 = vadd.xlane.f32.xlu1 %v4401_v5 }
 0x261   : > { %3280 = vpow2.f32 %v681_v47  ;;  %v4408_v27 = vpop.xlane.xlu0 %1681 }
 0x262   : > { %5309 = vst [vmem:[#allocation59_spill] sm:$0xff] %v4408_v27  ;;  %3282 = vpow2.f32 %v1021_v7 }
 0x263   : > { %3284 = vpow2.f32 %v687_v14 }
 0x264   : > { %v4412_v6 = vpop.xlane.xlu1 %2216  ;;  %709 = vadd.xlane.f32.xlu1 %v4410_v57  ;;  %3286 = vpow2.f32 %v1027_v36 }
 0x265   : > { %5310 = vst [vmem:[#allocation60_spill] sm:$0xff] %v4412_v6  ;;  %v4423_v12 = vpop.xlane.xlu0 %2230  ;;  %3288 = vpow2.f32 %v691_v2 }
 0x266   : > { %v4417_v0 = vpop.eup %3272  ;;  %5313 = vst [vmem:[#allocation63_spill] sm:$0xff] %v4423_v12  ;;  %3290 = vpow2.f32 %v695_v32 }
 0x267   : > { %5311 = vst [vmem:[#allocation61_spill] sm:$0xff] %v4417_v0  ;;  %v4419_v25 = vpop.eup %3274  ;;  %1051 = vadd.xlane.f32.xlu0 %v4417_v0 }
 0x268   : > { %5312 = vst [vmem:[#allocation62_spill] sm:$0xff] %v4419_v25  ;;  %v4425_v26 = vpop.xlane.xlu1 %2218  ;;  %1049 = vadd.xlane.f32.xlu1 %v4419_v25  ;;  %v4428_v59 = vpop.eup %3276 }
 0x269   : > { %5314 = vst [vmem:[#allocation64_spill] sm:$0xff] %v4425_v26  ;;  %v4433_v33 = vpop.eup %3278 }
 0x26a   : > { %5316 = vst [vmem:[#allocation66_spill] sm:$0xff] %v4433_v33 }
 0x26b   : > { %715 = vadd.xlane.f32.xlu0 %v4428_v59 }
 0x26c   : > { %v638_v4 = vpop.xlane.xlu1 %637  ;;  %v4431_v62 = vpop.xlane.xlu0 %2232 }
 0x26d   : > { %5315 = vst [vmem:[#allocation65_spill] sm:$0xff] %v4431_v62  ;;  %v663_v39 = vsub.f32 %v4158_v18, %v638_v4 }
 0x26e   : > { %v4436_v49 = vpop.eup %3280 }
 0x26f   : > { %v685_v16 = vmul.f32 1.442695, %v663_v39  ;;  %713 = vadd.xlane.f32.xlu1 %v4436_v49  ;;  %1055 = vadd.xlane.f32.xlu0 %v4433_v33  ;;  %v4440_v7 = vpop.eup %3282 }
 0x270   : > { %v978_v47 = vpop.xlane.xlu1 %977  ;;  %5317 = vst [vmem:[#allocation67_spill] sm:$0xff] %v4440_v7  ;;  %v4442_v9 = vpop.eup %3284 }
 0x271   : > { %3292 = vpow2.f32 %v685_v16  ;;  %v652_v14 = vpop.xlane.xlu0 %651  ;;  %v4449_v20 = vpop.eup %3286  ;;  %v1003_v32 = vsub.f32 %v4171_v13, %v978_v47 }
 0x272   : > { %v670_v36 = vsub.f32 %v4177_v53, %v652_v14  ;;  %5318 = vst [vmem:[#allocation68_spill] sm:$0xff] %v4449_v20  ;;  %v4454_v39 = vpop.eup %3288 }
 0x273   : > { %1053 = vadd.xlane.f32.xlu1 %v4440_v7  ;;  %719 = vadd.xlane.f32.xlu0 %v4442_v9  ;;  %v1025_v26 = vmul.f32 1.442695, %v1003_v32 }
 0x274   : > { %v699_v18 = vmul.f32 1.442695, %v670_v36  ;;  %v4447_v60 = vpop.xlane.xlu1 %1671  ;;  %v4461_v36 = vpop.eup %3290 }
 0x276   : > { %3294 = vpow2.f32 %v699_v18  ;;  %v4457_v16 = vpop.xlane.xlu0 %991 }
 0x277   : > { %1059 = vadd.xlane.f32.xlu0 %v4449_v20 }
 0x278   : > { %v642_v2 = vpop.xlane.xlu1 %641 }
 0x279   : > { %v665_v4 = vsub.f32 %v4198_v42, %v642_v2 }
 0x27b   : > { %v689_v53 = vmul.f32 1.442695, %v665_v4  ;;  %723 = vadd.xlane.f32.xlu0 %v4454_v39 }
 0x27c   : > { %v4459_v14 = vpop.xlane.xlu1 %981 }
 0x27d   : > { %3296 = vpow2.f32 %v689_v53 }
 0x27e   : > { %v4463_v18 = vpop.eup %3292  ;;  %3298 = vpow2.f32 %v1025_v26 }
 0x27f   : > { %717 = vadd.xlane.f32.xlu1 %v4463_v18  ;;  %727 = vadd.xlane.f32.xlu0 %v4461_v36 }
 0x280   : > { %v4467_v13 = vpop.xlane.xlu1 %1675  ;;  %v4469_v42 = vpop.xlane.xlu0 %2234 }
 0x281   : > { %5319 = vst [vmem:[#allocation69_spill] sm:$0xff] %v4467_v13  ;;  %5320 = vst [vmem:[#allocation70_spill] sm:$0xff] %v4469_v42 }
 0x283   : > { %v4471_v47 = vpop.eup %3294 }
 0x284   : > { %v646_v2 = vpop.xlane.xlu1 %645  ;;  %731 = vadd.xlane.f32.xlu0 %v4471_v47  ;;  %v4474_v4 = vpop.xlane.xlu0 %2236 }
 0x285   : > { %5321 = vst [vmem:[#allocation71_spill] sm:$0xff] %v4474_v4  ;;  %v667_v32 = vsub.f32 %v4230_v55, %v646_v2 }
 0x287   : > { %v693_v53 = vmul.f32 1.442695, %v667_v32 }
 0x288   : > { %v4477_v6 = vpop.xlane.xlu1 %985 }
 0x289   : > { %3300 = vpow2.f32 %v693_v53  ;;  %v656_v19 = vpop.xlane.xlu0 %655 }
 0x28a   : > { %v4479_v24 = vpop.eup %3296  ;;  %v672_v62 = vsub.f32 %v4251_v22, %v656_v19 }
 0x28b   : > { %721 = vadd.xlane.f32.xlu1 %v4479_v24  ;;  %v4485_v12 = vpop.eup %3298 }
 0x28c   : > { %v703_v26 = vmul.f32 1.442695, %v672_v62  ;;  %v4483_v42 = vpop.xlane.xlu1 %1679  ;;  %5323 = vst [vmem:[#allocation73_spill] sm:$0xff] %v4485_v12 }
 0x28d   : > { %5322 = vst [vmem:[#allocation72_spill] sm:$0xff] %v4483_v42 }
 0x28e   : > { %3302 = vpow2.f32 %v703_v26 }
 0x28f   : > { %1057 = vadd.xlane.f32.xlu1 %v4485_v12 }
 0x290   : > { %v650_v55 = vpop.xlane.xlu1 %649 }
 0x291   : > { %v669_v2 = vsub.f32 %v4270_v44, %v650_v55 }
 0x293   : > { %v697_v32 = vmul.f32 1.442695, %v669_v2 }
 0x294   : > { %v4489_v53 = vpop.xlane.xlu1 %989 }
 0x295   : > { %3304 = vpow2.f32 %v697_v32  ;;  %v4507_v32 = vpop.xlane.xlu0 %995 }
 0x296   : > { %v4491_v4 = vpop.eup %3300 }
 0x297   : > { %725 = vadd.xlane.f32.xlu1 %v4491_v4 }
 0x298   : > { %v4494_v22 = vpop.xlane.xlu1 %1683 }
 0x299   : > { %5324 = vst [vmem:[#allocation74_spill] sm:$0xff] %v4494_v22  ;;  %v4511_v1 = vpop.xlane.xlu0 %2238 }
 0x29a   : > { %5327 = vst [vmem:[#allocation77_spill] sm:$0xff] %v4511_v1 }
 0x29b   : > { %v4496_v19 = vpop.eup %3302 }
 0x29c   : > { %v4498_v62 = vpop.xlane.xlu1 %1685  ;;  %735 = vadd.xlane.f32.xlu0 %v4496_v19 }
 0x29d   : > { %5325 = vst [vmem:[#allocation75_spill] sm:$0xff] %v4498_v62  ;;  %v1218_v22 = vpop.permute.xlu0 %1217 }
 0x2a0   : > { %v654_v26 = vpop.xlane.xlu1 %653 }
 0x2a1   : > { %v671_v31 = vsub.f32 %v4304_v41, %v654_v26  ;;  %v1214_v26 = vpop.permute.xlu0 %1213 }
 0x2a2   : > { %v4502_v44 = vpop.eup %3304 }
 0x2a3   : > { %v701_v55 = vmul.f32 1.442695, %v671_v31  ;;  %729 = vadd.xlane.f32.xlu1 %v4502_v44 }
 0x2a4   : > { %v4505_v2 = vpop.xlane.xlu1 %993 }
 0x2a5   : > { %3306 = vpow2.f32 %v701_v55  ;;  %v1006_v55 = vsub.f32 %v4061_v21, %v4358_v30 }
 0x2a7   : > { %v1031_v1 = vmul.f32 1.442695, %v1006_v55 }
 0x2a8   : > { %v4509_v63 = vpop.xlane.xlu1 %1687 }
 0x2a9   : > { %5326 = vst [vmem:[#allocation76_spill] sm:$0xff] %v4509_v63  ;;  %3308 = vpow2.f32 %v1031_v1  ;;  %v5331_v1 = vld [vmem:[#allocation10_spill] sm:$0xff] }
 0x2ac   : > { %v4513_v62 = vpop.xlane.xlu1 %1689 }
 0x2ad   : > { %5328 = vst [vmem:[#allocation78_spill] sm:$0xff] %v4513_v62 }
 0x2b0   : > { %v1220_v15 = vpop.permute.xlu1 %1219 }
 0x2b1   : > { %2926 = vmatprep.subr.mxu0 %v1220_v15 }
 0x2b2   : > { %v4515_v41 = vpop.eup %3306  ;;  %2927 = vmatpush3.msra.mxu0 %v1220_v15  ;;  %1209 = vrot.lane.b32.xlu0 %v3718_v46, %s3530_s26 }
 0x2b3   : > { %733 = vadd.xlane.f32.xlu1 %v4515_v41  ;;  %2928 = vmatprep.subr.mxu0 %v1218_v22 }
 0x2b4   : > { %v1216_v31 = vpop.permute.xlu1 %1215  ;;  %2929 = vmatpush3.msra.mxu0 %v1218_v22  ;;  %v1005_v22 = vsub.f32 %v4207_v38, %v4459_v14 }
 0x2b5   : > { %2930 = vmatprep.subr.mxu0 %v1216_v31 }
 0x2b6   : > { %2931 = vmatpush3.msra.mxu0 %v1216_v31  ;;  %v4524_v15 = vpop.eup %3308  ;;  %v1029_v62 = vmul.f32 1.442695, %v1005_v22 }
 0x2b7   : > { %2932 = vmatprep.subr.mxu0 %v1214_v26  ;;  %5329 = vst [vmem:[#allocation79_spill] sm:$0xff] %v4524_v15 }
 0x2b8   : > { %2933 = vmatpush3.msra.mxu0 %v1214_v26  ;;  %3310 = vpow2.f32 %v1029_v62  ;;  %v1008_v62 = vsub.f32 %v4118_v29, %v4399_v35 }
 0x2ba   : > { %v1035_v12 = vmul.f32 1.442695, %v1008_v62  ;;  %v5332_v62 = vld [vmem:[#allocation11_spill] sm:$0xff] }
 0x2c4   : > { %1211 = vrot.lane.b32.xlu1 %v3723_v48, %s3530_s26 }
 0x2c5   : > { %v4531_v30 = vpop.eup %3310 }
 0x2c6   : > { %5330 = vst [vmem:[#allocation80_spill] sm:$0xff] %v4531_v30 }
 0x2d1   : > { %1063 = vadd.xlane.f32.xlu0 %v4524_v15 }
 0x2dc   : > { %v708_v31 = vpop.xlane.xlu0 %707 }
 0x2dd   : > { %3312 = vrcp.f32 %v708_v31 }
 0x2e0   : > { %v4529_v26 = vpop.xlane.xlu0 %1047 }
 0x2e4   : > { %v712_v63 = vpop.xlane.xlu0 %711 }
 0x2e5   : > { %3314 = vrcp.f32 %v712_v63  ;;  %v706_v21 = vpop.xlane.xlu1 %705 }
 0x2e6   : > { %3316 = vrcp.f32 %v706_v21 }
 0x2e7   : > { %1205 = vrot.lane.b32.xlu0 %v5331_v1, %s3530_s26 }
 0x2e8   : > { %1061 = vadd.xlane.f32.xlu1 %v4531_v30 }
 0x2e9   : > { %v1046_v55 = vpop.xlane.xlu1 %1045 }
 0x2ea   : > { %v3313_v42 = vpop.eup %3312  ;;  %3318 = vrcp.f32 %v1046_v55 }
 0x2eb   : > { %v754_v38 = vmul.f32 %v3313_v42, %v708_v31 }
 0x2ed   : > { %v710_v14 = vpop.xlane.xlu1 %709  ;;  %v770_v27 = vsub.f32 2.0, %v754_v38 }
 0x2ee   : > { %3320 = vrcp.f32 %v710_v14 }
 0x2ef   : > { %v786_v30 = vmul.f32 %v3313_v42, %v770_v27 }
 0x2f0   : > { %v4538_v22 = vpop.xlane.xlu0 %1051 }
 0x2f1   : > { %v4540_v7 = vpop.xlane.xlu1 %1049  ;;  %v802_v35 = vmul.f32 0.25, %v786_v30 }
 0x2f2   : > { %v3315_v15 = vpop.eup %3314 }
 0x2f3   : > { %v3317_v20 = vpop.eup %3316  ;;  %v756_v0 = vmul.f32 %v3315_v15, %v712_v63 }
 0x2f4   : > { %v753_v33 = vmul.f32 %v3317_v20, %v706_v21  ;;  %v716_v1 = vpop.xlane.xlu0 %715 }
 0x2f5   : > { %3322 = vrcp.f32 %v716_v1  ;;  %v772_v38 = vsub.f32 2.0, %v756_v0 }
 0x2f6   : > { %v769_v25 = vsub.f32 2.0, %v753_v33  ;;  %3324 = vpow2.f32 %v1035_v12 }
 0x2f7   : > { %v3319_v31 = vpop.eup %3318  ;;  %v788_v42 = vmul.f32 %v3315_v15, %v772_v38 }
 0x2f8   : > { %v785_v11 = vmul.f32 %v3317_v20, %v769_v25  ;;  %v1093_v13 = vmul.f32 %v3319_v31, %v1046_v55  ;;  %v714_v48 = vpop.xlane.xlu1 %713  ;;  %v4542_v29 = vpop.xlane.xlu0 %1055  ;;  %v818_v25 = vmul.f32 %v4372_v10, %v802_v35 }
 0x2f9   : > { %3326 = vrcp.f32 %v714_v48  ;;  %1207 = vrot.lane.b32.xlu1 %v5332_v62, %s3530_s26  ;;  %v804_v62 = vmul.f32 0.25, %v788_v42 }
 0x2fa   : > { %v1109_v21 = vsub.f32 2.0, %v1093_v13  ;;  %v801_v37 = vmul.f32 0.25, %v785_v11 }
 0x2fb   : > { %v3321_v46 = vpop.eup %3320  ;;  %v820_v35 = vmul.f32 %v4388_v28, %v804_v62 }
 0x2fc   : > { %v1125_v27 = vmul.f32 %v3319_v31, %v1109_v21  ;;  %v755_v63 = vmul.f32 %v3321_v46, %v710_v14  ;;  %v817_v33 = vmul.f32 %v4390_v3, %v801_v37  ;;  %v720_v12 = vpop.xlane.xlu0 %719  ;;  %v4551_v37 = vpop.xlane.xlu1 %1053 }
 0x2fd   : > { %3328 = vrcp.f32 %v720_v12 }
 0x2fe   : > { %v771_v20 = vsub.f32 2.0, %v755_v63  ;;  %3014 = vmatprep.mubr.f32.mxu1 %v817_v33  ;;  %v1141_v55 = vmul.f32 0.25, %v1125_v27 }
 0x2ff   : > { %3015 = vmatmul.mubr.f32.vlgmr.msra.gmra.mxu1 %v818_v25 }
 0x300   : > { %v787_v0 = vmul.f32 %v3321_v46, %v771_v20  ;;  %v1157_v30 = vmul.f32 %v4401_v5, %v1141_v55  ;;  %v4549_v14 = vpop.xlane.xlu0 %1059  ;;  %v1007_v5 = vsub.f32 %v4246_v58, %v4477_v6 }
 0x302   : > { %v3323_v13 = vpop.eup %3322  ;;  %2958 = vmatprep.mubr.f32.mxu0 %v1157_v30  ;;  %v803_v11 = vmul.f32 0.25, %v787_v0 }
 0x303   : > { %v758_v31 = vmul.f32 %v3323_v13, %v716_v1  ;;  %v4554_v10 = vpop.eup %3324 }
 0x304   : > { %v819_v3 = vmul.f32 %v4410_v57, %v803_v11  ;;  %v724_v63 = vpop.xlane.xlu0 %723  ;;  %v1033_v57 = vmul.f32 1.442695, %v1007_v5 }
 0x305   : > { %v774_v15 = vsub.f32 2.0, %v758_v31 }
 0x306   : > { %v3327_v46 = vpop.eup %3326  ;;  %1067 = vadd.xlane.f32.xlu0 %v4554_v10  ;;  %3017 = vmatprep.mubr.f32.mxu1 %v819_v3 }
 0x307   : > { %v757_v38 = vmul.f32 %v3327_v46, %v714_v48  ;;  %3018 = vmatmul.mubr.f32.gmra.mxu1 %v820_v35  ;;  %v790_v1 = vmul.f32 %v3323_v13, %v774_v15 }
 0x308   : > { %v718_v21 = vpop.xlane.xlu1 %717  ;;  %v728_v6 = vpop.xlane.xlu0 %727 }
 0x309   : > { %v773_v27 = vsub.f32 2.0, %v757_v38  ;;  %3330 = vrcp.f32 %v718_v21  ;;  %v806_v42 = vmul.f32 0.25, %v790_v1 }
 0x30a   : > { %3332 = vrcp.f32 %v724_v63  ;;  %v3329_v25 = vpop.eup %3328 }
 0x30b   : > { %v789_v33 = vmul.f32 %v3327_v46, %v773_v27  ;;  %3334 = vpow2.f32 %v1033_v57  ;;  %v760_v20 = vmul.f32 %v3329_v25, %v720_v12  ;;  %v822_v55 = vmul.f32 %v4428_v59, %v806_v42  ;;  %v5333_v59 = vld [vmem:[#allocation8_spill] sm:$0xff] }
 0x30d   : > { %v805_v28 = vmul.f32 0.25, %v789_v33  ;;  %v776_v48 = vsub.f32 2.0, %v760_v20  ;;  %v732_v27 = vpop.xlane.xlu0 %731  ;;  %v1010_v33 = vsub.f32 %v4192_v51, %v4457_v16  ;;  %v5334_v51 = vld [vmem:[#allocation9_spill] sm:$0xff] }
 0x30f   : > { %v821_v62 = vmul.f32 %v4436_v49, %v805_v28  ;;  %v792_v13 = vmul.f32 %v3329_v25, %v776_v48  ;;  %v1039_v20 = vmul.f32 1.442695, %v1010_v33 }
 0x311   : > { %3020 = vmatprep.mubr.f32.mxu1 %v821_v62  ;;  %v808_v35 = vmul.f32 0.25, %v792_v13 }
 0x312   : > { %3021 = vmatmul.mubr.f32.gmra.mxu1 %v822_v55 }
 0x314   : > { %v722_v58 = vpop.xlane.xlu1 %721 }
 0x315   : > { %3336 = vrcp.f32 %v722_v58 }
 0x316   : > { %v3331_v0 = vpop.eup %3330  ;;  %3338 = vrcp.f32 %v728_v6 }
 0x317   : > { %v759_v30 = vmul.f32 %v3331_v0, %v718_v21  ;;  %v3333_v11 = vpop.eup %3332  ;;  %v824_v21 = vmul.f32 %v4442_v9, %v808_v35 }
 0x318   : > { %v4562_v15 = vpop.eup %3334  ;;  %v762_v49 = vmul.f32 %v3333_v11, %v724_v63  ;;  %v4564_v12 = vpop.xlane.xlu1 %1057 }
 0x319   : > { %v775_v31 = vsub.f32 2.0, %v759_v30 }
 0x31a   : > { %v778_v38 = vsub.f32 2.0, %v762_v49 }
 0x31b   : > { %v791_v3 = vmul.f32 %v3331_v0, %v775_v31 }
 0x31c   : > { %1201 = vrot.lane.b32.xlu0 %v5333_v59, %s3530_s26  ;;  %v794_v42 = vmul.f32 %v3333_v11, %v778_v38 }
 0x31d   : > { %v807_v46 = vmul.f32 0.25, %v791_v3  ;;  %1065 = vadd.xlane.f32.xlu1 %v4562_v15 }
 0x31f   : > { %v823_v5 = vmul.f32 %v4463_v18, %v807_v46  ;;  %v810_v18 = vmul.f32 0.25, %v794_v42 }
 0x320   : > { %v726_v1 = vpop.xlane.xlu1 %725 }
 0x321   : > { %3340 = vrcp.f32 %v726_v1  ;;  %3023 = vmatprep.mubr.f32.mxu1 %v823_v5  ;;  %v826_v13 = vmul.f32 %v4454_v39, %v810_v18 }
 0x322   : > { %v3337_v57 = vpop.eup %3336  ;;  %3024 = vmatmul.mubr.f32.gmra.mxu1 %v824_v21  ;;  %3342 = vrcp.f32 %v732_v27 }
 0x323   : > { %v761_v63 = vmul.f32 %v3337_v57, %v722_v58  ;;  %v3339_v25 = vpop.eup %3338  ;;  %3344 = vpow2.f32 %v1039_v20 }
 0x324   : > { %v764_v55 = vmul.f32 %v3339_v25, %v728_v6 }
 0x325   : > { %v777_v28 = vsub.f32 2.0, %v761_v63  ;;  %v736_v6 = vpop.xlane.xlu0 %735  ;;  %v1009_v63 = vsub.f32 %v4279_v17, %v4489_v53 }
 0x326   : > { %v780_v0 = vsub.f32 2.0, %v764_v55 }
 0x327   : > { %v793_v62 = vmul.f32 %v3337_v57, %v777_v28 }
 0x328   : > { %v796_v11 = vmul.f32 %v3339_v25, %v780_v0 }
 0x329   : > { %v809_v48 = vmul.f32 0.25, %v793_v62  ;;  %v1210_v18 = vpop.permute.xlu0 %1209 }
 0x32a   : > { %v812_v49 = vmul.f32 0.25, %v796_v11 }
 0x32b   : > { %v825_v9 = vmul.f32 %v4479_v24, %v809_v48 }
 0x32c   : > { %v730_v30 = vpop.xlane.xlu1 %729  ;;  %v828_v38 = vmul.f32 %v4461_v36, %v812_v49 }
 0x32d   : > { %3346 = vrcp.f32 %v730_v30  ;;  %3026 = vmatprep.mubr.f32.mxu1 %v825_v9 }
 0x32e   : > { %v3341_v58 = vpop.eup %3340  ;;  %1203 = vrot.lane.b32.xlu1 %v5334_v51, %s3530_s26  ;;  %3027 = vmatmul.mubr.f32.gmra.mxu1 %v826_v13  ;;  %3348 = vrcp.f32 %v736_v6 }
 0x32f   : > { %v763_v16 = vmul.f32 %v3341_v58, %v726_v1  ;;  %v3343_v31 = vpop.eup %3342 }
 0x330   : > { %v766_v24 = vmul.f32 %v3343_v31, %v732_v27  ;;  %v4579_v21 = vpop.eup %3344 }
 0x331   : > { %v779_v3 = vsub.f32 2.0, %v763_v16 }
 0x332   : > { %v782_v39 = vsub.f32 2.0, %v766_v24  ;;  %v5337_v24 = vld [vmem:[#allocation7_spill] sm:$0xff] }
 0x333   : > { %v795_v35 = vmul.f32 %v3341_v58, %v779_v3  ;;  %v5335_v3 = vld [vmem:[#allocation6_spill] sm:$0xff] }
 0x334   : > { %v798_v33 = vmul.f32 %v3343_v31, %v782_v39 }
 0x335   : > { %v811_v46 = vmul.f32 0.25, %v795_v35 }
 0x336   : > { %v814_v28 = vmul.f32 0.25, %v798_v33 }
 0x337   : > { %v827_v5 = vmul.f32 %v4491_v4, %v811_v46  ;;  %v1037_v4 = vmul.f32 1.442695, %v1009_v63  ;;  %v5341_v63 = vld [vmem:[#allocation14_spill] sm:$0xff] }
 0x338   : > { %v830_v17 = vmul.f32 %v4471_v47, %v814_v28  ;;  %v5344_v28 = vld [vmem:[#allocation15_spill] sm:$0xff] }
 0x339   : > { %3029 = vmatprep.mubr.f32.mxu1 %v827_v5  ;;  %v1011_v5 = vsub.f32 %v4310_v40, %v4505_v2  ;;  %v5339_v40 = vld [vmem:[#allocation3_spill] sm:$0xff]  ;;  %v5340_v2 = vld [vmem:[#allocation41_spill] sm:$0xff] }
 0x33a   : > { %v3347_v57 = vpop.eup %3346  ;;  %3030 = vmatmul.mubr.f32.gmra.mxu1 %v828_v38  ;;  %v1692_v33 = vsub.f32 %v5341_v63, %v5340_v2 }
 0x33b   : > { %v765_v1 = vmul.f32 %v3347_v57, %v730_v30  ;;  %1071 = vadd.xlane.f32.xlu0 %v4579_v21  ;;  %v3349_v36 = vpop.eup %3348  ;;  %v1041_v39 = vmul.f32 1.442695, %v1011_v5 }
 0x33c   : > { %v734_v27 = vpop.xlane.xlu1 %733  ;;  %v768_v48 = vmul.f32 %v3349_v36, %v736_v6  ;;  %v5336_v6 = vld [vmem:[#allocation42_spill] sm:$0xff] }
 0x33d   : > { %v781_v42 = vsub.f32 2.0, %v765_v1  ;;  %3350 = vrcp.f32 %v734_v27  ;;  %v1012_v35 = vsub.f32 %v5336_v6, %v4507_v32  ;;  %v5338_v1 = vld [vmem:[#allocation4_spill] sm:$0xff]  ;;  %v5351_v6 = vld [vmem:[#allocation30_spill] sm:$0xff] }
 0x33e   : > { %3352 = vpow2.f32 %v1037_v4  ;;  %v784_v53 = vsub.f32 2.0, %v768_v48  ;;  %v5343_v4 = vld [vmem:[#allocation5_spill] sm:$0xff] }
 0x33f   : > { %v797_v25 = vmul.f32 %v3347_v57, %v781_v42  ;;  %v1043_v49 = vmul.f32 1.442695, %v1012_v35  ;;  %v5342_v42 = vld [vmem:[#allocation24_spill] sm:$0xff]  ;;  %v1695_v35 = vsub.f32 %v5351_v6, %v4403_v45  ;;  %v5354_v45 = vld [vmem:[#allocation18_spill] sm:$0xff] }
 0x340   : > { %v1212_v62 = vpop.permute.xlu1 %1211  ;;  %v800_v30 = vmul.f32 %v3349_v36, %v784_v53 }
 0x341   : > { %v813_v20 = vmul.f32 0.25, %v797_v25  ;;  %2934 = vmatprep.subr.mxu0 %v1212_v62  ;;  %3354 = vpow2.f32 %v1043_v49  ;;  %v1693_v25 = vsub.f32 %v5342_v42, %v4362_v23  ;;  %v5355_v42 = vld [vmem:[#allocation36_spill] sm:$0xff] }
 0x342   : > { %2935 = vmatpush3.msra.mxu0 %v1212_v62  ;;  %v816_v16 = vmul.f32 0.25, %v800_v30  ;;  %3356 = vpow2.f32 %v1041_v39  ;;  %v1694_v62 = vsub.f32 %v5344_v28, %v4299_v8  ;;  %v1715_v39 = vmul.f32 1.442695, %v1695_v35  ;;  %v5361_v35 = vld [vmem:[#allocation13_spill] sm:$0xff] }
 0x343   : > { %2936 = vmatprep.subr.mxu0 %v1210_v18  ;;  %v829_v55 = vmul.f32 %v4502_v44, %v813_v20  ;;  %v1711_v36 = vmul.f32 1.442695, %v1693_v25  ;;  %v1697_v25 = vsub.f32 %v5355_v42, %v4447_v60  ;;  %v5358_v60 = vld [vmem:[#allocation12_spill] sm:$0xff] }
 0x344   : > { %2937 = vmatpush3.msra.mxu0 %v1210_v18  ;;  %v832_v47 = vmul.f32 %v4496_v19, %v816_v16  ;;  %v1713_v20 = vmul.f32 1.442695, %v1694_v62  ;;  %v5345_v18 = vld [vmem:[#allocation20_spill] sm:$0xff] }
 0x345   : > { %3032 = vmatprep.mubr.f32.mxu1 %v829_v55  ;;  %v1691_v55 = vsub.f32 %v5345_v18, %v4341_v34  ;;  %v1719_v62 = vmul.f32 1.442695, %v1697_v25 }
 0x346   : > { %3033 = vmatmul.mubr.f32.gmra.mxu1 %v830_v17 }
 0x347   : > { %v1707_v23 = vmul.f32 1.442695, %v1691_v55 }
 0x34a   : > { %v3351_v9 = vpop.eup %3350 }
 0x34b   : > { %v767_v0 = vmul.f32 %v3351_v9, %v734_v27  ;;  %v4586_v11 = vpop.eup %3352  ;;  %v1709_v27 = vmul.f32 1.442695, %v1692_v33 }
 0x34d   : > { %v783_v13 = vsub.f32 2.0, %v767_v0  ;;  %3358 = vpow2.f32 %v1709_v27 }
 0x34e   : > { %v4597_v46 = vpop.eup %3354  ;;  %3360 = vpow2.f32 %v1711_v36 }
 0x34f   : > { %v799_v58 = vmul.f32 %v3351_v9, %v783_v13  ;;  %v4606_v57 = vpop.eup %3356  ;;  %3362 = vpow2.f32 %v1713_v20  ;;  %v5349_v13 = vld [vmem:[#allocation2_spill] sm:$0xff] }
 0x350   : > { %3364 = vpow2.f32 %v1707_v23  ;;  %v5359_v23 = vld [vmem:[#allocation53_spill] sm:$0xff] }
 0x351   : > { %v815_v31 = vmul.f32 0.25, %v799_v58  ;;  %1197 = vrot.lane.b32.xlu0 %v5335_v3, %s3530_s26  ;;  %v5350_v58 = vld [vmem:[#allocation16_spill] sm:$0xff] }
 0x352   : > { %1069 = vadd.xlane.f32.xlu1 %v4586_v11  ;;  %v1696_v16 = vsub.f32 %v5350_v58, %v4322_v43 }
 0x353   : > { %v831_v44 = vmul.f32 %v4515_v41, %v815_v31 }
 0x354   : > { %v1717_v31 = vmul.f32 1.442695, %v1696_v16 }
 0x355   : > { %3035 = vmatprep.mubr.f32.mxu1 %v831_v44 }
 0x356   : > { %3036 = vmatmul.mubr.f32.gmra.mxu1 %v832_v47  ;;  %3366 = vpow2.f32 %v1717_v31 }
 0x357   : > { %3368 = vpow2.f32 %v1715_v39 }
 0x35a   : > { %v4602_v41 = vpop.xlane.xlu0 %1063  ;;  %v4627_v53 = vpop.eup %3358 }
 0x35b   : > { %5346 = vst [vmem:[#allocation8_spill] sm:$0xff] %v4627_v53  ;;  %v4630_v0 = vpop.eup %3360 }
 0x35c   : > { %5347 = vst [vmem:[#allocation9_spill] sm:$0xff] %v4630_v0  ;;  %v4633_v34 = vpop.eup %3362 }
 0x35d   : > { %5348 = vst [vmem:[#allocation6_spill] sm:$0xff] %v4633_v34  ;;  %v4636_v30 = vpop.eup %3364 }
 0x35e   : > { %v1206_v32 = vpop.permute.xlu0 %1205 }
 0x363   : > { %1199 = vrot.lane.b32.xlu1 %v5337_v24, %s3530_s26  ;;  %v4653_v43 = vpop.eup %3366 }
 0x364   : > { %5352 = vst [vmem:[#allocation42_spill] sm:$0xff] %v4653_v43 }
 0x370   : > { %1075 = vadd.xlane.f32.xlu0 %v4597_v46 }
 0x371   : > { %v4604_v19 = vpop.xlane.xlu1 %1061 }
 0x375   : > { %v1208_v38 = vpop.permute.xlu1 %1207 }
 0x376   : > { %2938 = vmatprep.subr.mxu0 %v1208_v38 }
 0x377   : > { %2939 = vmatpush3.msra.mxu0 %v1208_v38  ;;  %v4656_v38 = vpop.eup %3368 }
 0x378   : > { %2940 = vmatprep.subr.mxu0 %v1206_v32  ;;  %5353 = vst [vmem:[#allocation7_spill] sm:$0xff] %v4656_v38 }
 0x379   : > { %2941 = vmatpush3.msra.mxu0 %v1206_v32  ;;  %v1698_v32 = vsub.f32 %v5354_v45, %v4337_v61 }
 0x37b   : > { %v1721_v2 = vmul.f32 1.442695, %v1698_v32 }
 0x37d   : > { %3370 = vpow2.f32 %v1721_v2 }
 0x37e   : > { %3372 = vpow2.f32 %v1719_v62 }
 0x37f   : > { %3374 = vrcp.f32 %v4529_v26 }
 0x380   : > { %3376 = vrcp.f32 %v4540_v7 }
 0x381   : > { %3378 = vrcp.f32 %v4538_v22 }
 0x382   : > { %3380 = vrcp.f32 %v4551_v37 }
 0x383   : > { %3382 = vrcp.f32 %v4542_v29 }
 0x384   : > { %3384 = vrcp.f32 %v4564_v12 }
 0x385   : > { %3386 = vrcp.f32 %v4549_v14 }
 0x386   : > { %1193 = vrot.lane.b32.xlu0 %v5338_v1, %s3530_s26  ;;  %3388 = vrcp.f32 %v4604_v19 }
 0x387   : > { %1073 = vadd.xlane.f32.xlu1 %v4606_v57  ;;  %3390 = vrcp.f32 %v4602_v41 }
 0x38a   : > { %1191 = vrot.lane.b32.xlu0 %v5339_v40, %s3530_s26  ;;  %v4671_v61 = vpop.eup %3370 }
 0x38b   : > { %5356 = vst [vmem:[#allocation4_spill] sm:$0xff] %v4671_v61  ;;  %v4674_v20 = vpop.eup %3372 }
 0x38c   : > { %5357 = vst [vmem:[#allocation3_spill] sm:$0xff] %v4674_v20  ;;  %v3375_v18 = vpop.eup %3374 }
 0x38d   : > { %v3377_v55 = vpop.eup %3376  ;;  %v1094_v58 = vmul.f32 %v3375_v18, %v4529_v26 }
 0x38e   : > { %v3379_v31 = vpop.eup %3378  ;;  %v1095_v6 = vmul.f32 %v3377_v55, %v4540_v7 }
 0x38f   : > { %v4623_v48 = vpop.xlane.xlu0 %1067  ;;  %v1110_v39 = vsub.f32 2.0, %v1094_v58  ;;  %v1096_v45 = vmul.f32 %v3379_v31, %v4538_v22 }
 0x390   : > { %v1111_v32 = vsub.f32 2.0, %v1095_v6 }
 0x391   : > { %v1126_v42 = vmul.f32 %v3375_v18, %v1110_v39 }
 0x393   : > { %v1202_v8 = vpop.permute.xlu0 %1201 }
 0x398   : > { %1195 = vrot.lane.b32.xlu1 %v5343_v4, %s3530_s26 }
 0x3a6   : > { %v4625_v17 = vpop.xlane.xlu1 %1065 }
 0x3a7   : > { %3392 = vrcp.f32 %v4625_v17 }
 0x3a8   : > { %3394 = vrcp.f32 %v4623_v48 }
 0x3a9   : > { %1741 = vadd.xlane.f32.xlu0 %v4627_v53 }
 0x3aa   : > { %v1204_v9 = vpop.permute.xlu1 %1203 }
 0x3ab   : > { %2942 = vmatprep.subr.mxu0 %v1204_v9 }
 0x3ac   : > { %2943 = vmatpush3.msra.mxu0 %v1204_v9  ;;  %v5360_v9 = vld [vmem:[#allocation25_spill] sm:$0xff] }
 0x3ad   : > { %1743 = vadd.xlane.f32.xlu0 %v4630_v0  ;;  %2944 = vmatprep.subr.mxu0 %v1202_v8 }
 0x3ae   : > { %2945 = vmatpush3.msra.mxu0 %v1202_v8  ;;  %v1700_v8 = vsub.f32 %v5360_v9, %v5359_v23 }
 0x3b1   : > { %1745 = vadd.xlane.f32.xlu0 %v4633_v34 }
 0x3bc   : > { %1739 = vadd.xlane.f32.xlu1 %v4636_v30 }
 0x3c4   : > { %v4647_v44 = vpop.xlane.xlu0 %1071 }
 0x3c7   : > { %1897 = vrot.lane.b32.xlu0 %v3745_v56, %s3531_s27 }
 0x3c8   : > { %v1198_v5 = vpop.permute.xlu0 %1197 }
 0x3cd   : > { %1189 = vrot.lane.b32.xlu1 %v5349_v13, %s3530_s26 }
 0x3d1   : > { %1895 = vrot.lane.b32.xlu1 %v3741_v54, %s3531_s27 }
 0x3db   : > { %v4649_v47 = vpop.xlane.xlu1 %1069 }
 0x3dc   : > { %3396 = vrcp.f32 %v4649_v47 }
 0x3df   : > { %v1200_v49 = vpop.permute.xlu1 %1199 }
 0x3e0   : > { %2946 = vmatprep.subr.mxu0 %v1200_v49 }
 0x3e1   : > { %2947 = vmatpush3.msra.mxu0 %v1200_v49  ;;  %v3381_v49 = vpop.eup %3380 }
 0x3e2   : > { %2948 = vmatprep.subr.mxu0 %v1198_v5  ;;  %v3383_v26 = vpop.eup %3382  ;;  %v1097_v2 = vmul.f32 %v3381_v49, %v4551_v37  ;;  %v1142_v37 = vmul.f32 0.25, %v1126_v42  ;;  %v5363_v42 = vld [vmem:[#allocation37_spill] sm:$0xff] }
 0x3e3   : > { %2949 = vmatpush3.msra.mxu0 %v1198_v5  ;;  %v1725_v5 = vmul.f32 1.442695, %v1700_v8  ;;  %v3385_v7 = vpop.eup %3384  ;;  %v1098_v62 = vmul.f32 %v3383_v26, %v4542_v29 }
 0x3e4   : > { %v3387_v25 = vpop.eup %3386  ;;  %v1113_v23 = vsub.f32 2.0, %v1097_v2  ;;  %v1099_v9 = vmul.f32 %v3385_v7, %v4564_v12  ;;  %v5362_v2 = vld [vmem:[#allocation69_spill] sm:$0xff] }
 0x3e5   : > { %3398 = vpow2.f32 %v1725_v5  ;;  %v3389_v22 = vpop.eup %3388  ;;  %v1100_v8 = vmul.f32 %v3387_v25, %v4549_v14  ;;  %v1114_v39 = vsub.f32 2.0, %v1098_v62  ;;  %v1699_v14 = vsub.f32 %v5363_v42, %v5362_v2 }
 0x3e6   : > { %1749 = vadd.xlane.f32.xlu0 %v4653_v43  ;;  %3400 = vrcp.f32 %v4647_v44  ;;  %v3391_v18 = vpop.eup %3390  ;;  %v1101_v29 = vmul.f32 %v3389_v22, %v4604_v19 }
 0x3e8   : > { %v1117_v62 = vsub.f32 2.0, %v1101_v29 }
 0x3f5   : > { %1747 = vadd.xlane.f32.xlu1 %v4656_v38  ;;  %v5364_v38 = vld [vmem:[#allocation57_spill] sm:$0xff] }
 0x3f9   : > { %v4665_v63 = vpop.xlane.xlu0 %1075 }
 0x3fc   : > { %1891 = vrot.lane.b32.xlu0 %v3729_v50, %s3531_s27 }
 0x3fd   : > { %v1194_v27 = vpop.permute.xlu0 %1193 }
 0x401   : > { %v1192_v36 = vpop.permute.xlu0 %1191 }
 0x406   : > { %1893 = vrot.lane.b32.xlu1 %v3735_v52, %s3531_s27 }
 0x410   : > { %v4667_v33 = vpop.xlane.xlu1 %1073 }
 0x411   : > { %3402 = vrcp.f32 %v4667_v33 }
 0x412   : > { %3404 = vrcp.f32 %v4665_v63 }
 0x414   : > { %v1196_v28 = vpop.permute.xlu1 %1195 }
 0x415   : > { %2950 = vmatprep.subr.mxu0 %v1196_v28 }
 0x416   : > { %2951 = vmatpush3.msra.mxu0 %v1196_v28  ;;  %v1112_v28 = vsub.f32 2.0, %v1096_v45  ;;  %v1115_v45 = vsub.f32 2.0, %v1099_v9 }
 0x417   : > { %2952 = vmatprep.subr.mxu0 %v1194_v27 }
 0x418   : > { %2953 = vmatpush3.msra.mxu0 %v1194_v27  ;;  %v1128_v5 = vmul.f32 %v3379_v31, %v1112_v28  ;;  %v1158_v31 = vmul.f32 %v5364_v38, %v1142_v37  ;;  %v1130_v28 = vmul.f32 %v3383_v26, %v1114_v39 }
 0x419   : > { %2954 = vmatprep.subr.mxu0 %v1192_v36 }
 0x41a   : > { %2955 = vmatpush3.msra.mxu0 %v1192_v36  ;;  %v1127_v36 = vmul.f32 %v3377_v55, %v1111_v32  ;;  %v1129_v55 = vmul.f32 %v3381_v49, %v1113_v23  ;;  %v3393_v32 = vpop.eup %3392  ;;  %v1144_v19 = vmul.f32 0.25, %v1128_v5  ;;  %v1131_v49 = vmul.f32 %v3385_v7, %v1115_v45 }
 0x41b   : > { %1753 = vadd.xlane.f32.xlu0 %v4671_v61  ;;  %v1116_v61 = vsub.f32 2.0, %v1100_v8  ;;  %v3395_v34 = vpop.eup %3394  ;;  %v1103_v23 = vmul.f32 %v3393_v32, %v4625_v17  ;;  %v1146_v37 = vmul.f32 0.25, %v1130_v28  ;;  %v1133_v7 = vmul.f32 %v3389_v22, %v1117_v62 }
 0x41c   : > { %v1143_v12 = vmul.f32 0.25, %v1127_v36  ;;  %v5365_v36 = vld [vmem:[#allocation62_spill] sm:$0xff]  ;;  %v1145_v53 = vmul.f32 0.25, %v1129_v55  ;;  %v3397_v2 = vpop.eup %3396  ;;  %v1104_v17 = vmul.f32 %v3395_v34, %v4623_v48  ;;  %v1147_v29 = vmul.f32 0.25, %v1131_v49 }
 0x41d   : > { %v1132_v8 = vmul.f32 %v3387_v25, %v1116_v61  ;;  %v4721_v26 = vpop.eup %3398  ;;  %v1119_v55 = vsub.f32 2.0, %v1103_v23  ;;  %v1105_v45 = vmul.f32 %v3397_v2, %v4649_v47  ;;  %v5367_v61 = vld [vmem:[#allocation67_spill] sm:$0xff]  ;;  %v1149_v48 = vmul.f32 0.25, %v1133_v7 }
 0x41e   : > { %v1159_v0 = vmul.f32 %v5365_v36, %v1143_v12  ;;  %v3401_v39 = vpop.eup %3400  ;;  %v1120_v12 = vsub.f32 2.0, %v1104_v17 }
 0x41f   : > { %v3403_v25 = vpop.eup %3402  ;;  %v1121_v47 = vsub.f32 2.0, %v1105_v45 }
 0x420   : > { %v3405_v62 = vpop.eup %3404  ;;  %v1107_v49 = vmul.f32 %v3403_v25, %v4667_v33 }
 0x421   : > { %v1137_v17 = vmul.f32 %v3397_v2, %v1121_v47 }
 0x42a   : > { %1751 = vadd.xlane.f32.xlu1 %v4674_v20  ;;  %v1102_v20 = vmul.f32 %v3391_v18, %v4602_v41  ;;  %v1723_v41 = vmul.f32 1.442695, %v1699_v14  ;;  %v1106_v14 = vmul.f32 %v3401_v39, %v4647_v44  ;;  %v5371_v44 = vld [vmem:[#allocation80_spill] sm:$0xff] }
 0x42b   : > { %v1165_v7 = vmul.f32 %v5371_v44, %v1149_v48 }
 0x42c   : > { %v1118_v42 = vsub.f32 2.0, %v1102_v20  ;;  %v1161_v20 = vmul.f32 %v5367_v61, %v1145_v53  ;;  %v5369_v53 = vld [vmem:[#allocation73_spill] sm:$0xff]  ;;  %v1153_v61 = vmul.f32 0.25, %v1137_v17  ;;  %v5382_v17 = vld [vmem:[#allocation19_spill] sm:$0xff] }
 0x42d   : > { %v1163_v23 = vmul.f32 %v5369_v53, %v1147_v29  ;;  %v5378_v53 = vld [vmem:[#allocation40_spill] sm:$0xff] }
 0x42e   : > { %v1134_v22 = vmul.f32 %v3391_v18, %v1118_v42  ;;  %v1122_v42 = vsub.f32 2.0, %v1106_v14 }
 0x430   : > { %v1150_v36 = vmul.f32 0.25, %v1134_v22 }
 0x431   : > { %1887 = vrot.lane.b32.xlu0 %v5358_v60, %s3531_s27 }
 0x432   : > { %v4691_v16 = vpop.xlane.xlu0 %1741 }
 0x436   : > { %v4701_v27 = vpop.xlane.xlu0 %1743 }
 0x43a   : > { %v4708_v58 = vpop.xlane.xlu0 %1745 }
 0x43b   : > { %1889 = vrot.lane.b32.xlu1 %v5361_v35, %s3531_s27 }
 0x43e   : > { %v1898_v9 = vpop.permute.xlu0 %1897 }
 0x445   : > { %v4710_v6 = vpop.xlane.xlu1 %1739 }
 0x446   : > { %3406 = vrcp.f32 %v4710_v6 }
 0x447   : > { %3408 = vpow2.f32 %v1723_v41  ;;  %v5370_v41 = vld [vmem:[#allocation68_spill] sm:$0xff] }
 0x449   : > { %v1190_v43 = vpop.permute.xlu1 %1189 }
 0x44a   : > { %2956 = vmatprep.subr.mxu0 %v1190_v43 }
 0x44b   : > { %2957 = vmatpush3.msra.mxu0 %v1190_v43  ;;  %v5366_v43 = vld [vmem:[#allocation61_spill] sm:$0xff] }
 0x44c   : > { %2959 = vmatmul.mubr.f32.vlgmr.msra.gmra.mxu0 %v1158_v31  ;;  %3038 = vmatprep.subr.mxu0 %v1898_v9  ;;  %v1160_v5 = vmul.f32 %v5366_v43, %v1144_v19  ;;  %v5368_v31 = vld [vmem:[#allocation66_spill] sm:$0xff]  ;;  %v1135_v19 = vmul.f32 %v3393_v32, %v1119_v55  ;;  %v1123_v32 = vsub.f32 2.0, %v1107_v49  ;;  %v5372_v55 = vld [vmem:[#allocation79_spill] sm:$0xff] }
 0x44d   : > { %v1896_v38 = vpop.permute.xlu1 %1895  ;;  %2961 = vmatprep.mubr.f32.mxu0 %v1159_v0  ;;  %3039 = vmatpush3.msra.mxu0 %v1898_v9  ;;  %v1148_v0 = vmul.f32 0.25, %v1132_v8  ;;  %v1162_v28 = vmul.f32 %v5368_v31, %v1146_v37  ;;  %v1136_v8 = vmul.f32 %v3395_v34, %v1120_v12  ;;  %v1166_v45 = vmul.f32 %v5372_v55, %v1150_v36  ;;  %v5376_v49 = vld [vmem:[#allocation11_spill] sm:$0xff] }
 0x44e   : > { %3040 = vmatprep.subr.mxu0 %v1896_v38  ;;  %v1151_v37 = vmul.f32 0.25, %v1135_v19  ;;  %v5375_v19 = vld [vmem:[#allocation31_spill] sm:$0xff] }
 0x44f   : > { %3041 = vmatpush3.msra.mxu0 %v1896_v38  ;;  %v1164_v18 = vmul.f32 %v5370_v41, %v1148_v0  ;;  %v1108_v38 = vmul.f32 %v3405_v62, %v4665_v63  ;;  %v1152_v33 = vmul.f32 0.25, %v1136_v8 }
 0x450   : > { %1757 = vadd.xlane.f32.xlu0 %v4721_v26  ;;  %2962 = vmatmul.mubr.f32.gmra.mxu0 %v1160_v5  ;;  %v1138_v5 = vmul.f32 %v3401_v39, %v1122_v42  ;;  %v1167_v0 = vmul.f32 %v4562_v15, %v1151_v37  ;;  %v1169_v39 = vmul.f32 %v4586_v11, %v1153_v61  ;;  %v5374_v11 = vld [vmem:[#allocation59_spill] sm:$0xff]  ;;  %v5379_v42 = vld [vmem:[#allocation48_spill] sm:$0xff]  ;;  %v5381_v37 = vld [vmem:[#allocation49_spill] sm:$0xff] }
 0x451   : > { %2964 = vmatprep.mubr.f32.mxu0 %v1161_v20  ;;  %v1124_v29 = vsub.f32 2.0, %v1108_v38  ;;  %v1139_v20 = vmul.f32 %v3403_v25, %v1123_v32  ;;  %v1702_v47 = vsub.f32 %v5375_v19, %v5374_v11  ;;  %v5380_v38 = vld [vmem:[#allocation17_spill] sm:$0xff]  ;;  %v2247_v32 = vsub.f32 %v5382_v17, %v5381_v37  ;;  %v5390_v11 = vld [vmem:[#allocation27_spill] sm:$0xff] }
 0x452   : > { %v1154_v2 = vmul.f32 0.25, %v1138_v5  ;;  %v2246_v44 = vsub.f32 %v5380_v38, %v5379_v42  ;;  %v5384_v5 = vld [vmem:[#allocation43_spill] sm:$0xff]  ;;  %v5393_v38 = vld [vmem:[#allocation78_spill] sm:$0xff] }
 0x453   : > { %v3407_v9 = vpop.eup %3406  ;;  %v1140_v22 = vmul.f32 %v3405_v62, %v1124_v29  ;;  %v1155_v48 = vmul.f32 0.25, %v1139_v20  ;;  %v5385_v20 = vld [vmem:[#allocation75_spill] sm:$0xff] }
 0x454   : > { %2965 = vmatmul.mubr.f32.gmra.mxu0 %v1162_v28  ;;  %v1787_v43 = vmul.f32 %v3407_v9, %v4710_v6  ;;  %v4738_v63 = vpop.eup %3408  ;;  %v1168_v6 = vmul.f32 %v4554_v10, %v1152_v33  ;;  %v1170_v14 = vmul.f32 %v4579_v21, %v1154_v2  ;;  %v5373_v28 = vld [vmem:[#allocation10_spill] sm:$0xff]  ;;  %v1729_v21 = vmul.f32 1.442695, %v1702_v47 }
 0x455   : > { %2967 = vmatprep.mubr.f32.mxu0 %v1163_v23  ;;  %v1156_v25 = vmul.f32 0.25, %v1140_v22  ;;  %v1171_v31 = vmul.f32 %v4606_v57, %v1155_v48  ;;  %v5377_v57 = vld [vmem:[#allocation72_spill] sm:$0xff]  ;;  %v5383_v33 = vld [vmem:[#allocation74_spill] sm:$0xff] }
 0x456   : > { %v1803_v34 = vsub.f32 2.0, %v1787_v43  ;;  %3410 = vpow2.f32 %v1729_v21  ;;  %v1701_v23 = vsub.f32 %v5378_v53, %v5377_v57  ;;  %v2270_v43 = vmul.f32 1.442695, %v2247_v32  ;;  %v5391_v53 = vld [vmem:[#allocation76_spill] sm:$0xff] }
 0x457   : > { %v1172_v10 = vmul.f32 %v4597_v46, %v1156_v25  ;;  %v1703_v29 = vsub.f32 %v5384_v5, %v5383_v33  ;;  %v5395_v5 = vld [vmem:[#allocation56_spill] sm:$0xff] }
 0x458   : > { %2968 = vmatmul.mubr.f32.gmra.mxu0 %v1164_v18  ;;  %v1819_v12 = vmul.f32 %v3407_v9, %v1803_v34  ;;  %v1727_v46 = vmul.f32 1.442695, %v1701_v23  ;;  %v5386_v34 = vld [vmem:[#allocation45_spill] sm:$0xff]  ;;  %v5392_v23 = vld [vmem:[#allocation46_spill] sm:$0xff] }
 0x459   : > { %2970 = vmatprep.mubr.f32.mxu0 %v1165_v7  ;;  %v2268_v7 = vmul.f32 1.442695, %v2246_v44  ;;  %v1731_v61 = vmul.f32 1.442695, %v1703_v29  ;;  %v5394_v44 = vld [vmem:[#allocation47_spill] sm:$0xff]  ;;  %v5396_v29 = vld [vmem:[#allocation28_spill] sm:$0xff] }
 0x45a   : > { %v1835_v15 = vmul.f32 0.25, %v1819_v12  ;;  %3412 = vpow2.f32 %v1727_v46  ;;  %v1705_v46 = vsub.f32 %v5392_v23, %v5391_v53  ;;  %v5403_v53 = vld [vmem:[#allocation21_spill] sm:$0xff] }
 0x45b   : > { %3414 = vpow2.f32 %v2268_v7  ;;  %v1706_v7 = vsub.f32 %v5394_v44, %v5393_v38 }
 0x45c   : > { %2971 = vmatmul.mubr.f32.gmra.mxu0 %v1166_v45  ;;  %v1851_v62 = vmul.f32 %v4636_v30, %v1835_v15  ;;  %3416 = vpow2.f32 %v2270_v43  ;;  %v5388_v15 = vld [vmem:[#allocation22_spill] sm:$0xff]  ;;  %v1735_v42 = vmul.f32 1.442695, %v1705_v46 }
 0x45d   : > { %2973 = vmatprep.mubr.f32.mxu0 %v1167_v0  ;;  %v1704_v0 = vsub.f32 %v5386_v34, %v5385_v20  ;;  %3418 = vpow2.f32 %v1731_v61  ;;  %v1737_v17 = vmul.f32 1.442695, %v1706_v7  ;;  %v2250_v61 = vsub.f32 %v5396_v29, %v5395_v5  ;;  %v5397_v20 = vld [vmem:[#allocation52_spill] sm:$0xff]  ;;  %v5398_v34 = vld [vmem:[#allocation23_spill] sm:$0xff] }
 0x45e   : > { %v5406_v5 = vld [vmem:[#allocation35_spill] sm:$0xff] }
 0x45f   : > { %1755 = vadd.xlane.f32.xlu1 %v4738_v63  ;;  %v1733_v48 = vmul.f32 1.442695, %v1704_v0  ;;  %v2241_v0 = vsub.f32 %v5398_v34, %v5397_v20 }
 0x460   : > { %2974 = vmatmul.mubr.f32.gmra.mxu0 %v1168_v6 }
 0x461   : > { %2976 = vmatprep.mubr.f32.mxu0 %v1169_v39  ;;  %3420 = vpow2.f32 %v1733_v48 }
 0x463   : > { %v4759_v30 = vpop.eup %3410 }
 0x464   : > { %2977 = vmatmul.mubr.f32.gmra.mxu0 %v1170_v14  ;;  %v5387_v14 = vld [vmem:[#allocation51_spill] sm:$0xff] }
 0x465   : > { %2979 = vmatprep.mubr.f32.mxu0 %v1171_v31  ;;  %v2248_v31 = vsub.f32 %v5388_v15, %v5387_v14  ;;  %v2258_v14 = vmul.f32 1.442695, %v2241_v0  ;;  %v5400_v15 = vld [vmem:[#allocation33_spill] sm:$0xff] }
 0x466   : > { %1883 = vrot.lane.b32.xlu0 %v5373_v28, %s3531_s27 }
 0x467   : > { %v4762_v8 = vpop.eup %3412 }
 0x468   : > { %2980 = vmatmul.mubr.f32.gmra.mxu0 %v1172_v10  ;;  %v4781_v22 = vpop.eup %3414  ;;  %v2272_v10 = vmul.f32 1.442695, %v2248_v31 }
 0x469   : > { %3070 = vmatprep.mubr.f32.mxu0 %v1851_v62  ;;  %v4784_v12 = vpop.eup %3416  ;;  %v5389_v62 = vld [vmem:[#allocation55_spill] sm:$0xff] }
 0x46a   : > { %v4787_v39 = vpop.eup %3418  ;;  %v2249_v19 = vsub.f32 %v5390_v11, %v5389_v62  ;;  %3422 = vpow2.f32 %v2272_v10 }
 0x46c   : > { %v2274_v47 = vmul.f32 1.442695, %v2249_v19 }
 0x46e   : > { %v4790_v25 = vpop.eup %3420  ;;  %3424 = vpow2.f32 %v2274_v47  ;;  %v5402_v47 = vld [vmem:[#allocation50_spill] sm:$0xff] }
 0x46f   : > { %v4755_v9 = vpop.xlane.xlu0 %1749  ;;  %3426 = vpow2.f32 %v1735_v42  ;;  %v2240_v23 = vsub.f32 %v5403_v53, %v5402_v47  ;;  %v5410_v53 = vld [vmem:[#allocation54_spill] sm:$0xff] }
 0x470   : > { %1885 = vrot.lane.b32.xlu1 %v5376_v49, %s3531_s27  ;;  %3428 = vpow2.f32 %v1737_v17  ;;  %v5405_v17 = vld [vmem:[#allocation65_spill] sm:$0xff] }
 0x471   : > { %v2252_v29 = vsub.f32 %v5406_v5, %v5405_v17 }
 0x473   : > { %v1892_v18 = vpop.permute.xlu0 %1891 }
 0x477   : > { %v4809_v37 = vpop.eup %3422 }
 0x47b   : > { %v4812_v32 = vpop.eup %3424 }
 0x47c   : > { %v4815_v43 = vpop.eup %3426 }
 0x47d   : > { %v4818_v33 = vpop.eup %3428 }
 0x47e   : > { %v4757_v36 = vpop.xlane.xlu1 %1747 }
 0x482   : > { %v1894_v41 = vpop.permute.xlu1 %1893 }
 0x483   : > { %3042 = vmatprep.subr.mxu0 %v1894_v41 }
 0x484   : > { %3043 = vmatpush3.msra.mxu0 %v1894_v41 }
 0x485   : > { %1761 = vadd.xlane.f32.xlu0 %v4759_v30  ;;  %3044 = vmatprep.subr.mxu0 %v1892_v18 }
 0x486   : > { %3045 = vmatpush3.msra.mxu0 %v1892_v18 }
 0x494   : > { %1759 = vadd.xlane.f32.xlu1 %v4762_v8 }
 0x49b   : > { %1879 = vrot.lane.b32.xlu0 %v5333_v59, %s3531_s27 }
 0x4a4   : > { %v4775_v55 = vpop.xlane.xlu0 %1753 }
 0x4a5   : > { %1881 = vrot.lane.b32.xlu1 %v5334_v51, %s3531_s27 }
 0x4a8   : > { %v1888_v6 = vpop.permute.xlu0 %1887 }
 0x4b3   : > { %v4777_v45 = vpop.xlane.xlu1 %1751 }
 0x4b7   : > { %v1890_v2 = vpop.permute.xlu1 %1889 }
 0x4b8   : > { %3046 = vmatprep.subr.mxu0 %v1890_v2 }
 0x4b9   : > { %3047 = vmatpush3.msra.mxu0 %v1890_v2  ;;  %v2276_v2 = vmul.f32 1.442695, %v2250_v61 }
 0x4ba   : > { %2300 = vadd.xlane.f32.xlu0 %v4781_v22  ;;  %3048 = vmatprep.subr.mxu0 %v1888_v6 }
 0x4bb   : > { %3049 = vmatpush3.msra.mxu0 %v1888_v6  ;;  %3430 = vpow2.f32 %v2276_v2  ;;  %v2280_v2 = vmul.f32 1.442695, %v2252_v29 }
 0x4bc   : > { %3432 = vpow2.f32 %v2258_v14  ;;  %v5407_v14 = vld [vmem:[#allocation70_spill] sm:$0xff] }
 0x4be   : > { %2302 = vadd.xlane.f32.xlu0 %v4784_v12 }
 0x4c8   : > { %v4839_v19 = vpop.eup %3430 }
 0x4c9   : > { %1763 = vadd.xlane.f32.xlu1 %v4787_v39  ;;  %5401 = vst [vmem:[#allocation41_spill] sm:$0xff] %v4839_v19  ;;  %v4844_v46 = vpop.eup %3432 }
 0x4cd   : > { %1765 = vadd.xlane.f32.xlu1 %v4790_v25 }
 0x4d4   : > { %1875 = vrot.lane.b32.xlu0 %v5335_v3, %s3531_s27 }
 0x4d9   : > { %v4801_v21 = vpop.xlane.xlu0 %1757 }
 0x4dd   : > { %v1884_v18 = vpop.permute.xlu0 %1883 }
 0x4de   : > { %1877 = vrot.lane.b32.xlu1 %v5337_v24, %s3531_s27 }
 0x4e8   : > { %v4803_v57 = vpop.xlane.xlu1 %1755 }
 0x4ec   : > { %v1886_v41 = vpop.permute.xlu1 %1885 }
 0x4ed   : > { %3050 = vmatprep.subr.mxu0 %v1886_v41 }
 0x4ee   : > { %3051 = vmatpush3.msra.mxu0 %v1886_v41 }
 0x4ef   : > { %3052 = vmatprep.subr.mxu0 %v1884_v18 }
 0x4f0   : > { %3053 = vmatpush3.msra.mxu0 %v1884_v18 }
 0x4f3   : > { %2304 = vadd.xlane.f32.xlu0 %v4809_v37 }
 0x4f7   : > { %2306 = vadd.xlane.f32.xlu0 %v4812_v32 }
 0x502   : > { %1767 = vadd.xlane.f32.xlu1 %v4815_v43 }
 0x506   : > { %1769 = vadd.xlane.f32.xlu1 %v4818_v33 }
 0x50d   : > { %2446 = vrot.lane.b32.xlu0 %v3745_v56, %s3532_s28  ;;  %v5399_v56 = vld [vmem:[#allocation63_spill] sm:$0xff] }
 0x50e   : > { %v4831_v6 = vpop.xlane.xlu0 %1761  ;;  %v2251_v31 = vsub.f32 %v5400_v15, %v5399_v56  ;;  %v5408_v56 = vld [vmem:[#allocation38_spill] sm:$0xff] }
 0x510   : > { %v2278_v62 = vmul.f32 1.442695, %v2251_v31 }
 0x512   : > { %v1880_v11 = vpop.permute.xlu0 %1879  ;;  %3434 = vpow2.f32 %v2278_v62 }
 0x517   : > { %1873 = vrot.lane.b32.xlu1 %v5343_v4, %s3531_s27 }
 0x51b   : > { %1871 = vrot.lane.b32.xlu1 %v5338_v1, %s3531_s27 }
 0x51d   : > { %v4833_v48 = vpop.xlane.xlu1 %1759 }
 0x51f   : > { %2444 = vrot.lane.b32.xlu1 %v3741_v54, %s3532_s28  ;;  %v2256_v54 = vmul.f32 1.442695, %v2240_v23  ;;  %v4847_v41 = vpop.eup %3434  ;;  %v5411_v23 = vld [vmem:[#allocation26_spill] sm:$0xff] }
 0x520   : > { %5404 = vst [vmem:[#allocation14_spill] sm:$0xff] %v4847_v41 }
 0x521   : > { %v1882_v10 = vpop.permute.xlu1 %1881  ;;  %3436 = vpow2.f32 %v2256_v54  ;;  %v2242_v54 = vsub.f32 %v5411_v23, %v5410_v53 }
 0x522   : > { %3054 = vmatprep.subr.mxu0 %v1882_v10 }
 0x523   : > { %3055 = vmatpush3.msra.mxu0 %v1882_v10 }
 0x524   : > { %3056 = vmatprep.subr.mxu0 %v1880_v11 }
 0x525   : > { %3057 = vmatpush3.msra.mxu0 %v1880_v11 }
 0x52c   : > { %2308 = vadd.xlane.f32.xlu0 %v4839_v19 }
 0x52e   : > { %v4850_v18 = vpop.eup %3436 }
 0x530   : > { %2290 = vadd.xlane.f32.xlu0 %v4844_v46 }
 0x534   : > { %2310 = vadd.xlane.f32.xlu0 %v4847_v41 }
 0x543   : > { %2288 = vadd.xlane.f32.xlu1 %v4850_v18  ;;  %v2301_v42 = vpop.xlane.xlu0 %2300 }
 0x544   : > { %3438 = vrcp.f32 %v2301_v42 }
 0x545   : > { %3440 = vpow2.f32 %v2280_v2 }
 0x547   : > { %v4861_v34 = vpop.xlane.xlu0 %2302 }
 0x54a   : > { %2442 = vrot.lane.b32.xlu0 %v3735_v52, %s3532_s28  ;;  %v2253_v52 = vsub.f32 %v5408_v56, %v5407_v14  ;;  %v5415_v56 = vld [vmem:[#allocation71_spill] sm:$0xff] }
 0x54b   : > { %v1876_v11 = vpop.permute.xlu0 %1875 }
 0x54c   : > { %v2282_v62 = vmul.f32 1.442695, %v2253_v52  ;;  %v5416_v52 = vld [vmem:[#allocation39_spill] sm:$0xff] }
 0x54e   : > { %3442 = vpow2.f32 %v2282_v62  ;;  %v5417_v62 = vld [vmem:[#allocation77_spill] sm:$0xff] }
 0x551   : > { %v3439_v38 = vpop.eup %3438 }
 0x552   : > { %v2342_v44 = vmul.f32 %v3439_v38, %v2301_v42  ;;  %v4855_v7 = vpop.xlane.xlu1 %1763  ;;  %v4872_v47 = vpop.eup %3440  ;;  %v2260_v42 = vmul.f32 1.442695, %v2242_v54 }
 0x553   : > { %5409 = vst [vmem:[#allocation24_spill] sm:$0xff] %v4872_v47 }
 0x554   : > { %v2358_v61 = vsub.f32 2.0, %v2342_v44  ;;  %1869 = vrot.lane.b32.xlu1 %v5339_v40, %s3531_s27  ;;  %v5414_v44 = vld [vmem:[#allocation29_spill] sm:$0xff]  ;;  %3444 = vpow2.f32 %v2260_v42 }
 0x556   : > { %v2374_v20 = vmul.f32 %v3439_v38, %v2358_v61  ;;  %v4863_v0 = vpop.xlane.xlu1 %1765  ;;  %v5413_v38 = vld [vmem:[#allocation58_spill] sm:$0xff] }
 0x558   : > { %v2390_v15 = vmul.f32 0.25, %v2374_v20  ;;  %1867 = vrot.lane.b32.xlu1 %v5349_v13, %s3531_s27 }
 0x55a   : > { %v1878_v31 = vpop.permute.xlu1 %1877  ;;  %v2406_v10 = vmul.f32 %v4781_v22, %v2390_v15  ;;  %v2254_v15 = vsub.f32 %v5416_v52, %v5415_v56  ;;  %v5423_v52 = vld [vmem:[#allocation64_spill] sm:$0xff] }
 0x55b   : > { %3058 = vmatprep.subr.mxu0 %v1878_v31  ;;  %v4877_v22 = vpop.eup %3442 }
 0x55c   : > { %2440 = vrot.lane.b32.xlu1 %v3729_v50, %s3532_s28  ;;  %3059 = vmatpush3.msra.mxu0 %v1878_v31  ;;  %5412 = vst [vmem:[#allocation5_spill] sm:$0xff] %v4877_v22  ;;  %v2243_v50 = vsub.f32 %v5414_v44, %v5413_v38  ;;  %v5420_v44 = vld [vmem:[#allocation60_spill] sm:$0xff] }
 0x55d   : > { %3135 = vmatprep.mubr.f32.mxu1 %v2406_v10  ;;  %3060 = vmatprep.subr.mxu0 %v1876_v11  ;;  %v2284_v10 = vmul.f32 1.442695, %v2254_v15  ;;  %v5424_v15 = vld [vmem:[#allocation34_spill] sm:$0xff] }
 0x55e   : > { %3061 = vmatpush3.msra.mxu0 %v1876_v11  ;;  %v2262_v17 = vmul.f32 1.442695, %v2243_v50  ;;  %v5418_v11 = vld [vmem:[#allocation44_spill] sm:$0xff] }
 0x55f   : > { %v2255_v53 = vsub.f32 %v5418_v11, %v5417_v62  ;;  %v5421_v50 = vld [vmem:[#allocation32_spill] sm:$0xff] }
 0x560   : > { %3446 = vpow2.f32 %v2262_v17  ;;  %v2244_v17 = vsub.f32 %v5421_v50, %v5420_v44 }
 0x561   : > { %v4884_v29 = vpop.eup %3444  ;;  %3448 = vpow2.f32 %v2284_v10  ;;  %v2286_v23 = vmul.f32 1.442695, %v2255_v53  ;;  %v2245_v10 = vsub.f32 %v5424_v15, %v5423_v52 }
 0x563   : > { %3450 = vpow2.f32 %v2286_v23  ;;  %v2266_v62 = vmul.f32 1.442695, %v2245_v10 }
 0x569   : > { %2312 = vadd.xlane.f32.xlu0 %v4872_v47 }
 0x56d   : > { %2314 = vadd.xlane.f32.xlu0 %v4877_v22  ;;  %v4889_v20 = vpop.eup %3446 }
 0x56e   : > { %v4912_v38 = vpop.eup %3448 }
 0x56f   : > { %5419 = vst [vmem:[#allocation15_spill] sm:$0xff] %v4912_v38 }
 0x570   : > { %v4917_v56 = vpop.eup %3450 }
 0x571   : > { %5422 = vst [vmem:[#allocation20_spill] sm:$0xff] %v4917_v56 }
 0x57c   : > { %v4882_v5 = vpop.xlane.xlu0 %2304 }
 0x580   : > { %2292 = vadd.xlane.f32.xlu1 %v4884_v29  ;;  %v4887_v61 = vpop.xlane.xlu0 %2306 }
 0x583   : > { %2436 = vrot.lane.b32.xlu0 %v5358_v60, %s3532_s28 }
 0x584   : > { %2294 = vadd.xlane.f32.xlu1 %v4889_v20  ;;  %v4894_v2 = vpop.permute.xlu0 %2446 }
 0x585   : > { %3150 = vmatprep.subr.mxu1 %v4894_v2 }
 0x586   : > { %3166 = vmatpush3.msra.mxu1 %v4894_v2 }
 0x58b   : > { %v4898_v14 = vpop.xlane.xlu1 %1767 }
 0x58f   : > { %v4902_v31 = vpop.xlane.xlu1 %1769 }
 0x593   : > { %v1874_v60 = vpop.permute.xlu1 %1873 }
 0x594   : > { %3062 = vmatprep.subr.mxu0 %v1874_v60 }
 0x595   : > { %2438 = vrot.lane.b32.xlu1 %v5361_v35, %s3532_s28  ;;  %3063 = vmatpush3.msra.mxu0 %v1874_v60  ;;  %v2264_v35 = vmul.f32 1.442695, %v2244_v17 }
 0x597   : > { %v1872_v54 = vpop.permute.xlu1 %1871  ;;  %3452 = vpow2.f32 %v2264_v35 }
 0x598   : > { %3064 = vmatprep.subr.mxu0 %v1872_v54  ;;  %3454 = vpow2.f32 %v2266_v62 }
 0x599   : > { %3065 = vmatpush3.msra.mxu0 %v1872_v54  ;;  %3456 = vrcp.f32 %v4691_v16 }
 0x59a   : > { %3458 = vrcp.f32 %v4701_v27 }
 0x59b   : > { %v4908_v42 = vpop.permute.xlu1 %2444  ;;  %3460 = vrcp.f32 %v4708_v58 }
 0x59c   : > { %3151 = vmatprep.subr.mxu1 %v4908_v42  ;;  %3462 = vrcp.f32 %v4757_v36 }
 0x59d   : > { %3167 = vmatpush3.msra.mxu1 %v4908_v42  ;;  %3464 = vrcp.f32 %v4755_v9 }
 0x59e   : > { %3466 = vrcp.f32 %v4777_v45 }
 0x59f   : > { %3468 = vrcp.f32 %v4775_v55 }
 0x5a0   : > { %3470 = vrcp.f32 %v4803_v57 }
 0x5a1   : > { %3472 = vrcp.f32 %v4801_v21 }
 0x5a2   : > { %2316 = vadd.xlane.f32.xlu0 %v4912_v38  ;;  %3474 = vrcp.f32 %v4833_v48 }
 0x5a3   : > { %3476 = vrcp.f32 %v4831_v6 }
 0x5a4   : > { %v4926_v53 = vpop.eup %3452  ;;  %3478 = vrcp.f32 %v4855_v7 }
 0x5a5   : > { %5425 = vst [vmem:[#allocation2_spill] sm:$0xff] %v4926_v53  ;;  %v4933_v23 = vpop.eup %3454  ;;  %3480 = vrcp.f32 %v4863_v0 }
 0x5a6   : > { %2318 = vadd.xlane.f32.xlu0 %v4917_v56  ;;  %5426 = vst [vmem:[#allocation16_spill] sm:$0xff] %v4933_v23  ;;  %v3457_v44 = vpop.eup %3456  ;;  %3482 = vrcp.f32 %v4898_v14 }
 0x5a7   : > { %v3459_v17 = vpop.eup %3458  ;;  %3484 = vrcp.f32 %v4902_v31 }
 0x5a8   : > { %v1789_v35 = vmul.f32 %v3459_v17, %v4701_v27 }
 0x5aa   : > { %v1805_v10 = vsub.f32 2.0, %v1789_v35 }
 0x5ac   : > { %v1821_v22 = vmul.f32 %v3459_v17, %v1805_v10 }
 0x5ae   : > { %v1837_v19 = vmul.f32 0.25, %v1821_v22 }
 0x5b5   : > { %v4924_v11 = vpop.xlane.xlu0 %2308 }
 0x5b9   : > { %2296 = vadd.xlane.f32.xlu1 %v4926_v53  ;;  %v4930_v60 = vpop.xlane.xlu0 %2290 }
 0x5bc   : > { %2432 = vrot.lane.b32.xlu0 %v5373_v28, %s3532_s28  ;;  %v1788_v28 = vmul.f32 %v3457_v44, %v4691_v16 }
 0x5bd   : > { %2298 = vadd.xlane.f32.xlu1 %v4933_v23  ;;  %v4938_v54 = vpop.xlane.xlu0 %2310 }
 0x5be   : > { %v1804_v15 = vsub.f32 2.0, %v1788_v28 }
 0x5c0   : > { %2426 = vrot.lane.b32.xlu0 %v5337_v24, %s3532_s28  ;;  %v3461_v24 = vpop.eup %3460  ;;  %v1820_v38 = vmul.f32 %v3457_v44, %v1804_v15 }
 0x5c1   : > { %v4945_v50 = vpop.permute.xlu0 %2442  ;;  %v3463_v52 = vpop.eup %3462  ;;  %v1790_v62 = vmul.f32 %v3461_v24, %v4708_v58 }
 0x5c2   : > { %3152 = vmatprep.subr.mxu1 %v4945_v50  ;;  %v1791_v56 = vmul.f32 %v3463_v52, %v4757_v36  ;;  %v1836_v23 = vmul.f32 0.25, %v1820_v38 }
 0x5c3   : > { %3168 = vmatpush3.msra.mxu1 %v4945_v50  ;;  %v1806_v47 = vsub.f32 2.0, %v1790_v62 }
 0x5c4   : > { %2422 = vrot.lane.b32.xlu0 %v5343_v4, %s3532_s28  ;;  %v3465_v4 = vpop.eup %3464  ;;  %v1807_v28 = vsub.f32 2.0, %v1791_v56 }
 0x5c5   : > { %v3467_v16 = vpop.eup %3466  ;;  %v1822_v44 = vmul.f32 %v3461_v24, %v1806_v47  ;;  %v5427_v47 = vld [vmem:[#allocation8_spill] sm:$0xff] }
 0x5c6   : > { %v3469_v41 = vpop.eup %3468  ;;  %v1793_v36 = vmul.f32 %v3467_v16, %v4777_v45  ;;  %v1823_v56 = vmul.f32 %v3463_v52, %v1807_v28  ;;  %v1852_v38 = vmul.f32 %v5427_v47, %v1836_v23 }
 0x5c7   : > { %v3471_v58 = vpop.eup %3470  ;;  %v1794_v17 = vmul.f32 %v3469_v41, %v4775_v55  ;;  %v1838_v55 = vmul.f32 0.25, %v1822_v44 }
 0x5c8   : > { %2418 = vrot.lane.b32.xlu0 %v5339_v40, %s3532_s28  ;;  %v1792_v40 = vmul.f32 %v3465_v4, %v4755_v9  ;;  %v3473_v15 = vpop.eup %3472  ;;  %v1795_v10 = vmul.f32 %v3471_v58, %v4803_v57  ;;  %v1839_v57 = vmul.f32 0.25, %v1823_v56 }
 0x5c9   : > { %v3475_v45 = vpop.eup %3474  ;;  %v1810_v24 = vsub.f32 2.0, %v1794_v17  ;;  %v1796_v62 = vmul.f32 %v3473_v15, %v4801_v21 }
 0x5ca   : > { %v1808_v9 = vsub.f32 2.0, %v1792_v40  ;;  %v1811_v40 = vsub.f32 2.0, %v1795_v10  ;;  %v1797_v53 = vmul.f32 %v3475_v45, %v4833_v48  ;;  %v5430_v48 = vld [vmem:[#allocation7_spill] sm:$0xff] }
 0x5cb   : > { %v1826_v21 = vmul.f32 %v3469_v41, %v1810_v24  ;;  %v1855_v56 = vmul.f32 %v5430_v48, %v1839_v57 }
 0x5cc   : > { %v4962_v27 = vpop.xlane.xlu1 %2288  ;;  %v1824_v52 = vmul.f32 %v3465_v4, %v1808_v9  ;;  %v1812_v4 = vsub.f32 2.0, %v1796_v62  ;;  %v1827_v9 = vmul.f32 %v3471_v58, %v1811_v40  ;;  %v1813_v41 = vsub.f32 2.0, %v1797_v53  ;;  %v5431_v53 = vld [vmem:[#allocation42_spill] sm:$0xff]  ;;  %v5433_v40 = vld [vmem:[#allocation4_spill] sm:$0xff] }
 0x5cd   : > { %3486 = vrcp.f32 %v4962_v27  ;;  %v1842_v58 = vmul.f32 0.25, %v1826_v21 }
 0x5ce   : > { %2434 = vrot.lane.b32.xlu1 %v5376_v49, %s3532_s28  ;;  %v1809_v49 = vsub.f32 2.0, %v1793_v36  ;;  %v3477_v36 = vpop.eup %3476  ;;  %3488 = vrcp.f32 %v4861_v34 }
 0x5cf   : > { %v3479_v23 = vpop.eup %3478  ;;  %3490 = vrcp.f32 %v4882_v5 }
 0x5d0   : > { %v1870_v35 = vpop.permute.xlu1 %1869  ;;  %v3481_v10 = vpop.eup %3480  ;;  %3492 = vrcp.f32 %v4930_v60 }
 0x5d1   : > { %3066 = vmatprep.subr.mxu0 %v1870_v35 }
 0x5d2   : > { %2430 = vrot.lane.b32.xlu1 %v5334_v51, %s3532_s28  ;;  %3067 = vmatpush3.msra.mxu0 %v1870_v35  ;;  %v5428_v51 = vld [vmem:[#allocation9_spill] sm:$0xff]  ;;  %v1825_v35 = vmul.f32 %v3467_v16, %v1809_v49  ;;  %v1798_v16 = vmul.f32 %v3477_v36, %v4831_v6  ;;  %v1799_v49 = vmul.f32 %v3479_v23, %v4855_v7 }
 0x5d3   : > { %v1853_v28 = vmul.f32 %v5428_v51, %v1837_v19  ;;  %v1840_v19 = vmul.f32 0.25, %v1824_v52  ;;  %v1828_v6 = vmul.f32 %v3473_v15, %v1812_v4  ;;  %v5432_v52 = vld [vmem:[#allocation3_spill] sm:$0xff] }
 0x5d4   : > { %v1868_v22 = vpop.permute.xlu1 %1867  ;;  %v1814_v47 = vsub.f32 2.0, %v1798_v16  ;;  %v1815_v24 = vsub.f32 2.0, %v1799_v49 }
 0x5d5   : > { %3068 = vmatprep.subr.mxu0 %v1868_v22  ;;  %v1856_v7 = vmul.f32 %v5431_v53, %v1840_v19 }
 0x5d6   : > { %2428 = vrot.lane.b32.xlu1 %v5333_v59, %s3532_s28  ;;  %3069 = vmatpush3.msra.mxu0 %v1868_v22  ;;  %v5429_v59 = vld [vmem:[#allocation6_spill] sm:$0xff]  ;;  %v3483_v22 = vpop.eup %3482  ;;  %v1830_v51 = vmul.f32 %v3477_v36, %v1814_v47 }
 0x5d7   : > { %3071 = vmatmul.mubr.f32.vlgmr.msra.gmra.mxu0 %v1852_v38  ;;  %3094 = vmatprep.subr.mxu0 %v4894_v2  ;;  %v1854_v17 = vmul.f32 %v5429_v59, %v1838_v55  ;;  %v3485_v38 = vpop.eup %3484  ;;  %v1829_v55 = vmul.f32 %v3475_v45, %v1813_v41  ;;  %v1801_v62 = vmul.f32 %v3483_v22, %v4898_v14 }
 0x5d8   : > { %v2441_v44 = vpop.permute.xlu1 %2440  ;;  %3073 = vmatprep.mubr.f32.mxu0 %v1853_v28  ;;  %3095 = vmatpush3.msra.mxu0 %v4894_v2  ;;  %v1841_v2 = vmul.f32 0.25, %v1825_v35  ;;  %v1831_v14 = vmul.f32 %v3479_v23, %v1815_v24  ;;  %v1846_v4 = vmul.f32 0.25, %v1830_v51 }
 0x5d9   : > { %3096 = vmatprep.subr.mxu0 %v4908_v42  ;;  %3153 = vmatprep.subr.mxu1 %v2441_v44  ;;  %v1845_v35 = vmul.f32 0.25, %v1829_v55 }
 0x5da   : > { %2424 = vrot.lane.b32.xlu1 %v5335_v3, %s3532_s28  ;;  %3097 = vmatpush3.msra.mxu0 %v4908_v42  ;;  %v1843_v3 = vmul.f32 0.25, %v1827_v9  ;;  %v1800_v42 = vmul.f32 %v3481_v10, %v4863_v0  ;;  %v1857_v15 = vmul.f32 %v5432_v52, %v1841_v2  ;;  %v3487_v57 = vpop.eup %3486  ;;  %v1858_v0 = vmul.f32 %v5433_v40, %v1842_v58 }
 0x5db   : > { %3169 = vmatpush3.msra.mxu1 %v2441_v44  ;;  %3074 = vmatmul.mubr.f32.gmra.mxu0 %v1854_v17  ;;  %v2336_v21 = vmul.f32 %v3487_v57, %v4962_v27  ;;  %v1847_v19 = vmul.f32 0.25, %v1831_v14  ;;  %v1861_v16 = vmul.f32 %v4762_v8, %v1845_v35  ;;  %v1862_v23 = vmul.f32 %v4759_v30, %v1846_v4  ;;  %v3489_v47 = vpop.eup %3488 }
 0x5dc   : > { %3098 = vmatprep.subr.mxu0 %v4945_v50  ;;  %3076 = vmatprep.mubr.f32.mxu0 %v1855_v56  ;;  %v1816_v28 = vsub.f32 2.0, %v1800_v42  ;;  %v1859_v45 = vmul.f32 %v4738_v63, %v1843_v3  ;;  %v3491_v42 = vpop.eup %3490  ;;  %v2343_v24 = vmul.f32 %v3489_v47, %v4861_v34 }
 0x5dd   : > { %3099 = vmatpush3.msra.mxu0 %v4945_v50  ;;  %v1844_v50 = vmul.f32 0.25, %v1828_v6  ;;  %v1863_v56 = vmul.f32 %v4787_v39, %v1847_v19 }
 0x5de   : > { %3100 = vmatprep.subr.mxu0 %v2441_v44  ;;  %2420 = vrot.lane.b32.xlu1 %v5338_v1, %s3532_s28  ;;  %v1802_v1 = vmul.f32 %v3485_v38, %v4902_v31  ;;  %v1832_v59 = vmul.f32 %v3481_v10, %v1816_v28  ;;  %v2352_v31 = vsub.f32 2.0, %v2336_v21 }
 0x5df   : > { %3101 = vmatpush3.msra.mxu0 %v2441_v44  ;;  %v1817_v44 = vsub.f32 2.0, %v1801_v62  ;;  %v1860_v36 = vmul.f32 %v4721_v26, %v1844_v50  ;;  %v2344_v62 = vmul.f32 %v3491_v42, %v4882_v5  ;;  %v2359_v5 = vsub.f32 2.0, %v2343_v24 }
 0x5e0   : > { %3077 = vmatmul.mubr.f32.gmra.mxu0 %v1856_v7  ;;  %v1818_v17 = vsub.f32 2.0, %v1802_v1  ;;  %v2368_v27 = vmul.f32 %v3487_v57, %v2352_v31 }
 0x5e1   : > { %3079 = vmatprep.mubr.f32.mxu0 %v1857_v15  ;;  %v1833_v9 = vmul.f32 %v3483_v22, %v1817_v44  ;;  %v2360_v28 = vsub.f32 2.0, %v2344_v62 }
 0x5e2   : > { %2416 = vrot.lane.b32.xlu1 %v5349_v13, %s3532_s28  ;;  %v1848_v13 = vmul.f32 0.25, %v1832_v59  ;;  %v1834_v63 = vmul.f32 %v3485_v38, %v1818_v17  ;;  %v2384_v2 = vmul.f32 0.25, %v2368_v27  ;;  %v3493_v38 = vpop.eup %3492 }
 0x5e3   : > { %v1849_v48 = vmul.f32 0.25, %v1833_v9  ;;  %v2337_v15 = vmul.f32 %v3493_v38, %v4930_v60 }
 0x5e4   : > { %3080 = vmatmul.mubr.f32.gmra.mxu0 %v1858_v0  ;;  %v1850_v10 = vmul.f32 0.25, %v1834_v63  ;;  %v1864_v26 = vmul.f32 %v4790_v25, %v1848_v13  ;;  %v2400_v49 = vmul.f32 %v4850_v18, %v2384_v2 }
 0x5e5   : > { %3082 = vmatprep.mubr.f32.mxu0 %v1859_v45  ;;  %v1865_v41 = vmul.f32 %v4815_v43, %v1849_v48  ;;  %v2353_v45 = vsub.f32 2.0, %v2337_v15 }
 0x5e6   : > { %v1866_v8 = vmul.f32 %v4818_v33, %v1850_v10 }
 0x5e7   : > { %v2369_v9 = vmul.f32 %v3493_v38, %v2353_v45 }
 0x5e8   : > { %3083 = vmatmul.mubr.f32.gmra.mxu0 %v1860_v36  ;;  %v2375_v36 = vmul.f32 %v3489_v47, %v2359_v5 }
 0x5e9   : > { %3085 = vmatprep.mubr.f32.mxu0 %v1861_v16 }
 0x5ec   : > { %3086 = vmatmul.mubr.f32.gmra.mxu0 %v1862_v23 }
 0x5ed   : > { %3088 = vmatprep.mubr.f32.mxu0 %v1863_v56 }
 0x5f0   : > { %3089 = vmatmul.mubr.f32.gmra.mxu0 %v1864_v26 }
 0x5f1   : > { %3091 = vmatprep.mubr.f32.mxu0 %v1865_v41 }
 0x5f2   : > { %v5014_v30 = vpop.xlane.xlu0 %2312 }
 0x5f4   : > { %3092 = vmatmul.mubr.f32.gmra.mxu0 %v1866_v8 }
 0x5f5   : > { %3126 = vmatprep.mubr.f32.mxu0 %v2400_v49  ;;  %v2385_v49 = vmul.f32 0.25, %v2369_v9  ;;  %v5439_v9 = vld [vmem:[#allocation5_spill] sm:$0xff] }
 0x5f6   : > { %v5016_v39 = vpop.xlane.xlu0 %2314 }
 0x5f7   : > { %v2401_v62 = vmul.f32 %v4844_v46, %v2385_v49 }
 0x5fa   : > { %v2437_v25 = vpop.permute.xlu0 %2436 }
 0x609   : > { %v2293_v22 = vpop.xlane.xlu1 %2292 }
 0x60a   : > { %3494 = vrcp.f32 %v2293_v22 }
 0x60b   : > { %3496 = vrcp.f32 %v4887_v61 }
 0x60c   : > { %3498 = vrcp.f32 %v4924_v11 }
 0x60d   : > { %v5018_v58 = vpop.xlane.xlu1 %2294 }
 0x60e   : > { %3500 = vrcp.f32 %v5018_v58 }
 0x611   : > { %v2439_v6 = vpop.permute.xlu1 %2438 }
 0x612   : > { %3102 = vmatprep.subr.mxu0 %v2439_v6  ;;  %3154 = vmatprep.subr.mxu1 %v2439_v6 }
 0x613   : > { %3103 = vmatpush3.msra.mxu0 %v2439_v6  ;;  %3170 = vmatpush3.msra.mxu1 %v2439_v6 }
 0x614   : > { %3104 = vmatprep.subr.mxu0 %v2437_v25  ;;  %3155 = vmatprep.subr.mxu1 %v2437_v25 }
 0x615   : > { %3105 = vmatpush3.msra.mxu0 %v2437_v25  ;;  %3171 = vmatpush3.msra.mxu1 %v2437_v25 }
 0x617   : > { %v3495_v55 = vpop.eup %3494 }
 0x618   : > { %v3497_v52 = vpop.eup %3496  ;;  %v2338_v0 = vmul.f32 %v3495_v55, %v2293_v22 }
 0x619   : > { %v3499_v50 = vpop.eup %3498  ;;  %v2345_v1 = vmul.f32 %v3497_v52, %v4887_v61  ;;  %v2376_v61 = vmul.f32 %v3491_v42, %v2360_v28 }
 0x61a   : > { %v2346_v60 = vmul.f32 %v3499_v50, %v4924_v11  ;;  %v2354_v4 = vsub.f32 2.0, %v2338_v0 }
 0x61b   : > { %v3501_v40 = vpop.eup %3500  ;;  %v2361_v11 = vsub.f32 2.0, %v2345_v1  ;;  %v2392_v2 = vmul.f32 0.25, %v2376_v61 }
 0x61c   : > { %v2339_v44 = vmul.f32 %v3501_v40, %v5018_v58  ;;  %v2362_v19 = vsub.f32 2.0, %v2346_v60  ;;  %v2370_v56 = vmul.f32 %v3495_v55, %v2354_v4 }
 0x61d   : > { %v2377_v41 = vmul.f32 %v3497_v52, %v2361_v11  ;;  %v2408_v55 = vmul.f32 %v4809_v37, %v2392_v2  ;;  %v5438_v11 = vld [vmem:[#allocation24_spill] sm:$0xff] }
 0x61e   : > { %v2355_v63 = vsub.f32 2.0, %v2339_v44  ;;  %v2378_v8 = vmul.f32 %v3499_v50, %v2362_v19  ;;  %v2386_v47 = vmul.f32 0.25, %v2370_v56  ;;  %v5435_v44 = vld [vmem:[#allocation41_spill] sm:$0xff] }
 0x620   : > { %v2371_v25 = vmul.f32 %v3501_v40, %v2355_v63  ;;  %v2394_v24 = vmul.f32 0.25, %v2378_v8  ;;  %v2402_v46 = vmul.f32 %v4884_v29, %v2386_v47  ;;  %v5441_v63 = vld [vmem:[#allocation20_spill] sm:$0xff] }
 0x62b   : > { %v5023_v43 = vpop.xlane.xlu0 %2316 }
 0x62f   : > { %v5028_v18 = vpop.xlane.xlu0 %2318 }
 0x633   : > { %v2433_v53 = vpop.permute.xlu0 %2432 }
 0x637   : > { %v2427_v51 = vpop.permute.xlu0 %2426 }
 0x63b   : > { %v2423_v16 = vpop.permute.xlu0 %2422 }
 0x642   : > { %v2297_v33 = vpop.xlane.xlu1 %2296 }
 0x643   : > { %3502 = vrcp.f32 %v2297_v33 }
 0x644   : > { %3504 = vrcp.f32 %v4938_v54 }
 0x646   : > { %v5031_v3 = vpop.xlane.xlu1 %2298 }
 0x647   : > { %3506 = vrcp.f32 %v5031_v3 }
 0x648   : > { %3508 = vrcp.f32 %v5014_v30 }
 0x649   : > { %3510 = vrcp.f32 %v5016_v39 }
 0x64a   : > { %v2435_v7 = vpop.permute.xlu1 %2434  ;;  %3512 = vrcp.f32 %v5023_v43 }
 0x64b   : > { %3106 = vmatprep.subr.mxu0 %v2435_v7  ;;  %3156 = vmatprep.subr.mxu1 %v2435_v7  ;;  %3514 = vrcp.f32 %v5028_v18 }
 0x64c   : > { %3107 = vmatpush3.msra.mxu0 %v2435_v7  ;;  %3172 = vmatpush3.msra.mxu1 %v2435_v7 }
 0x64d   : > { %3108 = vmatprep.subr.mxu0 %v2433_v53  ;;  %3157 = vmatprep.subr.mxu1 %v2433_v53 }
 0x64e   : > { %v2431_v57 = vpop.permute.xlu1 %2430  ;;  %3109 = vmatpush3.msra.mxu0 %v2433_v53  ;;  %3173 = vmatpush3.msra.mxu1 %v2433_v53  ;;  %v2419_v53 = vpop.permute.xlu0 %2418 }
 0x64f   : > { %3110 = vmatprep.subr.mxu0 %v2431_v57  ;;  %3158 = vmatprep.subr.mxu1 %v2431_v57 }
 0x650   : > { %3111 = vmatpush3.msra.mxu0 %v2431_v57  ;;  %3174 = vmatpush3.msra.mxu1 %v2431_v57  ;;  %v3503_v34 = vpop.eup %3502  ;;  %v2387_v57 = vmul.f32 0.25, %v2371_v25 }
 0x651   : > { %v5043_v14 = vpop.eup %3504  ;;  %v2340_v59 = vmul.f32 %v3503_v34, %v2297_v33 }
 0x652   : > { %v2429_v35 = vpop.permute.xlu1 %2428  ;;  %v2347_v31 = vmul.f32 %v5043_v14, %v4938_v54  ;;  %v2391_v54 = vmul.f32 0.25, %v2375_v36  ;;  %v2403_v1 = vmul.f32 %v4889_v20, %v2387_v57 }
 0x653   : > { %3112 = vmatprep.subr.mxu0 %v2429_v35  ;;  %3159 = vmatprep.subr.mxu1 %v2429_v35  ;;  %v2356_v10 = vsub.f32 2.0, %v2340_v59  ;;  %v5436_v59 = vld [vmem:[#allocation16_spill] sm:$0xff] }
 0x654   : > { %v5046_v21 = vpop.eup %3506  ;;  %3113 = vmatpush3.msra.mxu0 %v2429_v35  ;;  %3175 = vmatpush3.msra.mxu1 %v2429_v35  ;;  %v2363_v22 = vsub.f32 2.0, %v2347_v31  ;;  %v2407_v38 = vmul.f32 %v4784_v12, %v2391_v54  ;;  %v5434_v35 = vld [vmem:[#allocation2_spill] sm:$0xff] }
 0x655   : > { %v5048_v17 = vpop.eup %3508  ;;  %3114 = vmatprep.subr.mxu0 %v2427_v51  ;;  %3160 = vmatprep.subr.mxu1 %v2427_v51  ;;  %v2341_v23 = vmul.f32 %v5046_v21, %v5031_v3  ;;  %v2372_v7 = vmul.f32 %v3503_v34, %v2356_v10 }
 0x656   : > { %v2425_v13 = vpop.permute.xlu1 %2424  ;;  %3115 = vmatpush3.msra.mxu0 %v2427_v51  ;;  %3176 = vmatpush3.msra.mxu1 %v2427_v51  ;;  %v3511_v48 = vpop.eup %3510  ;;  %v2348_v27 = vmul.f32 %v5048_v17, %v5014_v30  ;;  %v2379_v52 = vmul.f32 %v5043_v14, %v2363_v22 }
 0x657   : > { %3116 = vmatprep.subr.mxu0 %v2425_v13  ;;  %3161 = vmatprep.subr.mxu1 %v2425_v13  ;;  %v3513_v26 = vpop.eup %3512  ;;  %v2349_v6 = vmul.f32 %v3511_v48, %v5016_v39  ;;  %v2357_v30 = vsub.f32 2.0, %v2341_v23  ;;  %v2393_v39 = vmul.f32 0.25, %v2377_v41  ;;  %v2388_v0 = vmul.f32 0.25, %v2372_v7  ;;  %v3016_v7 = vpop.f32.mrf.mxu1 }
 0x658   : > { %3117 = vmatpush3.msra.mxu0 %v2425_v13  ;;  %3177 = vmatpush3.msra.mxu1 %v2425_v13  ;;  %v3515_v33 = vpop.eup %3514  ;;  %v2364_v3 = vsub.f32 2.0, %v2348_v27  ;;  %v2350_v42 = vmul.f32 %v3513_v26, %v5023_v43  ;;  %v2395_v51 = vmul.f32 0.25, %v2379_v52 }
 0x659   : > { %3118 = vmatprep.subr.mxu0 %v2423_v16  ;;  %3162 = vmatprep.subr.mxu1 %v2423_v16  ;;  %v2365_v43 = vsub.f32 2.0, %v2349_v6  ;;  %v2351_v50 = vmul.f32 %v3515_v33, %v5028_v18  ;;  %v2373_v40 = vmul.f32 %v5046_v21, %v2357_v30  ;;  %v2409_v34 = vmul.f32 %v4812_v32, %v2393_v39  ;;  %v5437_v32 = vld [vmem:[#allocation14_spill] sm:$0xff] }
 0x65a   : > { %v2421_v58 = vpop.permute.xlu1 %2420  ;;  %3119 = vmatpush3.msra.mxu0 %v2423_v16  ;;  %3178 = vmatpush3.msra.mxu1 %v2423_v16  ;;  %v2380_v12 = vmul.f32 %v5048_v17, %v2364_v3  ;;  %v2366_v37 = vsub.f32 2.0, %v2350_v42  ;;  %v2404_v14 = vmul.f32 %v5434_v35, %v2388_v0  ;;  %v2410_v21 = vmul.f32 %v5435_v44, %v2394_v24  ;;  %v5440_v16 = vld [vmem:[#allocation15_spill] sm:$0xff] }
 0x65b   : > { %3120 = vmatprep.subr.mxu0 %v2421_v58  ;;  %3163 = vmatprep.subr.mxu1 %v2421_v58  ;;  %v2381_v18 = vmul.f32 %v3511_v48, %v2365_v43  ;;  %v2367_v5 = vsub.f32 2.0, %v2351_v50  ;;  %v2389_v28 = vmul.f32 0.25, %v2373_v40  ;;  %v2411_v36 = vmul.f32 %v5437_v32, %v2395_v51  ;;  %v2960_v48 = vpop.f32.mrf.mxu0 }
 0x65c   : > { %3121 = vmatpush3.msra.mxu0 %v2421_v58  ;;  %3179 = vmatpush3.msra.mxu1 %v2421_v58  ;;  %v2396_v60 = vmul.f32 0.25, %v2380_v12  ;;  %v2382_v45 = vmul.f32 %v3513_v26, %v2366_v37  ;;  %v1454_v44 = vadd.f32 %v3016_v7, %v2960_v48 }
 0x65d   : > { %3122 = vmatprep.subr.mxu0 %v2419_v53  ;;  %3164 = vmatprep.subr.mxu1 %v2419_v53  ;;  %v2397_v29 = vmul.f32 0.25, %v2381_v18  ;;  %v2383_v4 = vmul.f32 %v3515_v33, %v2367_v5  ;;  %v2405_v17 = vmul.f32 %v5436_v59, %v2389_v28  ;;  %v1303_v27 = vpop.f32.mrf.mxu0 }
 0x65e   : > { %v2417_v15 = vpop.permute.xlu1 %2416  ;;  %3123 = vmatpush3.msra.mxu0 %v2419_v53  ;;  %3180 = vmatpush3.msra.mxu1 %v2419_v53  ;;  %v2398_v61 = vmul.f32 0.25, %v2382_v45  ;;  %v2412_v19 = vmul.f32 %v5438_v11, %v2396_v60 }
 0x65f   : > { %3124 = vmatprep.subr.mxu0 %v2417_v15  ;;  %3165 = vmatprep.subr.mxu1 %v2417_v15  ;;  %v2399_v20 = vmul.f32 0.25, %v2383_v4  ;;  %v2413_v31 = vmul.f32 %v5439_v9, %v2397_v29  ;;  %v2963_v56 = vpop.f32.mrf.mxu0 }
 0x660   : > { %3125 = vmatpush3.msra.mxu0 %v2417_v15  ;;  %3181 = vmatpush3.msra.mxu1 %v2417_v15  ;;  %v2414_v13 = vmul.f32 %v5440_v16, %v2398_v61 }
 0x661   : > { %3127 = vmatmul.mubr.f32.vlgmr.msra.gmra.mxu0 %v2401_v62  ;;  %3136 = vmatmul.mubr.f32.vlgmr.msra.gmra.mxu1 %v2407_v38  ;;  %v2415_v23 = vmul.f32 %v5441_v63, %v2399_v20  ;;  %v1313_v10 = vpop.f32.mrf.mxu0 }
 0x662   : > { %3129 = vmatprep.mubr.f32.mxu0 %v2402_v46  ;;  %3138 = vmatprep.mubr.f32.mxu1 %v2408_v55  ;;  %v1448_v55 = vpop.f32.mrf.mxu1 }
 0x663   : > { %v5076_v26 = vpop.f32.mrf.mxu0  ;;  %v1449_v59 = vadd.f32 %v1448_v55, %v1303_v27 }
 0x664   : > { %v3019_v39 = vpop.f32.mrf.mxu1 }
 0x665   : > { %3130 = vmatmul.mubr.f32.gmra.mxu0 %v2403_v1  ;;  %3139 = vmatmul.mubr.f32.gmra.mxu1 %v2409_v34  ;;  %v5078_v54 = vpop.f32.mrf.mxu0  ;;  %v1464_v61 = vadd.f32 %v3019_v39, %v2963_v56 }
 0x666   : > { %3132 = vmatprep.mubr.f32.mxu0 %v2404_v14  ;;  %3141 = vmatprep.mubr.f32.mxu1 %v2410_v21  ;;  %v1458_v62 = vpop.f32.mrf.mxu1 }
 0x667   : > { %v2969_v2 = vpop.f32.mrf.mxu0  ;;  %v1459_v63 = vadd.f32 %v1458_v62, %v1313_v10 }
 0x668   : > { %v3022_v15 = vpop.f32.mrf.mxu1 }
 0x669   : > { %3133 = vmatmul.mubr.f32.gmra.mxu0 %v2405_v17  ;;  %3142 = vmatmul.mubr.f32.gmra.mxu1 %v2411_v36  ;;  %v1333_v41 = vpop.f32.mrf.mxu0 }
 0x66a   : > { %3144 = vmatprep.mubr.f32.mxu1 %v2412_v19  ;;  %v1468_v57 = vpop.f32.mrf.mxu1 }
 0x66b   : > { %v2972_v8 = vpop.f32.mrf.mxu0  ;;  %v1469_v62 = vadd.f32 %v1468_v57, %v5078_v54 }
 0x66c   : > { %v3025_v50 = vpop.f32.mrf.mxu1 }
 0x66d   : > { %3145 = vmatmul.mubr.f32.gmra.mxu1 %v2413_v31  ;;  %v1343_v49 = vpop.f32.mrf.mxu0  ;;  %v1484_v21 = vadd.f32 %v3025_v50, %v2969_v2 }
 0x66e   : > { %3147 = vmatprep.mubr.f32.mxu1 %v2414_v13  ;;  %v1478_v12 = vpop.f32.mrf.mxu1 }
 0x66f   : > { %v5080_v22 = vpop.f32.mrf.mxu0  ;;  %v1479_v17 = vadd.f32 %v1478_v12, %v1333_v41 }
 0x670   : > { %v3028_v0 = vpop.f32.mrf.mxu1 }
 0x671   : > { %3148 = vmatmul.mubr.f32.gmra.mxu1 %v2415_v23  ;;  %v5082_v58 = vpop.f32.mrf.mxu0  ;;  %v1494_v11 = vadd.f32 %v3028_v0, %v2972_v8 }
 0x672   : > { %v1488_v51 = vpop.f32.mrf.mxu1 }
 0x673   : > { %v5084_v6 = vpop.f32.mrf.mxu0  ;;  %v1489_v23 = vadd.f32 %v1488_v51, %v1343_v49 }
 0x674   : > { %v3031_v34 = vpop.f32.mrf.mxu1 }
 0x675   : > { %v5086_v25 = vpop.f32.mrf.mxu0 }
 0x676   : > { %v1498_v5 = vpop.f32.mrf.mxu1 }
 0x677   : > { %v5088_v30 = vpop.f32.mrf.mxu0 }
 0x678   : > { %v3034_v1 = vpop.f32.mrf.mxu1 }
 0x679   : > { %v5090_v33 = vpop.f32.mrf.mxu0 }
 0x67a   : > { %v5100_v45 = vpop.f32.mrf.mxu1 }
 0x67b   : > { %v1509_v51 = vadd.f32 %v5100_v45, %v5086_v25 }
 0x67c   : > { %v5102_v35 = vpop.f32.mrf.mxu1 }
 0x67e   : > { %v5107_v29 = vpop.f32.mrf.mxu1 }
 0x67f   : > { %v1519_v45 = vadd.f32 %v5107_v29, %v5090_v33 }
 0x697   : > { %v3072_v3 = vpop.f32.mrf.mxu0 }
 0x698   : > { %v2061_v32 = vadd.f32 %v3072_v3, %v1454_v44  ;;  %v1474_v3 = vadd.f32 %v3022_v15, %v5076_v26  ;;  %v1499_v26 = vadd.f32 %v1498_v5, %v5082_v58  ;;  %v1524_v5 = vadd.f32 %v5102_v35, %v5088_v30 }
 0x699   : > { %v1981_v47 = vpop.f32.mrf.mxu0 }
 0x69a   : > { %v2060_v9 = vadd.f32 %v1981_v47, %v1449_v59  ;;  %v1504_v47 = vadd.f32 %v3031_v34, %v5080_v22 }
 0x69b   : > { %v3075_v42 = vpop.f32.mrf.mxu0 }
 0x69c   : > { %v2063_v56 = vadd.f32 %v3075_v42, %v1464_v61 }
 0x69d   : > { %v1991_v53 = vpop.f32.mrf.mxu0 }
 0x69e   : > { %v2062_v49 = vadd.f32 %v1991_v53, %v1459_v63 }
 0x6a0   : > { %v5092_v38 = vpop.f32.mrf.mxu0 }
 0x6a1   : > { %v2065_v22 = vadd.f32 %v5092_v38, %v1474_v3 }
 0x6a2   : > { %v5094_v24 = vpop.f32.mrf.mxu0 }
 0x6a3   : > { %v2064_v57 = vadd.f32 %v5094_v24, %v1469_v62 }
 0x6a4   : > { %v3081_v52 = vpop.f32.mrf.mxu0 }
 0x6a5   : > { %v2067_v36 = vadd.f32 %v3081_v52, %v1484_v21 }
 0x6a6   : > { %v2011_v43 = vpop.f32.mrf.mxu0 }
 0x6a7   : > { %v2066_v31 = vadd.f32 %v2011_v43, %v1479_v17 }
 0x6a8   : > { %v3084_v40 = vpop.f32.mrf.mxu0 }
 0x6a9   : > { %v2069_v2 = vadd.f32 %v3084_v40, %v1494_v11  ;;  %v1514_v40 = vadd.f32 %v3034_v1, %v5084_v6 }
 0x6aa   : > { %v2021_v37 = vpop.f32.mrf.mxu0 }
 0x6ab   : > { %v2068_v55 = vadd.f32 %v2021_v37, %v1489_v23 }
 0x6ac   : > { %v3087_v46 = vpop.f32.mrf.mxu0 }
 0x6ad   : > { %v2071_v43 = vadd.f32 %v3087_v46, %v1504_v47 }
 0x6ae   : > { %v2031_v18 = vpop.f32.mrf.mxu0 }
 0x6af   : > { %v2070_v58 = vadd.f32 %v2031_v18, %v1499_v26 }
 0x6b0   : > { %v5096_v28 = vpop.f32.mrf.mxu0 }
 0x6b1   : > { %v2073_v6 = vadd.f32 %v5096_v28, %v1514_v40 }
 0x6b2   : > { %v5098_v60 = vpop.f32.mrf.mxu0 }
 0x6b3   : > { %v2072_v1 = vadd.f32 %v5098_v60, %v1509_v51 }
 0x6b4   : > { %v5104_v14 = vpop.f32.mrf.mxu0 }
 0x6b5   : > { %v2075_v44 = vadd.f32 %v5104_v14, %v1524_v5 }
 0x6b6   : > { %v5109_v4 = vpop.f32.mrf.mxu0 }
 0x6b7   : > { %v2074_v30 = vadd.f32 %v5109_v4, %v1519_v45 }
 0x721   : > { %v3128_v19 = vpop.f32.mrf.mxu0  ;;  %v3137_v20 = vpop.f32.mrf.mxu1 }
 0x722   : > { %v2610_v16 = vadd.f32 %v3128_v19, %v2061_v32  ;;  %v2616_v13 = vadd.f32 %v3137_v20, %v2067_v36 }
 0x723   : > { %v2530_v48 = vpop.f32.mrf.mxu0  ;;  %v2560_v27 = vpop.f32.mrf.mxu1 }
 0x724   : > { %2627 = vst.msk [vmem:[%s5114_s4 + $0x8] sm:$0xff] %vm2625_vm3, %v2610_v16  ;;  %2633 = vst.msk [vmem:[%s5114_s4 + $0x38] sm:$0xff] %vm2625_vm3, %v2616_v13  ;;  %v2609_v41 = vadd.f32 %v2530_v48, %v2060_v9  ;;  %v2615_v8 = vadd.f32 %v2560_v27, %v2066_v31 }
 0x725   : > { %v3131_v10 = vpop.f32.mrf.mxu0  ;;  %v3140_v7 = vpop.f32.mrf.mxu1 }
 0x726   : > { %2626 = vst.msk [vmem:[%s5114_s4] sm:$0xff] %vm2625_vm3, %v2609_v41  ;;  %2632 = vst.msk [vmem:[%s5114_s4 + $0x30] sm:$0xff] %vm2625_vm3, %v2615_v8  ;;  %v2612_v42 = vadd.f32 %v3131_v10, %v2063_v56  ;;  %v2618_v39 = vadd.f32 %v3140_v7, %v2069_v2 }
 0x727   : > { %v2540_v52 = vpop.f32.mrf.mxu0  ;;  %v2570_v15 = vpop.f32.mrf.mxu1 }
 0x728   : > { %2629 = vst.msk [vmem:[%s5114_s4 + $0x18] sm:$0xff] %vm2625_vm3, %v2612_v42  ;;  %2635 = vst.msk [vmem:[%s5114_s4 + $0x48] sm:$0xff] %vm2625_vm3, %v2618_v39  ;;  %v2611_v53 = vadd.f32 %v2540_v52, %v2062_v49  ;;  %v2617_v50 = vadd.f32 %v2570_v15, %v2068_v55 }
 0x729   : > { %v3134_v12 = vpop.f32.mrf.mxu0  ;;  %v3143_v54 = vpop.f32.mrf.mxu1 }
 0x72a   : > { %2628 = vst.msk [vmem:[%s5114_s4 + $0x10] sm:$0xff] %vm2625_vm3, %v2611_v53  ;;  %2634 = vst.msk [vmem:[%s5114_s4 + $0x40] sm:$0xff] %vm2625_vm3, %v2617_v50  ;;  %v2614_v38 = vadd.f32 %v3134_v12, %v2065_v22  ;;  %v2620_v37 = vadd.f32 %v3143_v54, %v2071_v43 }
 0x72b   : > { %v2550_v0 = vpop.f32.mrf.mxu0  ;;  %v2580_v46 = vpop.f32.mrf.mxu1 }
 0x72c   : > { %2631 = vst.msk [vmem:[%s5114_s4 + $0x28] sm:$0xff] %vm2625_vm3, %v2614_v38  ;;  %2637 = vst.msk [vmem:[%s5114_s4 + $0x58] sm:$0xff] %vm2625_vm3, %v2620_v37  ;;  %v2613_v24 = vadd.f32 %v2550_v0, %v2064_v57  ;;  %v2619_v34 = vadd.f32 %v2580_v46, %v2070_v58 }
 0x72d   : > { %v3146_v18 = vpop.f32.mrf.mxu1 }
 0x72e   : > { %2630 = vst.msk [vmem:[%s5114_s4 + $0x20] sm:$0xff] %vm2625_vm3, %v2613_v24  ;;  %2636 = vst.msk [vmem:[%s5114_s4 + $0x50] sm:$0xff] %vm2625_vm3, %v2619_v34  ;;  %v2622_v25 = vadd.f32 %v3146_v18, %v2073_v6 }
 0x72f   : > { %v2590_v28 = vpop.f32.mrf.mxu1 }
 0x730   : > { %2639 = vst.msk [vmem:[%s5114_s4 + $0x68] sm:$0xff] %vm2625_vm3, %v2622_v25  ;;  %v2621_v21 = vadd.f32 %v2590_v28, %v2072_v1 }
 0x731   : > { %v3149_v59 = vpop.f32.mrf.mxu1 }
 0x732   : > { %2638 = vst.msk [vmem:[%s5114_s4 + $0x60] sm:$0xff] %vm2625_vm3, %v2621_v21  ;;  %v2624_v60 = vadd.f32 %v3149_v59, %v2075_v44 }
 0x733   : > { %v2600_v35 = vpop.f32.mrf.mxu1 }
 0x734   : > { %2641 = vst.msk [vmem:[%s5114_s4 + $0x78] sm:$0xff] %vm2625_vm3, %v2624_v60  ;;  %v2623_v17 = vadd.f32 %v2600_v35, %v2074_v30 }
 0x736   : > { %2640 = vst.msk [vmem:[%s5114_s4 + $0x70] sm:$0xff] %vm2625_vm3, %v2623_v17 }
 0x737 PF: > { %s12_s9 = sadd.s32 1, %s3522_s9  }
 0x738   : > { %p9_p4 = scmp.ge.s32.totalorder %s12_s9, 4  }
 0x73a   :  { %11 = sbr.rel (!%p9_p4) target bundleno = 1 (0x1), region = 58 }

</bundles_post_ra>
